<compile_context>
chip_gen: v7x
topology: tpu7x:2x2x1
jax: 0.10.0
libtpu: 0.0.40
codegen_flags: <defaults>
</compile_context>

<pallas_src>
import math
import functools

import jax
import jax.numpy as jnp
from jax import lax
from jax.experimental import pallas as pl
from jax.experimental.pallas import tpu as pltpu


# --------------------------------------------------------------------------------
# small helpers
# --------------------------------------------------------------------------------

_VMEM_STREAM_BUDGET = 24 * 1024 * 1024  # double-buffered activation bytes per kernel


def _round_up(n, m):
    return ((n + m - 1) // m) * m


def _erf(x):
    # Abramowitz & Stegun 7.1.26, |abs err| <= 1.5e-7 (float32 level).  Uses only
    # abs/exp/where/mul/add so it lowers cleanly in Mosaic.
    p = 0.3275911
    a1, a2, a3, a4, a5 = (0.254829592, -0.284496736, 1.421413741,
                          -1.453152027, 1.061405429)
    ax = jnp.abs(x)
    t = 1.0 / (1.0 + p * ax)
    poly = ((((a5 * t + a4) * t + a3) * t + a2) * t + a1) * t
    y = 1.0 - poly * jnp.exp(-ax * ax)
    return jnp.where(x >= 0, y, -y)


def _gelu_exact(x):
    # matches torch.nn.functional.gelu (approximate='none') to ~1e-6
    return 0.5 * x * (1.0 + _erf(x * (1.0 / math.sqrt(2.0))))


def _compiler_params():
    return pltpu.CompilerParams(dimension_semantics=("parallel",),
                                vmem_limit_bytes=32 * 1024 * 1024)


def _eff_block_rows(block_rows, *col_widths):
    """Cap the row tile so the double-buffered activation streams stay under budget."""
    bytes_per_row = 8 * sum(max(128, _round_up(int(c), 128)) for c in col_widths)
    cap = max(256, (_VMEM_STREAM_BUDGET // bytes_per_row) // 8 * 8)
    return max(8, min(block_rows, cap))


def _choose_rows(n_rows, block_rows):
    """Pick (row tile, padded rows).  Prefers a tile that divides n_rows (no pad)."""
    block_rows = max(8, (block_rows // 8) * 8)
    if n_rows <= block_rows:
        return n_rows, n_rows                     # one full block (always legal)
    d = block_rows
    lo = max(8, block_rows // 8)
    while d >= lo:
        if n_rows % d == 0:
            return d, n_rows
        d -= 8
    return block_rows, _round_up(n_rows, block_rows)   # rare fallback: pad + slice


def _pad_rows(x2d, n_pad):
    n = x2d.shape[0]
    return x2d if n_pad == n else jnp.pad(x2d, ((0, n_pad - n), (0, 0)))


def _pack_factor(cout, n_rows, lanes=128):
    """Spatial rows packed per 128-lane row so outputs of width `cout` are lane-dense."""
    if 0 < cout < lanes and lanes % cout == 0:
        r = lanes // cout
        if n_rows % r == 0:
            return r
    return 1


def _block_diag(w, r):
    if r == 1:
        return w
    cin, cout = w.shape
    bd = jnp.zeros((r * cin, r * cout), w.dtype)
    for k in range(r):
        bd = bd.at[k * cin:(k + 1) * cin, k * cout:(k + 1) * cout].set(w)
    return bd


# --------------------------------------------------------------------------------
# Pallas kernels: dense streamers
# --------------------------------------------------------------------------------

def _linear_kernel(x_ref, w_ref, b_ref, o_ref, *, apply_act):
    y = jnp.dot(x_ref[...], w_ref[...], preferred_element_type=jnp.float32) + b_ref[...]
    if apply_act:
        y = _gelu_exact(y)
    o_ref[...] = y.astype(o_ref.dtype)


def linear(x2d, w, b, apply_act=False, block_rows=8192):
    """y = act(x2d @ w + b); x2d: (N, Cin), w: (Cin, Cout), b: (Cout,)."""
    N, Cin = x2d.shape
    Cout = w.shape[1]
    bn, n_pad = _choose_rows(N, _eff_block_rows(block_rows, Cin, Cout))
    xp = _pad_rows(x2d, n_pad)
    out = pl.pallas_call(
        functools.partial(_linear_kernel, apply_act=apply_act),
        out_shape=jax.ShapeDtypeStruct((n_pad, Cout), jnp.float32),
        grid=(n_pad // bn,),
        in_specs=[
            pl.BlockSpec((bn, Cin), lambda i: (i, 0)),
            pl.BlockSpec((Cin, Cout), lambda i: (0, 0)),
            pl.BlockSpec((1, Cout), lambda i: (0, 0)),
        ],
        out_specs=pl.BlockSpec((bn, Cout), lambda i: (i, 0)),
        compiler_params=_compiler_params(),
        cost_estimate=pl.CostEstimate(
            flops=2 * n_pad * Cin * Cout,
            transcendentals=(n_pad * Cout if apply_act else 0),
            bytes_accessed=4 * (n_pad * (Cin + Cout) + Cin * Cout + Cout)),
    )(xp, w, b.reshape(1, Cout))
    return out if n_pad == N else out[:N]


def _conv1x1_add_act_kernel(x_ref, w_ref, b_ref, x1_ref, o_ref, *, apply_act):
    # 1x1 conv over channels (= matmul) + bias + spectral branch + optional GELU
    y = jnp.dot(x_ref[...], w_ref[...], preferred_element_type=jnp.float32)
    y = y + b_ref[...] + x1_ref[...]
    if apply_act:
        y = _gelu_exact(y)
    o_ref[...] = y.astype(o_ref.dtype)


def conv1x1_add_act(x2d, w, b, x1_2d, apply_act, block_rows=8192):
    """act(x1 + conv1x1(x)), rows flattened to (N, C)."""
    N, Cin = x2d.shape
    Cout = w.shape[1]
    bn, n_pad = _choose_rows(N, _eff_block_rows(block_rows, Cin, Cout, Cout))
    xp = _pad_rows(x2d, n_pad)
    x1p = _pad_rows(x1_2d, n_pad)
    out = pl.pallas_call(
        functools.partial(_conv1x1_add_act_kernel, apply_act=apply_act),
        out_shape=jax.ShapeDtypeStruct((n_pad, Cout), jnp.float32),
        grid=(n_pad // bn,),
        in_specs=[
            pl.BlockSpec((bn, Cin), lambda i: (i, 0)),
            pl.BlockSpec((Cin, Cout), lambda i: (0, 0)),
            pl.BlockSpec((1, Cout), lambda i: (0, 0)),
            pl.BlockSpec((bn, Cout), lambda i: (i, 0)),
        ],
        out_specs=pl.BlockSpec((bn, Cout), lambda i: (i, 0)),
        compiler_params=_compiler_params(),
        cost_estimate=pl.CostEstimate(
            flops=2 * n_pad * Cin * Cout,
            transcendentals=(n_pad * Cout if apply_act else 0),
            bytes_accessed=4 * (n_pad * (Cin + 2 * Cout) + Cin * Cout + Cout)),
    )(xp, w, b.reshape(1, Cout), x1p)
    return out if n_pad == N else out[:N]


def _proj_kernel(x_ref, w1_ref, b1_ref, w2_ref, b2_ref, o_ref):
    # fused fc1 + GELU + fc2: the (bn, fc_dim) intermediate never leaves VMEM/vregs
    h = jnp.dot(x_ref[...], w1_ref[...], preferred_element_type=jnp.float32) + b1_ref[...]
    h = _gelu_exact(h)
    y = jnp.dot(h, w2_ref[...], preferred_element_type=jnp.float32) + b2_ref[...]
    o_ref[...] = y.astype(o_ref.dtype)


def projection_head(x2d, w1, b1, w2, b2, block_rows=8192):
    """fc2(gelu(fc1(x))) fused in one kernel; x2d: (N, C)."""
    N, C = x2d.shape
    F1 = w1.shape[1]
    Cout = w2.shape[1]
    bn, n_pad = _choose_rows(N, _eff_block_rows(block_rows, C, F1, Cout))
    xp = _pad_rows(x2d, n_pad)
    out = pl.pallas_call(
        _proj_kernel,
        out_shape=jax.ShapeDtypeStruct((n_pad, Cout), jnp.float32),
        grid=(n_pad // bn,),
        in_specs=[
            pl.BlockSpec((bn, C), lambda i: (i, 0)),
            pl.BlockSpec((C, F1), lambda i: (0, 0)),
            pl.BlockSpec((1, F1), lambda i: (0, 0)),
            pl.BlockSpec((F1, Cout), lambda i: (0, 0)),
            pl.BlockSpec((1, Cout), lambda i: (0, 0)),
        ],
        out_specs=pl.BlockSpec((bn, Cout), lambda i: (i, 0)),
        compiler_params=_compiler_params(),
        cost_estimate=pl.CostEstimate(
            flops=2 * n_pad * (C * F1 + F1 * Cout),
            transcendentals=n_pad * F1,
            bytes_accessed=4 * (n_pad * (C + Cout) + C * F1 + F1 * Cout + F1 + Cout)),
    )(xp, w1, b1.reshape(1, F1), w2, b2.reshape(1, Cout))
    return out if n_pad == N else out[:N]


# --------------------------------------------------------------------------------
# Pallas kernel: spectral mode mixing (packed complex matmul, batched over modes)
# --------------------------------------------------------------------------------

def _cmul_kernel(a_ref, w_ref, o_ref):
    # (mb, B, 2I) @ (mb, 2I, 2O) with the mode axis as a batch dim -> one MXU stream
    o_ref[...] = lax.dot_general(
        a_ref[...], w_ref[...],
        dimension_numbers=(((2,), (1,)), ((0,), (0,))),
        preferred_element_type=jnp.float32).astype(o_ref.dtype)


def cmul_modes(a_cat, w_cat, mode_block=32):
    """a_cat: (M_pad, B, 2I) f32, w_cat: (M_pad, 2I, 2O) f32 -> (M_pad, B, 2O) f32."""
    M_pad, B, I2 = a_cat.shape
    O2 = w_cat.shape[2]
    mb = 1
    for d in range(min(mode_block, M_pad), 0, -1):   # prep pads M_pad to mode_block
        if M_pad % d == 0:
            mb = d
            break
    return pl.pallas_call(
        _cmul_kernel,
        out_shape=jax.ShapeDtypeStruct((M_pad, B, O2), jnp.float32),
        grid=(M_pad // mb,),
        in_specs=[
            pl.BlockSpec((mb, B, I2), lambda i: (i, 0, 0)),
            pl.BlockSpec((mb, I2, O2), lambda i: (i, 0, 0)),
        ],
        out_specs=pl.BlockSpec((mb, B, O2), lambda i: (i, 0, 0)),
        compiler_params=_compiler_params(),
        cost_estimate=pl.CostEstimate(
            flops=2 * M_pad * B * I2 * O2,
            transcendentals=0,
            bytes_accessed=4 * M_pad * (B * I2 + I2 * O2 + B * O2)),
    )(a_cat, w_cat)


def pack_spectral_weights(w1, w2, mode_block=32):
    """(I,O,m1,m2) complex x2 -> (M_pad, 2I, 2O) f32, mode-major, M padded to mode_block."""
    I, O, m1, m2 = w1.shape
    M = 2 * m1 * m2
    w_all = jnp.concatenate([w1, w2], axis=2)                     # (I, O, 2m1, m2)
    w_m = jnp.transpose(w_all, (2, 3, 0, 1)).reshape(M, I, O)
    wr = jnp.real(w_m).astype(jnp.float32)
    wi = jnp.imag(w_m).astype(jnp.float32)
    w_cat = jnp.concatenate(
        [jnp.concatenate([wr, wi], axis=-1),
         jnp.concatenate([-wi, wr], axis=-1)], axis=1)            # (M, 2I, 2O)
    M_pad = _round_up(M, mode_block)
    if M_pad != M:
        w_cat = jnp.pad(w_cat, ((0, M_pad - M), (0, 0), (0, 0)))
    return w_cat


def prepare_params(params, mode_block=32):
    """One-time packing of the spectral weights into the Pallas-friendly layout."""
    p = dict(params)
    p["sp_packed"] = [pack_spectral_weights(w1, w2, mode_block)
                      for (w1, w2) in params["sp"]]
    return p


# --------------------------------------------------------------------------------
# SpectralConv2d forward (FFT / small DFT matmuls in XLA, mode mix in Pallas)
# --------------------------------------------------------------------------------

def spectral_conv2d(h, w_cat, m1, m2, mode_block=32):
    """h: (B, H, W, Cin) f32; w_cat: prepacked (M_pad, 2Cin, 2Cout) f32."""
    hp = lax.Precision.HIGHEST
    B, H, W, Cin = h.shape
    Wf = W // 2 + 1
    if 2 * m1 > H or m2 > Wf:
        raise ValueError(f"modes ({m1},{m2}) too large for spatial grid ({H},{W})")
    if w_cat.shape[1] != 2 * Cin:
        raise ValueError("packed spectral weight does not match input channels")
    Cout = w_cat.shape[2] // 2
    M = 2 * m1 * m2
    M_pad = w_cat.shape[0]

    rows = jnp.concatenate([jnp.arange(m1), jnp.arange(H - m1, H)])   # kept H-freqs
    hh = jnp.arange(H)

    # ---- forward: XLA rfft along W (keep m2 cols), truncated DFT-matmul along H
    xf = jnp.fft.rfft(h, axis=2)[:, :, :m2, :]                        # (B,H,m2,Cin) c64
    ffwd = jnp.exp(-2j * jnp.pi * rows[:, None] * hh[None, :] / H).astype(jnp.complex64)
    a = jnp.einsum('jh,bhkc->bjkc', ffwd, xf, precision=hp)           # (B,2m1,m2,Cin)

    # ---- mode mixing on the MXU (Pallas), real/imag packed, mode-major
    a_m = jnp.transpose(a, (1, 2, 0, 3)).reshape(M, B, Cin)
    a_cat = jnp.concatenate([jnp.real(a_m), jnp.imag(a_m)], axis=-1).astype(jnp.float32)
    if M_pad != M:
        a_cat = jnp.pad(a_cat, ((0, M_pad - M), (0, 0), (0, 0)))
    o_cat = cmul_modes(a_cat, w_cat, mode_block)[:M]                  # (M, B, 2Cout)
    out_modes = lax.complex(o_cat[..., :Cout], o_cat[..., Cout:])
    out_modes = out_modes.reshape(2 * m1, m2, B, Cout)                # (j, k, b, c)

    # ---- inverse: truncated iDFT-matmul along H (no zero-filled rows), then the
    # W-axis irfft synthesized with two real matmuls (implicit zero columns >= m2)
    finv = (jnp.exp(2j * jnp.pi * hh[:, None] * rows[None, :] / H) / H).astype(jnp.complex64)
    tmp = jnp.einsum('hj,jkbc->bhkc', finv, out_modes, precision=hp)  # (B,H,m2,Cout)

    kk = jnp.arange(m2)
    ww = jnp.arange(W)
    ck = jnp.where(kk == 0, 1.0, 2.0)
    if (W % 2 == 0) and (m2 == Wf):
        ck = ck.at[m2 - 1].set(1.0)                                   # Nyquist bin
    ang = 2.0 * jnp.pi * kk[:, None] * ww[None, :] / W                # (m2, W)
    cmat = (ck[:, None] * jnp.cos(ang) / W).astype(jnp.float32)
    smat = (-ck[:, None] * jnp.sin(ang) / W).astype(jnp.float32)
    y = (jnp.einsum('bhkc,kw->bhwc', jnp.real(tmp), cmat, precision=hp)
         + jnp.einsum('bhkc,kw->bhwc', jnp.imag(tmp), smat, precision=hp))
    return y.astype(jnp.float32)                                      # (B, H, W, Cout)


# --------------------------------------------------------------------------------
# FNO2d forward
# --------------------------------------------------------------------------------

def fno2d_forward(params, x, modes1, modes2, pad_ratio=0.0, fc_dim=32,
                  block_rows=8192, mode_block=32):
    B, Sx, Sy, in_dim = x.shape
    n_layers = len(params["ws"])

    # ----- fc0 (lift), row-packed so the (N, width) output is 128-lane dense
    width0 = params["fc0_w"].shape[1]
    N0 = B * Sx * Sy
    r0 = _pack_factor(width0, N0)
    x2d = x.reshape(N0 // r0, r0 * in_dim)
    h2d = linear(x2d, _block_diag(params["fc0_w"], r0), jnp.tile(params["fc0_b"], r0),
                 apply_act=False, block_rows=block_rows)
    h = h2d.reshape(B, Sx, Sy, width0)

    # ----- add_padding (right-pad spatial dims with zeros)
    pad1 = math.floor(pad_ratio * Sx)
    pad2 = math.floor(pad_ratio * Sy)
    if pad1 or pad2:
        h = jnp.pad(h, ((0, 0), (0, pad1), (0, pad2), (0, 0)))
    H, Wd = h.shape[1], h.shape[2]
    Ni = B * H * Wd

    # ----- Fourier layers: x1 = spectral conv, x2 = 1x1 conv; h = act(x1 + x2)
    # TODO(synk): only cnn_kernel_size=1 (the baseline default) is implemented for W.
    for i in range(n_layers):
        cw, cb = params["ws"][i]
        Cin, Cout = cw.shape
        x1 = spectral_conv2d(h, params["sp_packed"][i], modes1[i], modes2[i], mode_block)
        ri = _pack_factor(Cout, Ni)
        h_p = h.reshape(Ni // ri, ri * Cin)
        x1_p = x1.reshape(Ni // ri, ri * Cout)
        out_p = conv1x1_add_act(h_p, _block_diag(cw, ri), jnp.tile(cb, ri), x1_p,
                                apply_act=(i != n_layers - 1), block_rows=block_rows)
        h = out_p.reshape(B, H, Wd, Cout)

    # ----- remove_padding
    if pad1 or pad2:
        h = h[:, :Sx, :Sy, :]

    # ----- projection head (fc1 + GELU + fc2 fused), input packed lane-dense
    C_last = h.shape[-1]
    rp = _pack_factor(C_last, N0)
    h2d = h.reshape(N0 // rp, rp * C_last)
    if fc_dim > 0:
        out_dim = params["fc2_w"].shape[1]
        out2d = projection_head(
            h2d,
            _block_diag(params["fc1_w"], rp), jnp.tile(params["fc1_b"], rp),
            _block_diag(params["fc2_w"], rp), jnp.tile(params["fc2_b"], rp),
            block_rows=block_rows)
    else:
        out_dim = params["fc2_w"].shape[1]
        out2d = linear(h2d, _block_diag(params["fc2_w"], rp),
                       jnp.tile(params["fc2_b"], rp), apply_act=False,
                       block_rows=block_rows)
    return out2d.reshape(B, Sx, Sy, out_dim)


# --------------------------------------------------------------------------------
# Plain-JAX (XLA) reference of the torch forward, for the in-script sanity check
# --------------------------------------------------------------------------------

def _spectral_ref(h_nhwc, w1, w2, m1, m2):
    hp = lax.Precision.HIGHEST
    hc = jnp.transpose(h_nhwc, (0, 3, 1, 2))                         # NCHW
    B, _, H, W = hc.shape
    Cout = w1.shape[1]
    x_ft = jnp.fft.rfftn(hc, axes=(2, 3))
    out_ft = jnp.zeros((B, Cout, H, W // 2 + 1), jnp.complex64)
    out_ft = out_ft.at[:, :, :m1, :m2].set(
        jnp.einsum('bixy,ioxy->boxy', x_ft[:, :, :m1, :m2], w1, precision=hp))
    out_ft = out_ft.at[:, :, H - m1:, :m2].set(
        jnp.einsum('bixy,ioxy->boxy', x_ft[:, :, H - m1:, :m2], w2, precision=hp))
    y = jnp.fft.irfftn(out_ft, s=(H, W), axes=(2, 3))
    return jnp.transpose(y, (0, 2, 3, 1))                            # NHWC


def fno2d_reference(params, x, modes1, modes2, pad_ratio=0.0, fc_dim=32):
    hp = lax.Precision.HIGHEST
    B, Sx, Sy, _ = x.shape
    h = jnp.dot(x, params["fc0_w"], precision=hp) + params["fc0_b"]
    pad1 = math.floor(pad_ratio * Sx)
    pad2 = math.floor(pad_ratio * Sy)
    if pad1 or pad2:
        h = jnp.pad(h, ((0, 0), (0, pad1), (0, pad2), (0, 0)))
    n_layers = len(params["ws"])
    for i in range(n_layers):
        w1, w2 = params["sp"][i]
        cw, cb = params["ws"][i]
        x1 = _spectral_ref(h, w1, w2, modes1[i], modes2[i])
        x2 = jnp.dot(h, cw, precision=hp) + cb
        h = x1 + x2
        if i != n_layers - 1:
            h = jax.nn.gelu(h, approximate=False)
    h = h[:, :Sx, :Sy, :]
    if fc_dim > 0:
        h = jax.nn.gelu(jnp.dot(h, params["fc1_w"], precision=hp) + params["fc1_b"],
                        approximate=False)
    return jnp.dot(h, params["fc2_w"], precision=hp) + params["fc2_b"]


# --------------------------------------------------------------------------------
# Deterministic parameter initialization (shapes match the PyTorch module)
# --------------------------------------------------------------------------------

def init_params(key, in_dim, layers, modes1, modes2, fc_dim, out_dim):
    keys = iter(jax.random.split(key, 64))
    params = {}
    params["fc0_w"] = 0.1 * jax.random.normal(next(keys), (in_dim, layers[0]), jnp.float32)
    params["fc0_b"] = 0.1 * jax.random.normal(next(keys), (layers[0],), jnp.float32)

    sp, ws = [], []
    for cin, cout, m1, m2 in zip(layers, layers[1:], modes1, modes2):
        scale = 1.0 / (cin * cout)
        w1 = scale * (jax.random.uniform(next(keys), (cin, cout, m1, m2))
                      + 1j * jax.random.uniform(next(keys), (cin, cout, m1, m2)))
        w2 = scale * (jax.random.uniform(next(keys), (cin, cout, m1, m2))
                      + 1j * jax.random.uniform(next(keys), (cin, cout, m1, m2)))
        sp.append((w1.astype(jnp.complex64), w2.astype(jnp.complex64)))
        cw = jax.random.normal(next(keys), (cin, cout), jnp.float32) / math.sqrt(cin)
        cb = 0.01 * jax.random.normal(next(keys), (cout,), jnp.float32)
        ws.append((cw, cb))
    params["sp"] = sp
    params["ws"] = ws

    if fc_dim > 0:
        params["fc1_w"] = (jax.random.normal(next(keys), (layers[-1], fc_dim), jnp.float32)
                           / math.sqrt(layers[-1]))
        params["fc1_b"] = jnp.zeros((fc_dim,), jnp.float32)
        params["fc2_w"] = (jax.random.normal(next(keys), (fc_dim, out_dim), jnp.float32)
                           / math.sqrt(fc_dim))
    else:
        params["fc2_w"] = (jax.random.normal(next(keys), (layers[-1], out_dim), jnp.float32)
                           / math.sqrt(layers[-1]))
    params["fc2_b"] = jnp.zeros((out_dim,), jnp.float32)
    return params


if __name__ == "__main__":
    key = jax.random.PRNGKey(0)
    kp, kx, kh = jax.random.split(key, 3)

    # small config consistent with the module's __init__
    B, S, in_dim = 2, 16, 3
    width = 32
    layers = [width] * 4            # -> 3 Fourier layers
    modes1 = [4, 4, 4]
    modes2 = [4, 4, 4]
    fc_dim = 32
    out_dim = 1

    params = init_params(kp, in_dim, layers, modes1, modes2, fc_dim, out_dim)
    params = prepare_params(params, mode_block=32)
    x = jax.random.normal(kx, (B, S, S, in_dim), jnp.float32)

    fwd = jax.jit(functools.partial(fno2d_forward, modes1=modes1, modes2=modes2,
                                    pad_ratio=0.0, fc_dim=fc_dim))
    out = jax.block_until_ready(fwd(params, x))
    assert out.shape == (B, S, S, out_dim)
    assert bool(jnp.all(jnp.isfinite(out)))

    # sanity check 1: the spectral conv (Pallas mode mix + DFT matmuls) vs rfftn/irfftn
    h_test = jax.random.normal(kh, (B, S, S, width), jnp.float32)
    x1_pallas = jax.block_until_ready(
        spectral_conv2d(h_test, params["sp_packed"][0], modes1[0], modes2[0], 32))
    w1_0, w2_0 = params["sp"][0]
    x1_ref = _spectral_ref(h_test, w1_0, w2_0, modes1[0], modes2[0])
    rel_sp = float(jnp.max(jnp.abs(x1_pallas - x1_ref))
                   / (jnp.max(jnp.abs(x1_ref)) + 1e-9))
    assert rel_sp < 5e-2, f"spectral conv mismatch: rel={rel_sp}"

    # sanity check 2: full forward vs a plain-JAX reference of the torch module
    ref = fno2d_reference(params, x, modes1, modes2, pad_ratio=0.0, fc_dim=fc_dim)
    rel = float(jnp.max(jnp.abs(out - ref)) / (jnp.max(jnp.abs(ref)) + 1e-9))
    assert rel < 5e-2, f"forward mismatch: rel={rel}"

    print("KERNEL_OK")
</pallas_src>

<mosaic_0001>
module attributes {stable_mosaic.version = 11 : i64} {
  func.func @_linear_kernel(%arg0: i32, %arg1: memref<128x12xf32, #tpu.memory_space<vmem>>, %arg2: memref<12x128xf32, #tpu.memory_space<vmem>>, %arg3: memref<1x128xf32, #tpu.memory_space<vmem>>, %arg4: memref<128x128xf32, #tpu.memory_space<vmem>>) attributes {dimension_semantics = [#tpu.dimension_semantics<parallel>], iteration_bounds = array<i64: 1>, scalar_prefetch = 0 : i64, scratch_operands = 0 : i64, tpu.core_type = #tpu.core_type<tc>, window_params = [{transform_indices = @transform_0, window_bounds = array<i64: 128, 12>}, {pipeline_mode = #tpu.pipeline_mode<synchronous>, transform_indices = @transform_1, window_bounds = array<i64: 12, 128>}, {pipeline_mode = #tpu.pipeline_mode<synchronous>, transform_indices = @transform_2, window_bounds = array<i64: 1, 128>}, {transform_indices = @transform_3, window_bounds = array<i64: 128, 128>}]} {
    %c0 = arith.constant 0 : index
    %c0_0 = arith.constant 0 : index
    %0 = vector.load %arg1[%c0, %c0_0] : memref<128x12xf32, #tpu.memory_space<vmem>>, vector<128x12xf32>
    %c0_1 = arith.constant 0 : index
    %c0_2 = arith.constant 0 : index
    %1 = vector.load %arg2[%c0_1, %c0_2] : memref<12x128xf32, #tpu.memory_space<vmem>>, vector<12x128xf32>
    %cst = arith.constant dense<0.000000e+00> : vector<128x128xf32>
    %2 = tpu.matmul %0, %1, %cst {dimension_numbers = #tpu.dot_dimension_numbers<[1], [0], [0], [1], [0, 0, 1, 1], [], []>} : vector<128x12xf32>, vector<12x128xf32>, vector<128x128xf32> -> vector<128x128xf32>
    %c0_3 = arith.constant 0 : index
    %c0_4 = arith.constant 0 : index
    %3 = vector.load %arg3[%c0_3, %c0_4] : memref<1x128xf32, #tpu.memory_space<vmem>>, vector<1x128xf32>
    %4 = vector.broadcast %3 : vector<1x128xf32> to vector<128x128xf32>
    %5 = arith.addf %2, %4 : vector<128x128xf32>
    %c0_5 = arith.constant 0 : index
    %c0_6 = arith.constant 0 : index
    %6 = vector.load %arg4[%c0_5, %c0_6] : memref<128x128xf32, #tpu.memory_space<vmem>>, vector<128x128xf32>
    tpu.vector_store %arg4[%c0_5, %c0_6], %5 {strides = array<i32>} : memref<128x128xf32, #tpu.memory_space<vmem>>, vector<128x128xf32>,
    return
  }
  func.func @transform_0(%arg0: i32) -> (i32, i32) {
    %c0_i32 = arith.constant 0 : i32
    %c0_i32_0 = arith.constant 0 : i32
    return %arg0, %c0_i32 : i32, i32
  }
  func.func @transform_1(%arg0: i32) -> (i32, i32) {
    %c0_i32 = arith.constant 0 : i32
    %c0_i32_0 = arith.constant 0 : i32
    %c0_i32_1 = arith.constant 0 : i32
    return %c0_i32, %c0_i32_0 : i32, i32
  }
  func.func @transform_2(%arg0: i32) -> (i32, i32) {
    %c0_i32 = arith.constant 0 : i32
    %c0_i32_0 = arith.constant 0 : i32
    %c0_i32_1 = arith.constant 0 : i32
    return %c0_i32, %c0_i32_0 : i32, i32
  }
  func.func @transform_3(%arg0: i32) -> (i32, i32) {
    %c0_i32 = arith.constant 0 : i32
    %c0_i32_0 = arith.constant 0 : i32
    return %arg0, %c0_i32 : i32, i32
  }
}

module attributes {stable_mosaic.version = 11 : i64} {
  func.func @_cmul_kernel(%arg0: i32, %arg1: memref<32x2x64xf32, #tpu.memory_space<vmem>>, %arg2: memref<32x64x64xf32, #tpu.memory_space<vmem>>, %arg3: memref<32x2x64xf32, #tpu.memory_space<vmem>>) attributes {dimension_semantics = [#tpu.dimension_semantics<parallel>], iteration_bounds = array<i64: 1>, scalar_prefetch = 0 : i64, scratch_operands = 0 : i64, tpu.core_type = #tpu.core_type<tc>, window_params = [{transform_indices = @transform_0, window_bounds = array<i64: 32, 2, 64>}, {transform_indices = @transform_1, window_bounds = array<i64: 32, 64, 64>}, {transform_indices = @transform_2, window_bounds = array<i64: 32, 2, 64>}]} {
    %c0 = arith.constant 0 : index
    %c0_0 = arith.constant 0 : index
    %c0_1 = arith.constant 0 : index
    %0 = vector.load %arg1[%c0, %c0_0, %c0_1] : memref<32x2x64xf32, #tpu.memory_space<vmem>>, vector<32x2x64xf32>
    %c0_2 = arith.constant 0 : index
    %c0_3 = arith.constant 0 : index
    %c0_4 = arith.constant 0 : index
    %1 = vector.load %arg2[%c0_2, %c0_3, %c0_4] : memref<32x64x64xf32, #tpu.memory_space<vmem>>, vector<32x64x64xf32>
    %cst = arith.constant dense<0.000000e+00> : vector<32x2x64xf32>
    %2 = tpu.matmul %0, %1, %cst {dimension_numbers = #tpu.dot_dimension_numbers<[2], [1], [1], [2], [0, 0, 0, 1, 1, 2], [0], [0]>} : vector<32x2x64xf32>, vector<32x64x64xf32>, vector<32x2x64xf32> -> vector<32x2x64xf32>
    %c0_5 = arith.constant 0 : index
    %c0_6 = arith.constant 0 : index
    %c0_7 = arith.constant 0 : index
    %3 = vector.load %arg3[%c0_5, %c0_6, %c0_7] : memref<32x2x64xf32, #tpu.memory_space<vmem>>, vector<32x2x64xf32>
    tpu.vector_store %arg3[%c0_5, %c0_6, %c0_7], %2 {strides = array<i32>} : memref<32x2x64xf32, #tpu.memory_space<vmem>>, vector<32x2x64xf32>,
    return
  }
  func.func @transform_0(%arg0: i32) -> (i32, i32, i32) {
    %c0_i32 = arith.constant 0 : i32
    %c0_i32_0 = arith.constant 0 : i32
    %c0_i32_1 = arith.constant 0 : i32
    return %arg0, %c0_i32, %c0_i32_0 : i32, i32, i32
  }
  func.func @transform_1(%arg0: i32) -> (i32, i32, i32) {
    %c0_i32 = arith.constant 0 : i32
    %c0_i32_0 = arith.constant 0 : i32
    %c0_i32_1 = arith.constant 0 : i32
    return %arg0, %c0_i32, %c0_i32_0 : i32, i32, i32
  }
  func.func @transform_2(%arg0: i32) -> (i32, i32, i32) {
    %c0_i32 = arith.constant 0 : i32
    %c0_i32_0 = arith.constant 0 : i32
    %c0_i32_1 = arith.constant 0 : i32
    return %arg0, %c0_i32, %c0_i32_0 : i32, i32, i32
  }
}

module attributes {stable_mosaic.version = 11 : i64} {
  func.func @_conv1x1_add_act_kernel(%arg0: i32, %arg1: memref<128x128xf32, #tpu.memory_space<vmem>>, %arg2: memref<128x128xf32, #tpu.memory_space<vmem>>, %arg3: memref<1x128xf32, #tpu.memory_space<vmem>>, %arg4: memref<128x128xf32, #tpu.memory_space<vmem>>, %arg5: memref<128x128xf32, #tpu.memory_space<vmem>>) attributes {dimension_semantics = [#tpu.dimension_semantics<parallel>], iteration_bounds = array<i64: 1>, scalar_prefetch = 0 : i64, scratch_operands = 0 : i64, tpu.core_type = #tpu.core_type<tc>, window_params = [{transform_indices = @transform_0, window_bounds = array<i64: 128, 128>}, {pipeline_mode = #tpu.pipeline_mode<synchronous>, transform_indices = @transform_1, window_bounds = array<i64: 128, 128>}, {pipeline_mode = #tpu.pipeline_mode<synchronous>, transform_indices = @transform_2, window_bounds = array<i64: 1, 128>}, {transform_indices = @transform_3, window_bounds = array<i64: 128, 128>}, {transform_indices = @transform_4, window_bounds = array<i64: 128, 128>}]} {
    %c0 = arith.constant 0 : index
    %c0_0 = arith.constant 0 : index
    %0 = vector.load %arg1[%c0, %c0_0] : memref<128x128xf32, #tpu.memory_space<vmem>>, vector<128x128xf32>
    %c0_1 = arith.constant 0 : index
    %c0_2 = arith.constant 0 : index
    %1 = vector.load %arg2[%c0_1, %c0_2] : memref<128x128xf32, #tpu.memory_space<vmem>>, vector<128x128xf32>
    %cst = arith.constant dense<0.000000e+00> : vector<128x128xf32>
    %2 = tpu.matmul %0, %1, %cst {dimension_numbers = #tpu.dot_dimension_numbers<[1], [0], [0], [1], [0, 0, 1, 1], [], []>} : vector<128x128xf32>, vector<128x128xf32>, vector<128x128xf32> -> vector<128x128xf32>
    %c0_3 = arith.constant 0 : index
    %c0_4 = arith.constant 0 : index
    %3 = vector.load %arg3[%c0_3, %c0_4] : memref<1x128xf32, #tpu.memory_space<vmem>>, vector<1x128xf32>
    %4 = vector.broadcast %3 : vector<1x128xf32> to vector<128x128xf32>
    %5 = arith.addf %2, %4 : vector<128x128xf32>
    %c0_5 = arith.constant 0 : index
    %c0_6 = arith.constant 0 : index
    %6 = vector.load %arg4[%c0_5, %c0_6] : memref<128x128xf32, #tpu.memory_space<vmem>>, vector<128x128xf32>
    %7 = arith.addf %5, %6 : vector<128x128xf32>
    %cst_7 = arith.constant 5.000000e-01 : f32
    %8 = vector.broadcast %cst_7 : f32 to vector<128x128xf32>
    %9 = arith.mulf %8, %7 : vector<128x128xf32>
    %cst_8 = arith.constant 0.707106769 : f32
    %10 = vector.broadcast %cst_8 : f32 to vector<128x128xf32>
    %11 = arith.mulf %7, %10 : vector<128x128xf32>
    %12 = math.absf %11 : vector<128x128xf32>
    %cst_9 = arith.constant 0.327591091 : f32
    %13 = vector.broadcast %cst_9 : f32 to vector<128x128xf32>
    %14 = arith.mulf %13, %12 : vector<128x128xf32>
    %cst_10 = arith.constant 1.000000e+00 : f32
    %15 = vector.broadcast %cst_10 : f32 to vector<128x128xf32>
    %16 = arith.addf %15, %14 : vector<128x128xf32>
    %cst_11 = arith.constant 1.000000e+00 : f32
    %17 = vector.broadcast %cst_11 : f32 to vector<128x128xf32>
    %18 = arith.divf %17, %16 : vector<128x128xf32>
    %cst_12 = arith.constant 1.06140542 : f32
    %19 = vector.broadcast %cst_12 : f32 to vector<128x128xf32>
    %20 = arith.mulf %19, %18 : vector<128x128xf32>
    %cst_13 = arith.constant -1.45315206 : f32
    %21 = vector.broadcast %cst_13 : f32 to vector<128x128xf32>
    %22 = arith.addf %20, %21 : vector<128x128xf32>
    %23 = arith.mulf %22, %18 : vector<128x128xf32>
    %cst_14 = arith.constant 1.42141378 : f32
    %24 = vector.broadcast %cst_14 : f32 to vector<128x128xf32>
    %25 = arith.addf %23, %24 : vector<128x128xf32>
    %26 = arith.mulf %25, %18 : vector<128x128xf32>
    %cst_15 = arith.constant -0.284496725 : f32
    %27 = vector.broadcast %cst_15 : f32 to vector<128x128xf32>
    %28 = arith.addf %26, %27 : vector<128x128xf32>
    %29 = arith.mulf %28, %18 : vector<128x128xf32>
    %cst_16 = arith.constant 0.254829586 : f32
    %30 = vector.broadcast %cst_16 : f32 to vector<128x128xf32>
    %31 = arith.addf %29, %30 : vector<128x128xf32>
    %32 = arith.mulf %31, %18 : vector<128x128xf32>
    %cst_17 = arith.constant 0.000000e+00 : f32
    %33 = vector.broadcast %cst_17 : f32 to vector<128x128xf32>
    %34 = arith.subf %33, %12 : vector<128x128xf32>
    %35 = arith.mulf %34, %12 : vector<128x128xf32>
    %36 = math.exp %35 : vector<128x128xf32>
    %37 = arith.mulf %32, %36 : vector<128x128xf32>
    %cst_18 = arith.constant 1.000000e+00 : f32
    %38 = vector.broadcast %cst_18 : f32 to vector<128x128xf32>
    %39 = arith.subf %38, %37 : vector<128x128xf32>
    %cst_19 = arith.constant 0.000000e+00 : f32
    %40 = vector.broadcast %cst_19 : f32 to vector<128x128xf32>
    %41 = arith.cmpf oge, %11, %40 : vector<128x128xf32>
    %cst_20 = arith.constant 0.000000e+00 : f32
    %42 = vector.broadcast %cst_20 : f32 to vector<128x128xf32>
    %43 = arith.subf %42, %39 : vector<128x128xf32>
    %44 = arith.select %41, %39, %43 : vector<128x128xi1>, vector<128x128xf32>
    %cst_21 = arith.constant 1.000000e+00 : f32
    %45 = vector.broadcast %cst_21 : f32 to vector<128x128xf32>
    %46 = arith.addf %45, %44 : vector<128x128xf32>
    %47 = arith.mulf %9, %46 : vector<128x128xf32>
    %c0_22 = arith.constant 0 : index
    %c0_23 = arith.constant 0 : index
    %48 = vector.load %arg5[%c0_22, %c0_23] : memref<128x128xf32, #tpu.memory_space<vmem>>, vector<128x128xf32>
    tpu.vector_store %arg5[%c0_22, %c0_23], %47 {strides = array<i32>} : memref<128x128xf32, #tpu.memory_space<vmem>>, vector<128x128xf32>,
    return
  }
  func.func @transform_0(%arg0: i32) -> (i32, i32) {
    %c0_i32 = arith.constant 0 : i32
    %c0_i32_0 = arith.constant 0 : i32
    return %arg0, %c0_i32 : i32, i32
  }
  func.func @transform_1(%arg0: i32) -> (i32, i32) {
    %c0_i32 = arith.constant 0 : i32
    %c0_i32_0 = arith.constant 0 : i32
    %c0_i32_1 = arith.constant 0 : i32
    return %c0_i32, %c0_i32_0 : i32, i32
  }
  func.func @transform_2(%arg0: i32) -> (i32, i32) {
    %c0_i32 = arith.constant 0 : i32
    %c0_i32_0 = arith.constant 0 : i32
    %c0_i32_1 = arith.constant 0 : i32
    return %c0_i32, %c0_i32_0 : i32, i32
  }
  func.func @transform_3(%arg0: i32) -> (i32, i32) {
    %c0_i32 = arith.constant 0 : i32
    %c0_i32_0 = arith.constant 0 : i32
    return %arg0, %c0_i32 : i32, i32
  }
  func.func @transform_4(%arg0: i32) -> (i32, i32) {
    %c0_i32 = arith.constant 0 : i32
    %c0_i32_0 = arith.constant 0 : i32
    return %arg0, %c0_i32 : i32, i32
  }
}

module attributes {stable_mosaic.version = 11 : i64} {
  func.func @_conv1x1_add_act_kernel(%arg0: i32, %arg1: memref<128x128xf32, #tpu.memory_space<vmem>>, %arg2: memref<128x128xf32, #tpu.memory_space<vmem>>, %arg3: memref<1x128xf32, #tpu.memory_space<vmem>>, %arg4: memref<128x128xf32, #tpu.memory_space<vmem>>, %arg5: memref<128x128xf32, #tpu.memory_space<vmem>>) attributes {dimension_semantics = [#tpu.dimension_semantics<parallel>], iteration_bounds = array<i64: 1>, scalar_prefetch = 0 : i64, scratch_operands = 0 : i64, tpu.core_type = #tpu.core_type<tc>, window_params = [{transform_indices = @transform_0, window_bounds = array<i64: 128, 128>}, {pipeline_mode = #tpu.pipeline_mode<synchronous>, transform_indices = @transform_1, window_bounds = array<i64: 128, 128>}, {pipeline_mode = #tpu.pipeline_mode<synchronous>, transform_indices = @transform_2, window_bounds = array<i64: 1, 128>}, {transform_indices = @transform_3, window_bounds = array<i64: 128, 128>}, {transform_indices = @transform_4, window_bounds = array<i64: 128, 128>}]} {
    %c0 = arith.constant 0 : index
    %c0_0 = arith.constant 0 : index
    %0 = vector.load %arg1[%c0, %c0_0] : memref<128x128xf32, #tpu.memory_space<vmem>>, vector<128x128xf32>
    %c0_1 = arith.constant 0 : index
    %c0_2 = arith.constant 0 : index
    %1 = vector.load %arg2[%c0_1, %c0_2] : memref<128x128xf32, #tpu.memory_space<vmem>>, vector<128x128xf32>
    %cst = arith.constant dense<0.000000e+00> : vector<128x128xf32>
    %2 = tpu.matmul %0, %1, %cst {dimension_numbers = #tpu.dot_dimension_numbers<[1], [0], [0], [1], [0, 0, 1, 1], [], []>} : vector<128x128xf32>, vector<128x128xf32>, vector<128x128xf32> -> vector<128x128xf32>
    %c0_3 = arith.constant 0 : index
    %c0_4 = arith.constant 0 : index
    %3 = vector.load %arg3[%c0_3, %c0_4] : memref<1x128xf32, #tpu.memory_space<vmem>>, vector<1x128xf32>
    %4 = vector.broadcast %3 : vector<1x128xf32> to vector<128x128xf32>
    %5 = arith.addf %2, %4 : vector<128x128xf32>
    %c0_5 = arith.constant 0 : index
    %c0_6 = arith.constant 0 : index
    %6 = vector.load %arg4[%c0_5, %c0_6] : memref<128x128xf32, #tpu.memory_space<vmem>>, vector<128x128xf32>
    %7 = arith.addf %5, %6 : vector<128x128xf32>
    %c0_7 = arith.constant 0 : index
    %c0_8 = arith.constant 0 : index
    %8 = vector.load %arg5[%c0_7, %c0_8] : memref<128x128xf32, #tpu.memory_space<vmem>>, vector<128x128xf32>
    tpu.vector_store %arg5[%c0_7, %c0_8], %7 {strides = array<i32>} : memref<128x128xf32, #tpu.memory_space<vmem>>, vector<128x128xf32>,
    return
  }
  func.func @transform_0(%arg0: i32) -> (i32, i32) {
    %c0_i32 = arith.constant 0 : i32
    %c0_i32_0 = arith.constant 0 : i32
    return %arg0, %c0_i32 : i32, i32
  }
  func.func @transform_1(%arg0: i32) -> (i32, i32) {
    %c0_i32 = arith.constant 0 : i32
    %c0_i32_0 = arith.constant 0 : i32
    %c0_i32_1 = arith.constant 0 : i32
    return %c0_i32, %c0_i32_0 : i32, i32
  }
  func.func @transform_2(%arg0: i32) -> (i32, i32) {
    %c0_i32 = arith.constant 0 : i32
    %c0_i32_0 = arith.constant 0 : i32
    %c0_i32_1 = arith.constant 0 : i32
    return %c0_i32, %c0_i32_0 : i32, i32
  }
  func.func @transform_3(%arg0: i32) -> (i32, i32) {
    %c0_i32 = arith.constant 0 : i32
    %c0_i32_0 = arith.constant 0 : i32
    return %arg0, %c0_i32 : i32, i32
  }
  func.func @transform_4(%arg0: i32) -> (i32, i32) {
    %c0_i32 = arith.constant 0 : i32
    %c0_i32_0 = arith.constant 0 : i32
    return %arg0, %c0_i32 : i32, i32
  }
}

module attributes {stable_mosaic.version = 11 : i64} {
  func.func @_proj_kernel(%arg0: i32, %arg1: memref<128x128xf32, #tpu.memory_space<vmem>>, %arg2: memref<128x128xf32, #tpu.memory_space<vmem>>, %arg3: memref<1x128xf32, #tpu.memory_space<vmem>>, %arg4: memref<128x4xf32, #tpu.memory_space<vmem>>, %arg5: memref<1x4xf32, #tpu.memory_space<vmem>>, %arg6: memref<128x4xf32, #tpu.memory_space<vmem>>) attributes {dimension_semantics = [#tpu.dimension_semantics<parallel>], iteration_bounds = array<i64: 1>, scalar_prefetch = 0 : i64, scratch_operands = 0 : i64, tpu.core_type = #tpu.core_type<tc>, window_params = [{transform_indices = @transform_0, window_bounds = array<i64: 128, 128>}, {pipeline_mode = #tpu.pipeline_mode<synchronous>, transform_indices = @transform_1, window_bounds = array<i64: 128, 128>}, {pipeline_mode = #tpu.pipeline_mode<synchronous>, transform_indices = @transform_2, window_bounds = array<i64: 1, 128>}, {pipeline_mode = #tpu.pipeline_mode<synchronous>, transform_indices = @transform_3, window_bounds = array<i64: 128, 4>}, {pipeline_mode = #tpu.pipeline_mode<synchronous>, transform_indices = @transform_4, window_bounds = array<i64: 1, 4>}, {transform_indices = @transform_5, window_bounds = array<i64: 128, 4>}]} {
    %c0 = arith.constant 0 : index
    %c0_0 = arith.constant 0 : index
    %0 = vector.load %arg1[%c0, %c0_0] : memref<128x128xf32, #tpu.memory_space<vmem>>, vector<128x128xf32>
    %c0_1 = arith.constant 0 : index
    %c0_2 = arith.constant 0 : index
    %1 = vector.load %arg2[%c0_1, %c0_2] : memref<128x128xf32, #tpu.memory_space<vmem>>, vector<128x128xf32>
    %cst = arith.constant dense<0.000000e+00> : vector<128x128xf32>
    %2 = tpu.matmul %0, %1, %cst {dimension_numbers = #tpu.dot_dimension_numbers<[1], [0], [0], [1], [0, 0, 1, 1], [], []>} : vector<128x128xf32>, vector<128x128xf32>, vector<128x128xf32> -> vector<128x128xf32>
    %c0_3 = arith.constant 0 : index
    %c0_4 = arith.constant 0 : index
    %3 = vector.load %arg3[%c0_3, %c0_4] : memref<1x128xf32, #tpu.memory_space<vmem>>, vector<1x128xf32>
    %4 = vector.broadcast %3 : vector<1x128xf32> to vector<128x128xf32>
    %5 = arith.addf %2, %4 : vector<128x128xf32>
    %cst_5 = arith.constant 5.000000e-01 : f32
    %6 = vector.broadcast %cst_5 : f32 to vector<128x128xf32>
    %7 = arith.mulf %6, %5 : vector<128x128xf32>
    %cst_6 = arith.constant 0.707106769 : f32
    %8 = vector.broadcast %cst_6 : f32 to vector<128x128xf32>
    %9 = arith.mulf %5, %8 : vector<128x128xf32>
    %10 = math.absf %9 : vector<128x128xf32>
    %cst_7 = arith.constant 0.327591091 : f32
    %11 = vector.broadcast %cst_7 : f32 to vector<128x128xf32>
    %12 = arith.mulf %11, %10 : vector<128x128xf32>
    %cst_8 = arith.constant 1.000000e+00 : f32
    %13 = vector.broadcast %cst_8 : f32 to vector<128x128xf32>
    %14 = arith.addf %13, %12 : vector<128x128xf32>
    %cst_9 = arith.constant 1.000000e+00 : f32
    %15 = vector.broadcast %cst_9 : f32 to vector<128x128xf32>
    %16 = arith.divf %15, %14 : vector<128x128xf32>
    %cst_10 = arith.constant 1.06140542 : f32
    %17 = vector.broadcast %cst_10 : f32 to vector<128x128xf32>
    %18 = arith.mulf %17, %16 : vector<128x128xf32>
    %cst_11 = arith.constant -1.45315206 : f32
    %19 = vector.broadcast %cst_11 : f32 to vector<128x128xf32>
    %20 = arith.addf %18, %19 : vector<128x128xf32>
    %21 = arith.mulf %20, %16 : vector<128x128xf32>
    %cst_12 = arith.constant 1.42141378 : f32
    %22 = vector.broadcast %cst_12 : f32 to vector<128x128xf32>
    %23 = arith.addf %21, %22 : vector<128x128xf32>
    %24 = arith.mulf %23, %16 : vector<128x128xf32>
    %cst_13 = arith.constant -0.284496725 : f32
    %25 = vector.broadcast %cst_13 : f32 to vector<128x128xf32>
    %26 = arith.addf %24, %25 : vector<128x128xf32>
    %27 = arith.mulf %26, %16 : vector<128x128xf32>
    %cst_14 = arith.constant 0.254829586 : f32
    %28 = vector.broadcast %cst_14 : f32 to vector<128x128xf32>
    %29 = arith.addf %27, %28 : vector<128x128xf32>
    %30 = arith.mulf %29, %16 : vector<128x128xf32>
    %cst_15 = arith.constant 0.000000e+00 : f32
    %31 = vector.broadcast %cst_15 : f32 to vector<128x128xf32>
    %32 = arith.subf %31, %10 : vector<128x128xf32>
    %33 = arith.mulf %32, %10 : vector<128x128xf32>
    %34 = math.exp %33 : vector<128x128xf32>
    %35 = arith.mulf %30, %34 : vector<128x128xf32>
    %cst_16 = arith.constant 1.000000e+00 : f32
    %36 = vector.broadcast %cst_16 : f32 to vector<128x128xf32>
    %37 = arith.subf %36, %35 : vector<128x128xf32>
    %cst_17 = arith.constant 0.000000e+00 : f32
    %38 = vector.broadcast %cst_17 : f32 to vector<128x128xf32>
    %39 = arith.cmpf oge, %9, %38 : vector<128x128xf32>
    %cst_18 = arith.constant 0.000000e+00 : f32
    %40 = vector.broadcast %cst_18 : f32 to vector<128x128xf32>
    %41 = arith.subf %40, %37 : vector<128x128xf32>
    %42 = arith.select %39, %37, %41 : vector<128x128xi1>, vector<128x128xf32>
    %cst_19 = arith.constant 1.000000e+00 : f32
    %43 = vector.broadcast %cst_19 : f32 to vector<128x128xf32>
    %44 = arith.addf %43, %42 : vector<128x128xf32>
    %45 = arith.mulf %7, %44 : vector<128x128xf32>
    %c0_20 = arith.constant 0 : index
    %c0_21 = arith.constant 0 : index
    %46 = vector.load %arg4[%c0_20, %c0_21] : memref<128x4xf32, #tpu.memory_space<vmem>>, vector<128x4xf32>
    %cst_22 = arith.constant dense<0.000000e+00> : vector<128x4xf32>
    %47 = tpu.matmul %45, %46, %cst_22 {dimension_numbers = #tpu.dot_dimension_numbers<[1], [0], [0], [1], [0, 0, 1, 1], [], []>} : vector<128x128xf32>, vector<128x4xf32>, vector<128x4xf32> -> vector<128x4xf32>
    %c0_23 = arith.constant 0 : index
    %c0_24 = arith.constant 0 : index
    %48 = vector.load %arg5[%c0_23, %c0_24] : memref<1x4xf32, #tpu.memory_space<vmem>>, vector<1x4xf32>
    %49 = vector.broadcast %48 : vector<1x4xf32> to vector<128x4xf32>
    %50 = arith.addf %47, %49 : vector<128x4xf32>
    %c0_25 = arith.constant 0 : index
    %c0_26 = arith.constant 0 : index
    %51 = vector.load %arg6[%c0_25, %c0_26] : memref<128x4xf32, #tpu.memory_space<vmem>>, vector<128x4xf32>
    tpu.vector_store %arg6[%c0_25, %c0_26], %50 {strides = array<i32>} : memref<128x4xf32, #tpu.memory_space<vmem>>, vector<128x4xf32>,
    return
  }
  func.func @transform_0(%arg0: i32) -> (i32, i32) {
    %c0_i32 = arith.constant 0 : i32
    %c0_i32_0 = arith.constant 0 : i32
    return %arg0, %c0_i32 : i32, i32
  }
  func.func @transform_1(%arg0: i32) -> (i32, i32) {
    %c0_i32 = arith.constant 0 : i32
    %c0_i32_0 = arith.constant 0 : i32
    %c0_i32_1 = arith.constant 0 : i32
    return %c0_i32, %c0_i32_0 : i32, i32
  }
  func.func @transform_2(%arg0: i32) -> (i32, i32) {
    %c0_i32 = arith.constant 0 : i32
    %c0_i32_0 = arith.constant 0 : i32
    %c0_i32_1 = arith.constant 0 : i32
    return %c0_i32, %c0_i32_0 : i32, i32
  }
  func.func @transform_3(%arg0: i32) -> (i32, i32) {
    %c0_i32 = arith.constant 0 : i32
    %c0_i32_0 = arith.constant 0 : i32
    %c0_i32_1 = arith.constant 0 : i32
    return %c0_i32, %c0_i32_0 : i32, i32
  }
  func.func @transform_4(%arg0: i32) -> (i32, i32) {
    %c0_i32 = arith.constant 0 : i32
    %c0_i32_0 = arith.constant 0 : i32
    %c0_i32_1 = arith.constant 0 : i32
    return %c0_i32, %c0_i32_0 : i32, i32
  }
  func.func @transform_5(%arg0: i32) -> (i32, i32) {
    %c0_i32 = arith.constant 0 : i32
    %c0_i32_0 = arith.constant 0 : i32
    return %arg0, %c0_i32 : i32, i32
  }
}

</mosaic_0001>

<bundles_post_ra>
// kernel: tile.33
= control target key start
LH: loop header
LB: loop body
LE: loop exit
PB: predicated region body
PF: predicated region fallthrough
CT: control target
= control target key end

     0   :  { %s22_s0 = inlined_call_operand.vmem [shape: f32[32], index: 0, kind: input, shape index: {}]   ;;  %s23_s1 = inlined_call_operand.vmem [shape: f32[4,32], index: 1, kind: output, shape index: {}]  }
   0x1   :  { %v4_v0 = vld [vmem:[%s22_s0] ss:$0 sm:$0xff] }
   0x2   :  { %5 = vst [vmem:[%s23_s1] sm:$0xf] %v4_v0 }

// kernel: tile.34
= control target key start
LH: loop header
LB: loop body
LE: loop exit
PB: predicated region body
PF: predicated region fallthrough
CT: control target
= control target key end

     0   :  { %vm7_vm0 = vcmask 261120   ;;  %s37_s8 = smov 32   ;;  %s38_s9 = smov 64   ;;  %vm13_vm1 = vcmask 1048320   ;;  %vm19_vm2 = vcmask 785920   ;;  %vm25_vm3 = vcmask 523520   ;;  %s55_s0 = inlined_call_operand.vmem [shape: f32[4,32], index: 0, kind: input, shape index: {}]   ;;  %s56_s1 = inlined_call_operand.vmem [shape: f32[1,128], index: 1, kind: output, shape index: {}]  }
   0x1   :  { %v4_v0 = vld [vmem:[%s55_s0] sm:$0xf]  ;;  %s36_s0 = smov 96  }
   0x2   :  { %5 = vst [vmem:[#allocation1] sm:$0xf] %v4_v0 }
   0x9   :  { %v10_v1 = vld [vmem:[#allocation1 + $0x3] sm:$0x1]   ;;  %v22_v2 = vld [vmem:[#allocation1 + $0x1] sm:$0x1]   ;;  %v6_v3 = vld [vmem:[#allocation1] sm:$0x1]  }
   0xa   :  { %11 = vrot.lane.b32.xlu0 %v10_v1, %s36_s0  ;;  %23 = vrot.lane.b32.xlu1 %v22_v2, %s37_s8  ;;  %v16_v4 = vld [vmem:[#allocation1 + $0x2] sm:$0x1]   ;;  %8 = vst.msk [vmem:[#allocation0] sm:$0x1] %vm7_vm0, %v6_v3  }
   0xe   :  { %17 = vrot.lane.b32.xlu0 %v16_v4, %s38_s9 }
  0x7c   :  { %v12_v5 = vpop.permute.xlu0 %11   ;;  %v24_v6 = vpop.permute.xlu1 %23  }
  0x7d   :  { %14 = vst.msk [vmem:[#allocation0] sm:$0x1] %vm13_vm1, %v12_v5  }
  0x80   :  { %v18_v7 = vpop.permute.xlu0 %17  }
  0x81   :  { %20 = vst.msk [vmem:[#allocation0] sm:$0x1] %vm19_vm2, %v18_v7  }
  0x82   :  { %26 = vst.msk [vmem:[#allocation0] sm:$0x1] %vm25_vm3, %v24_v6  }
  0x89   :  { %v30_v8 = vld [vmem:[#allocation0] sm:$0x1] }
  0x8a   :  { %32 = vst [vmem:[%s56_s1] sm:$0x1] %v30_v8 }

// kernel: fno2d_forward.8
= control target key start
LH: loop header
LB: loop body
LE: loop exit
PB: predicated region body
PF: predicated region fallthrough
CT: control target
= control target key end

     0   :  { %vm88_vm0 = vcmask 1043456   ;;  %vm39_vm1 = vcmask 97280   ;;  %vm330_vm2 = vmmov 1   ;;  %s472_s1 = inlined_call_operand.vmem [shape: f32[12,128], index: 1, kind: input, shape index: {}]   ;;  %s473_s0 = inlined_call_operand.vmem [shape: f32[128,12], index: 0, kind: input, shape index: {}]   ;;  %s474_s2 = inlined_call_operand.vmem [shape: f32[1,128], index: 2, kind: input, shape index: {}]   ;;  %s475_s3 = inlined_call_operand.vmem [shape: f32[128,128], index: 3, kind: output, shape index: {}]  }
   0x1   :  { %v30_v0 = vld [vmem:[%s472_s1] sm:$0xff]  ;;  %v31_v1 = vld [vmem:[%s472_s1 + $0x8] sm:$0xf]  ;;  %vm322_vm3 = vmpackc.low %vm88_vm0, %vm330_vm2 }
   0x2   :  { %v321_v2 = vpack.c.bf16 %v31_v1, %v30_v0  ;;  %v14_v3 = vld [vmem:[%s473_s0] sm:$0xff]  ;;  %v15_v5 = vld [vmem:[%s473_s0 + $0x8] sm:$0xff]  ;;  %v16_v7 = vld [vmem:[%s473_s0 + $0x10] sm:$0xff] }
   0x3   :  { %v22_v4 = vld [vmem:[%s473_s0 + $0x40] sm:$0xff]  ;;  %297 = vmatprep.mubr.msk.f32.mxu0 %vm39_vm1, %v14_v3  ;;  %v23_v6 = vld [vmem:[%s473_s0 + $0x48] sm:$0xff]  ;;  %v24_v8 = vld [vmem:[%s473_s0 + $0x50] sm:$0xff] }
   0x4   :  { %309 = vmatprep.mubr.msk.f32.mxu1 %vm39_vm1, %v22_v4  ;;  %323 = vmatprep.subr.msk.bf16.mxu0 %vm322_vm3, %v321_v2  ;;  %v17_v9 = vld [vmem:[%s473_s0 + $0x18] sm:$0xff]  ;;  %v18_v11 = vld [vmem:[%s473_s0 + $0x20] sm:$0xff]  ;;  %v19_v13 = vld [vmem:[%s473_s0 + $0x28] sm:$0xff] }
   0x5   :  { %327 = vmatprep.subr.msk.bf16.mxu1 %vm322_vm3, %v321_v2  ;;  %326 = vmatpush3.bf16.msk.msra.mxu0 %vm322_vm3, %v321_v2  ;;  %v25_v10 = vld [vmem:[%s473_s0 + $0x58] sm:$0xff]  ;;  %v26_v12 = vld [vmem:[%s473_s0 + $0x60] sm:$0xff]  ;;  %v27_v14 = vld [vmem:[%s473_s0 + $0x68] sm:$0xff] }
   0x6   :  { %328 = vmatpush3.bf16.msk.msra.mxu1 %vm322_vm3, %v321_v2  ;;  %v20_v15 = vld [vmem:[%s473_s0 + $0x30] sm:$0xff]  ;;  %v21_v17 = vld [vmem:[%s473_s0 + $0x38] sm:$0xff]  ;;  %v257_v19 = vld [vmem:[%s474_s2] ss:$0 sm:$0xff] }
   0x7   :  { %v28_v16 = vld [vmem:[%s473_s0 + $0x70] sm:$0xff]  ;;  %v29_v18 = vld [vmem:[%s473_s0 + $0x78] sm:$0xff] }
   0x8   :  { %298 = vmatmul.mubr.msk.f32.vlgmr.msra.gmra.mrb[0].mxu0 %vm39_vm1, %v15_v5 }
   0x9   :  { %310 = vmatmul.mubr.msk.f32.vlgmr.msra.gmra.mrb[0].mxu1 %vm39_vm1, %v23_v6  ;;  %300 = vmatprep.mubr.msk.f32.mxu0 %vm39_vm1, %v16_v7 }
   0xa   :  { %312 = vmatprep.mubr.msk.f32.mxu1 %vm39_vm1, %v24_v8 }
   0xc   :  { %301 = vmatmul.mubr.msk.f32.gmra.mrb[2].mxu0 %vm39_vm1, %v17_v9 }
   0xd   :  { %313 = vmatmul.mubr.msk.f32.gmra.mrb[2].mxu1 %vm39_vm1, %v25_v10  ;;  %303 = vmatprep.mubr.msk.f32.mxu0 %vm39_vm1, %v18_v11 }
   0xe   :  { %315 = vmatprep.mubr.msk.f32.mxu1 %vm39_vm1, %v26_v12 }
  0x10   :  { %304 = vmatmul.mubr.msk.f32.gmra.mrb[4].mxu0 %vm39_vm1, %v19_v13 }
  0x11   :  { %316 = vmatmul.mubr.msk.f32.gmra.mrb[4].mxu1 %vm39_vm1, %v27_v14  ;;  %306 = vmatprep.mubr.msk.f32.mxu0 %vm39_vm1, %v20_v15 }
  0x12   :  { %318 = vmatprep.mubr.msk.f32.mxu1 %vm39_vm1, %v28_v16 }
  0x14   :  { %307 = vmatmul.mubr.msk.f32.gmra.mrb[6].mxu0 %vm39_vm1, %v21_v17 }
  0x15   :  { %319 = vmatmul.mubr.msk.f32.gmra.mrb[6].mxu1 %vm39_vm1, %v29_v18 }
  0xdb   :  { %v299_v20 = vpop.f32.mrb[0].mxu0 }
  0xdc   :  { %v311_v21 = vpop.f32.mrb[0].mxu1  ;;  %v164_v22 = vadd.f32 %v299_v20, %v257_v19  ;;  %v158_v24 = vpop.f32.mrb[1].mxu0 }
  0xdd   :  { %v204_v23 = vadd.f32 %v311_v21, %v257_v19  ;;  %v198_v25 = vpop.f32.mrb[1].mxu1  ;;  %v159_v26 = vadd.f32 %v257_v19, %v158_v24 }
  0xde   :  { %v199_v27 = vadd.f32 %v257_v19, %v198_v25  ;;  %238 = vst [vmem:[%s475_s3 + $0x8] sm:$0xff] %v164_v22 }
  0xdf   :  { %246 = vst [vmem:[%s475_s3 + $0x48] sm:$0xff] %v204_v23  ;;  %237 = vst [vmem:[%s475_s3] sm:$0xff] %v159_v26  ;;  %v302_v28 = vpop.f32.mrb[2].mxu0 }
  0xe0   :  { %245 = vst [vmem:[%s475_s3 + $0x40] sm:$0xff] %v199_v27  ;;  %v314_v29 = vpop.f32.mrb[2].mxu1  ;;  %v174_v30 = vadd.f32 %v302_v28, %v257_v19  ;;  %v168_v32 = vpop.f32.mrb[3].mxu0 }
  0xe1   :  { %v214_v31 = vadd.f32 %v314_v29, %v257_v19  ;;  %v208_v33 = vpop.f32.mrb[3].mxu1  ;;  %v169_v34 = vadd.f32 %v257_v19, %v168_v32 }
  0xe2   :  { %v209_v35 = vadd.f32 %v257_v19, %v208_v33  ;;  %240 = vst [vmem:[%s475_s3 + $0x18] sm:$0xff] %v174_v30 }
  0xe3   :  { %248 = vst [vmem:[%s475_s3 + $0x58] sm:$0xff] %v214_v31  ;;  %239 = vst [vmem:[%s475_s3 + $0x10] sm:$0xff] %v169_v34  ;;  %v305_v36 = vpop.f32.mrb[4].mxu0 }
  0xe4   :  { %247 = vst [vmem:[%s475_s3 + $0x50] sm:$0xff] %v209_v35  ;;  %v317_v37 = vpop.f32.mrb[4].mxu1  ;;  %v184_v38 = vadd.f32 %v305_v36, %v257_v19  ;;  %v178_v40 = vpop.f32.mrb[5].mxu0 }
  0xe5   :  { %v224_v39 = vadd.f32 %v317_v37, %v257_v19  ;;  %v218_v41 = vpop.f32.mrb[5].mxu1  ;;  %v179_v42 = vadd.f32 %v257_v19, %v178_v40 }
  0xe6   :  { %v219_v43 = vadd.f32 %v257_v19, %v218_v41  ;;  %242 = vst [vmem:[%s475_s3 + $0x28] sm:$0xff] %v184_v38 }
  0xe7   :  { %250 = vst [vmem:[%s475_s3 + $0x68] sm:$0xff] %v224_v39  ;;  %241 = vst [vmem:[%s475_s3 + $0x20] sm:$0xff] %v179_v42  ;;  %v308_v44 = vpop.f32.mrb[6].mxu0 }
  0xe8   :  { %249 = vst [vmem:[%s475_s3 + $0x60] sm:$0xff] %v219_v43  ;;  %v320_v45 = vpop.f32.mrb[6].mxu1  ;;  %v194_v46 = vadd.f32 %v308_v44, %v257_v19  ;;  %v188_v48 = vpop.f32.mrb[7].mxu0 }
  0xe9   :  { %v234_v47 = vadd.f32 %v320_v45, %v257_v19  ;;  %v228_v49 = vpop.f32.mrb[7].mxu1  ;;  %v189_v50 = vadd.f32 %v257_v19, %v188_v48 }
  0xea   :  { %v229_v51 = vadd.f32 %v257_v19, %v228_v49  ;;  %244 = vst [vmem:[%s475_s3 + $0x38] sm:$0xff] %v194_v46 }
  0xeb   :  { %252 = vst [vmem:[%s475_s3 + $0x78] sm:$0xff] %v234_v47  ;;  %243 = vst [vmem:[%s475_s3 + $0x30] sm:$0xff] %v189_v50 }
  0xec   :  { %251 = vst [vmem:[%s475_s3 + $0x70] sm:$0xff] %v229_v51 }

// kernel: fno2d_forward.9
= control target key start
LH: loop header
LB: loop body
LE: loop exit
PB: predicated region body
PF: predicated region fallthrough
CT: control target
= control target key end

     0   :  { %v3988_v0 = vmov 0.0|0.0   ;;  %vm3989_vm0 = vmmov 0   ;;  %v3990_v8 = vmov 0.0   ;;  %vm299_vm1 = vcmask 523264   ;;  %s5222_s1 = inlined_call_operand.vmem [shape: f32[32,64,64], index: 1, kind: input, shape index: {}]   ;;  %s5223_s0 = inlined_call_operand.vmem [shape: f32[32,2,64], index: 0, kind: input, shape index: {}]   ;;  %s5224_s2 = inlined_call_operand.vmem [shape: f32[32,2,64], index: 2, kind: output, shape index: {}]  }
   0x1   :  { %3601 = vmatprep.subr.bf16.mxu0 %v3988_v0  ;;  %3613 = vmatprep.subr.bf16.mxu1 %v3988_v0  ;;  %v43_v1 = vld [vmem:[%s5222_s1] sm:$0xff]  ;;  %v44_v2 = vld [vmem:[%s5222_s1 + $0x8] sm:$0xff]  ;;  %v45_v6 = vld [vmem:[%s5222_s1 + $0x10] sm:$0xff]  ;;  %vm2636_vm2 = vcmask 517120  }
   0x2   :  { %v51_v3 = vld [vmem:[%s5222_s1 + $0x40] sm:$0xff]  ;;  %v3602_v4 = vpack.c.bf16 %v44_v2, %v43_v1  ;;  %v52_v5 = vld [vmem:[%s5222_s1 + $0x48] sm:$0xff]  ;;  %v46_v7 = vld [vmem:[%s5222_s1 + $0x18] sm:$0xff]  ;;  %3009 = vmatprep.mubr.msk.f32.mxu0 %vm3989_vm0, %v3990_v8  ;;  %3028 = vmatprep.mubr.msk.f32.mxu1 %vm3989_vm0, %v3990_v8 }
   0x3   :  { %v3614_v9 = vpack.c.bf16 %v52_v5, %v51_v3  ;;  %v53_v10 = vld [vmem:[%s5222_s1 + $0x50] sm:$0xff]  ;;  %v54_v11 = vld [vmem:[%s5222_s1 + $0x58] sm:$0xff]  ;;  %v3605_v12 = vpack.c.bf16 %v46_v7, %v45_v6  ;;  %v47_v14 = vld [vmem:[%s5222_s1 + $0x20] sm:$0xff] }
   0x4   :  { %3603 = vmatpush3.bf16.msra.mxu0 %v3602_v4  ;;  %v3617_v13 = vpack.c.bf16 %v54_v11, %v53_v10  ;;  %v48_v15 = vld [vmem:[%s5222_s1 + $0x28] sm:$0xff]  ;;  %v55_v16 = vld [vmem:[%s5222_s1 + $0x60] sm:$0xff]  ;;  %v49_v20 = vld [vmem:[%s5222_s1 + $0x30] sm:$0xff] }
   0x5   :  { %3615 = vmatpush3.bf16.msra.mxu1 %v3614_v9  ;;  %3604 = vmatprep.subr.bf16.mxu0 %v3988_v0  ;;  %v56_v17 = vld [vmem:[%s5222_s1 + $0x68] sm:$0xff]  ;;  %v3608_v18 = vpack.c.bf16 %v48_v15, %v47_v14  ;;  %v50_v21 = vld [vmem:[%s5222_s1 + $0x38] sm:$0xff]  ;;  %v57_v22 = vld [vmem:[%s5222_s1 + $0x70] sm:$0xff] }
   0x6   :  { %3616 = vmatprep.subr.bf16.mxu1 %v3988_v0  ;;  %v3620_v19 = vpack.c.bf16 %v56_v17, %v55_v16  ;;  %v58_v23 = vld [vmem:[%s5222_s1 + $0x78] sm:$0xff]  ;;  %v3611_v24 = vpack.c.bf16 %v50_v21, %v49_v20  ;;  %v59_v26 = vld [vmem:[%s5222_s1 + $0x80] sm:$0xff]  ;;  %v60_v27 = vld [vmem:[%s5222_s1 + $0x88] sm:$0xff] }
   0x7   :  { %v3623_v25 = vpack.c.bf16 %v58_v23, %v57_v22  ;;  %v67_v28 = vld [vmem:[%s5222_s1 + $0xc0] sm:$0xff]  ;;  %v68_v29 = vld [vmem:[%s5222_s1 + $0xc8] sm:$0xff]  ;;  %v3626_v31 = vpack.c.bf16 %v60_v27, %v59_v26  ;;  %v61_v34 = vld [vmem:[%s5222_s1 + $0x90] sm:$0xff] }
   0x8   :  { %3606 = vmatpush3.bf16.msra.mxu0 %v3605_v12  ;;  %v11_v30 = vld [vmem:[%s5223_s0] sm:$0x3]  ;;  %v12_v32 = vld [vmem:[%s5223_s0 + $0x2] sm:$0x3]  ;;  %v3638_v33 = vpack.c.bf16 %v68_v29, %v67_v28  ;;  %v62_v35 = vld [vmem:[%s5222_s1 + $0x98] sm:$0xff] }
   0x9   :  { %3618 = vmatpush3.bf16.msra.mxu1 %v3617_v13  ;;  %3607 = vmatprep.subr.bf16.mxu0 %v3988_v0  ;;  %v69_v36 = vld [vmem:[%s5222_s1 + $0xd0] sm:$0xff]  ;;  %v70_v37 = vld [vmem:[%s5222_s1 + $0xd8] sm:$0xff]  ;;  %v3629_v38 = vpack.c.bf16 %v62_v35, %v61_v34  ;;  %v63_v40 = vld [vmem:[%s5222_s1 + $0xa0] sm:$0xff] }
   0xa   :  { %3619 = vmatprep.subr.bf16.mxu1 %v3988_v0  ;;  %v3641_v39 = vpack.c.bf16 %v70_v37, %v69_v36  ;;  %v64_v41 = vld [vmem:[%s5222_s1 + $0xa8] sm:$0xff]  ;;  %v71_v42 = vld [vmem:[%s5222_s1 + $0xe0] sm:$0xff]  ;;  %v65_v46 = vld [vmem:[%s5222_s1 + $0xb0] sm:$0xff] }
   0xb   :  { %v72_v43 = vld [vmem:[%s5222_s1 + $0xe8] sm:$0xff]  ;;  %v3632_v44 = vpack.c.bf16 %v64_v41, %v63_v40  ;;  %v66_v47 = vld [vmem:[%s5222_s1 + $0xb8] sm:$0xff]  ;;  %v73_v48 = vld [vmem:[%s5222_s1 + $0xf0] sm:$0xff] }
   0xc   :  { %3609 = vmatpush3.bf16.msra.mxu0 %v3608_v18  ;;  %v3644_v45 = vpack.c.bf16 %v72_v43, %v71_v42  ;;  %v74_v49 = vld [vmem:[%s5222_s1 + $0xf8] sm:$0xff]  ;;  %v3635_v50 = vpack.c.bf16 %v66_v47, %v65_v46  ;;  %v75_v52 = vld [vmem:[%s5222_s1 + $0x100] sm:$0xff]  ;;  %v76_v53 = vld [vmem:[%s5222_s1 + $0x108] sm:$0xff] }
   0xd   :  { %3621 = vmatpush3.bf16.msra.mxu1 %v3620_v19  ;;  %3610 = vmatprep.subr.bf16.mxu0 %v3988_v0  ;;  %v3647_v51 = vpack.c.bf16 %v74_v49, %v73_v48  ;;  %v83_v54 = vld [vmem:[%s5222_s1 + $0x140] sm:$0xff]  ;;  %v84_v55 = vld [vmem:[%s5222_s1 + $0x148] sm:$0xff]  ;;  %v3650_v57 = vpack.c.bf16 %v76_v53, %v75_v52  ;;  %v77_v60 = vld [vmem:[%s5222_s1 + $0x110] sm:$0xff] }
   0xe   :  { %3622 = vmatprep.subr.bf16.mxu1 %v3988_v0  ;;  %v13_v56 = vld [vmem:[%s5223_s0 + $0x4] sm:$0x3]  ;;  %v14_v58 = vld [vmem:[%s5223_s0 + $0x6] sm:$0x3]  ;;  %v3662_v59 = vpack.c.bf16 %v84_v55, %v83_v54  ;;  %v78_v61 = vld [vmem:[%s5222_s1 + $0x118] sm:$0xff] }
   0xf   :  { %v85_v62 = vld [vmem:[%s5222_s1 + $0x150] sm:$0xff]  ;;  %v86_v63 = vld [vmem:[%s5222_s1 + $0x158] sm:$0xff]  ;;  %v3653_v1 = vpack.c.bf16 %v78_v61, %v77_v60  ;;  %v79_v3 = vld [vmem:[%s5222_s1 + $0x120] sm:$0xff] }
  0x10   :  { %3612 = vmatpush3.bf16.msra.mxu0 %v3611_v24  ;;  %v3665_v2 = vpack.c.bf16 %v86_v63, %v85_v62  ;;  %v80_v4 = vld [vmem:[%s5222_s1 + $0x128] sm:$0xff]  ;;  %v87_v5 = vld [vmem:[%s5222_s1 + $0x160] sm:$0xff]  ;;  %v81_v10 = vld [vmem:[%s5222_s1 + $0x130] sm:$0xff] }
  0x11   :  { %3624 = vmatpush3.bf16.msra.mxu1 %v3623_v25  ;;  %3625 = vmatprep.subr.bf16.mxu0 %v3988_v0  ;;  %v88_v6 = vld [vmem:[%s5222_s1 + $0x168] sm:$0xff]  ;;  %v3656_v7 = vpack.c.bf16 %v80_v4, %v79_v3  ;;  %v82_v11 = vld [vmem:[%s5222_s1 + $0x138] sm:$0xff]  ;;  %v89_v12 = vld [vmem:[%s5222_s1 + $0x170] sm:$0xff] }
  0x12   :  { %3637 = vmatprep.subr.bf16.mxu1 %v3988_v0  ;;  %v3668_v9 = vpack.c.bf16 %v88_v6, %v87_v5  ;;  %v90_v13 = vld [vmem:[%s5222_s1 + $0x178] sm:$0xff]  ;;  %v3659_v14 = vpack.c.bf16 %v82_v11, %v81_v10  ;;  %v91_v16 = vld [vmem:[%s5222_s1 + $0x180] sm:$0xff]  ;;  %v92_v17 = vld [vmem:[%s5222_s1 + $0x188] sm:$0xff] }
  0x13   :  { %3010 = vmatmul.mubr.msk.f32.vlgmr.msra.gmra.mrb[0].mxu0 %vm299_vm1, %v11_v30  ;;  %v3671_v15 = vpack.c.bf16 %v90_v13, %v89_v12  ;;  %v99_v18 = vld [vmem:[%s5222_s1 + $0x1c0] sm:$0xff]  ;;  %v100_v19 = vld [vmem:[%s5222_s1 + $0x1c8] sm:$0xff]  ;;  %v3674_v21 = vpack.c.bf16 %v92_v17, %v91_v16  ;;  %v93_v24 = vld [vmem:[%s5222_s1 + $0x190] sm:$0xff] }
  0x14   :  { %3029 = vmatmul.mubr.msk.f32.vlgmr.msra.gmra.mrb[0].mxu1 %vm299_vm1, %v12_v32  ;;  %3627 = vmatpush3.bf16.msra.mxu0 %v3626_v31  ;;  %v15_v20 = vld [vmem:[%s5223_s0 + $0x8] sm:$0x3]  ;;  %v16_v22 = vld [vmem:[%s5223_s0 + $0xa] sm:$0x3]  ;;  %v3686_v23 = vpack.c.bf16 %v100_v19, %v99_v18  ;;  %v94_v25 = vld [vmem:[%s5222_s1 + $0x198] sm:$0xff] }
  0x15   :  { %3639 = vmatpush3.bf16.msra.mxu1 %v3638_v33  ;;  %3628 = vmatprep.subr.bf16.mxu0 %v3988_v0  ;;  %v101_v26 = vld [vmem:[%s5222_s1 + $0x1d0] sm:$0xff]  ;;  %v102_v27 = vld [vmem:[%s5222_s1 + $0x1d8] sm:$0xff]  ;;  %v3677_v28 = vpack.c.bf16 %v94_v25, %v93_v24  ;;  %v95_v30 = vld [vmem:[%s5222_s1 + $0x1a0] sm:$0xff] }
  0x16   :  { %3640 = vmatprep.subr.bf16.mxu1 %v3988_v0  ;;  %3047 = vmatprep.mubr.msk.f32.mxu0 %vm3989_vm0, %v3990_v8  ;;  %v3689_v29 = vpack.c.bf16 %v102_v27, %v101_v26  ;;  %v96_v31 = vld [vmem:[%s5222_s1 + $0x1a8] sm:$0xff]  ;;  %v103_v32 = vld [vmem:[%s5222_s1 + $0x1e0] sm:$0xff]  ;;  %v97_v36 = vld [vmem:[%s5222_s1 + $0x1b0] sm:$0xff] }
  0x17   :  { %3066 = vmatprep.mubr.msk.f32.mxu1 %vm3989_vm0, %v3990_v8  ;;  %v104_v33 = vld [vmem:[%s5222_s1 + $0x1e8] sm:$0xff]  ;;  %v3680_v34 = vpack.c.bf16 %v96_v31, %v95_v30  ;;  %v98_v37 = vld [vmem:[%s5222_s1 + $0x1b8] sm:$0xff]  ;;  %v107_v42 = vld [vmem:[%s5222_s1 + $0x200] sm:$0xff] }
  0x18   :  { %3630 = vmatpush3.bf16.msra.mxu0 %v3629_v38  ;;  %v3692_v35 = vpack.c.bf16 %v104_v33, %v103_v32  ;;  %v105_v38 = vld [vmem:[%s5222_s1 + $0x1f0] sm:$0xff]  ;;  %v3683_v40 = vpack.c.bf16 %v98_v37, %v97_v36  ;;  %v108_v43 = vld [vmem:[%s5222_s1 + $0x208] sm:$0xff]  ;;  %v118_v53 = vld [vmem:[%s5222_s1 + $0x258] sm:$0xff] }
  0x19   :  { %3642 = vmatpush3.bf16.msra.mxu1 %v3641_v39  ;;  %3631 = vmatprep.subr.bf16.mxu0 %v3988_v0  ;;  %v106_v39 = vld [vmem:[%s5222_s1 + $0x1f8] sm:$0xff]  ;;  %v17_v46 = vld [vmem:[%s5223_s0 + $0xc] sm:$0x3]  ;;  %v3698_v47 = vpack.c.bf16 %v108_v43, %v107_v42  ;;  %v18_v48 = vld [vmem:[%s5223_s0 + $0xe] sm:$0x3] }
  0x1a   :  { %3643 = vmatprep.subr.bf16.mxu1 %v3988_v0  ;;  %v3695_v41 = vpack.c.bf16 %v106_v39, %v105_v38  ;;  %v117_v52 = vld [vmem:[%s5222_s1 + $0x250] sm:$0xff]  ;;  %v114_v63 = vld [vmem:[%s5222_s1 + $0x238] sm:$0xff]  ;;  %v123_v5 = vld [vmem:[%s5222_s1 + $0x280] sm:$0xff] }
  0x1b   :  { %v3713_v55 = vpack.c.bf16 %v118_v53, %v117_v52  ;;  %v113_v62 = vld [vmem:[%s5222_s1 + $0x230] sm:$0xff]  ;;  %v124_v6 = vld [vmem:[%s5222_s1 + $0x288] sm:$0xff]  ;;  %v134_v17 = vld [vmem:[%s5222_s1 + $0x2d8] sm:$0xff] }
  0x1c   :  { %3633 = vmatpush3.bf16.msra.mxu0 %v3632_v44  ;;  %v115_v44 = vld [vmem:[%s5222_s1 + $0x240] sm:$0xff]  ;;  %v3707_v3 = vpack.c.bf16 %v114_v63, %v113_v62  ;;  %v19_v10 = vld [vmem:[%s5223_s0 + $0x10] sm:$0x3]  ;;  %v3722_v11 = vpack.c.bf16 %v124_v6, %v123_v5  ;;  %v20_v12 = vld [vmem:[%s5223_s0 + $0x12] sm:$0x3] }
  0x1d   :  { %3645 = vmatpush3.bf16.msra.mxu1 %v3644_v45  ;;  %3634 = vmatprep.subr.bf16.mxu0 %v3988_v0  ;;  %v116_v45 = vld [vmem:[%s5222_s1 + $0x248] sm:$0xff]  ;;  %v133_v16 = vld [vmem:[%s5222_s1 + $0x2d0] sm:$0xff]  ;;  %v130_v27 = vld [vmem:[%s5222_s1 + $0x2b8] sm:$0xff] }
  0x1e   :  { %3646 = vmatprep.subr.bf16.mxu1 %v3988_v0  ;;  %v3710_v49 = vpack.c.bf16 %v116_v45, %v115_v44  ;;  %v3737_v19 = vpack.c.bf16 %v134_v17, %v133_v16  ;;  %v129_v26 = vld [vmem:[%s5222_s1 + $0x2b0] sm:$0xff]  ;;  %v139_v32 = vld [vmem:[%s5222_s1 + $0x300] sm:$0xff]  ;;  %v140_v33 = vld [vmem:[%s5222_s1 + $0x308] sm:$0xff] }
  0x1f   :  { %v3731_v30 = vpack.c.bf16 %v130_v27, %v129_v26  ;;  %v21_v36 = vld [vmem:[%s5223_s0 + $0x14] sm:$0x3]  ;;  %v3746_v37 = vpack.c.bf16 %v140_v33, %v139_v32  ;;  %v22_v38 = vld [vmem:[%s5223_s0 + $0x16] sm:$0x3]  ;;  %v150_v43 = vld [vmem:[%s5222_s1 + $0x358] sm:$0xff] }
  0x20   :  { %3636 = vmatpush3.bf16.msra.mxu0 %v3635_v50  ;;  %v109_v50 = vld [vmem:[%s5222_s1 + $0x210] sm:$0xff]  ;;  %v146_v53 = vld [vmem:[%s5222_s1 + $0x338] sm:$0xff] }
  0x21   :  { %3648 = vmatpush3.bf16.msra.mxu1 %v3647_v51  ;;  %3649 = vmatprep.subr.bf16.mxu0 %v3988_v0  ;;  %v110_v51 = vld [vmem:[%s5222_s1 + $0x218] sm:$0xff]  ;;  %v149_v42 = vld [vmem:[%s5222_s1 + $0x350] sm:$0xff] }
  0x22   :  { %3661 = vmatprep.subr.bf16.mxu1 %v3988_v0  ;;  %v3701_v54 = vpack.c.bf16 %v110_v51, %v109_v50  ;;  %v3761_v45 = vpack.c.bf16 %v150_v43, %v149_v42  ;;  %v145_v52 = vld [vmem:[%s5222_s1 + $0x330] sm:$0xff]  ;;  %v23_v62 = vld [vmem:[%s5223_s0 + $0x18] sm:$0x3]  ;;  %v25_v26 = vld [vmem:[%s5223_s0 + $0x1c] sm:$0x3] }
  0x23   :  { %3048 = vmatmul.mubr.msk.f32.vlgmr.msra.gmra.mrb[2].mxu0 %vm299_vm1, %v13_v56  ;;  %v111_v56 = vld [vmem:[%s5222_s1 + $0x220] sm:$0xff]  ;;  %v165_v5 = vld [vmem:[%s5222_s1 + $0x3d0] sm:$0xff]  ;;  %v166_v6 = vld [vmem:[%s5222_s1 + $0x3d8] sm:$0xff] }
  0x24   :  { %3067 = vmatmul.mubr.msk.f32.vlgmr.msra.gmra.mrb[2].mxu1 %vm299_vm1, %v14_v58  ;;  %3651 = vmatpush3.bf16.msra.mxu0 %v3650_v57  ;;  %v112_v57 = vld [vmem:[%s5222_s1 + $0x228] sm:$0xff]  ;;  %v119_v58 = vld [vmem:[%s5222_s1 + $0x260] sm:$0xff]  ;;  %v161_v16 = vld [vmem:[%s5222_s1 + $0x3b0] sm:$0xff] }
  0x25   :  { %3663 = vmatpush3.bf16.msra.mxu1 %v3662_v59  ;;  %3652 = vmatprep.subr.bf16.mxu0 %v3988_v0  ;;  %v120_v59 = vld [vmem:[%s5222_s1 + $0x268] sm:$0xff]  ;;  %v3704_v60 = vpack.c.bf16 %v112_v57, %v111_v56  ;;  %v3755_v56 = vpack.c.bf16 %v146_v53, %v145_v52  ;;  %v162_v17 = vld [vmem:[%s5222_s1 + $0x3b8] sm:$0xff]  ;;  %v181_v32 = vld [vmem:[%s5222_s1 + $0x450] sm:$0xff] }
  0x26   :  { %3664 = vmatprep.subr.bf16.mxu1 %v3988_v0  ;;  %3085 = vmatprep.mubr.msk.f32.mxu0 %vm3989_vm0, %v3990_v8  ;;  %v3716_v61 = vpack.c.bf16 %v120_v59, %v119_v58  ;;  %v155_v58 = vld [vmem:[%s5222_s1 + $0x380] sm:$0xff]  ;;  %v156_v59 = vld [vmem:[%s5222_s1 + $0x388] sm:$0xff]  ;;  %v182_v33 = vld [vmem:[%s5222_s1 + $0x458] sm:$0xff] }
  0x27   :  { %3104 = vmatprep.mubr.msk.f32.mxu1 %vm3989_vm0, %v3990_v8  ;;  %v3770_v63 = vpack.c.bf16 %v156_v59, %v155_v58  ;;  %v177_v42 = vld [vmem:[%s5222_s1 + $0x430] sm:$0xff]  ;;  %v178_v43 = vld [vmem:[%s5222_s1 + $0x438] sm:$0xff]  ;;  %v27_v52 = vld [vmem:[%s5223_s0 + $0x20] sm:$0x3] }
  0x28   :  { %3654 = vmatpush3.bf16.msra.mxu0 %v3653_v1  ;;  %v121_v1 = vld [vmem:[%s5222_s1 + $0x270] sm:$0xff]  ;;  %v198_v59 = vld [vmem:[%s5222_s1 + $0x4d8] sm:$0xff] }
  0x29   :  { %3666 = vmatpush3.bf16.msra.mxu1 %v3665_v2  ;;  %3655 = vmatprep.subr.bf16.mxu0 %v3988_v0  ;;  %v122_v2 = vld [vmem:[%s5222_s1 + $0x278] sm:$0xff]  ;;  %v197_v58 = vld [vmem:[%s5222_s1 + $0x4d0] sm:$0xff] }
  0x2a   :  { %3667 = vmatprep.subr.bf16.mxu1 %v3988_v0  ;;  %v3719_v4 = vpack.c.bf16 %v122_v2, %v121_v1  ;;  %v24_v1 = vld [vmem:[%s5223_s0 + $0x1a] sm:$0x3] }
  0x2c   :  { %3657 = vmatpush3.bf16.msra.mxu0 %v3656_v7  ;;  %v131_v7 = vld [vmem:[%s5222_s1 + $0x2c0] sm:$0xff] }
  0x2d   :  { %3669 = vmatpush3.bf16.msra.mxu1 %v3668_v9  ;;  %3658 = vmatprep.subr.bf16.mxu0 %v3988_v0  ;;  %v132_v9 = vld [vmem:[%s5222_s1 + $0x2c8] sm:$0xff] }
  0x2e   :  { %3670 = vmatprep.subr.bf16.mxu1 %v3988_v0  ;;  %v3734_v13 = vpack.c.bf16 %v132_v9, %v131_v7  ;;  %v3785_v9 = vpack.c.bf16 %v166_v6, %v165_v5  ;;  %v193_v5 = vld [vmem:[%s5222_s1 + $0x4b0] sm:$0xff]  ;;  %v194_v6 = vld [vmem:[%s5222_s1 + $0x4b8] sm:$0xff] }
  0x30   :  { %3660 = vmatpush3.bf16.msra.mxu0 %v3659_v14  ;;  %v125_v14 = vld [vmem:[%s5222_s1 + $0x290] sm:$0xff] }
  0x31   :  { %3672 = vmatpush3.bf16.msra.mxu1 %v3671_v15  ;;  %3673 = vmatprep.subr.bf16.mxu0 %v3988_v0  ;;  %v126_v15 = vld [vmem:[%s5222_s1 + $0x298] sm:$0xff] }
  0x32   :  { %3685 = vmatprep.subr.bf16.mxu1 %v3988_v0  ;;  %v3725_v18 = vpack.c.bf16 %v126_v15, %v125_v14 }
  0x33   :  { %3086 = vmatmul.mubr.msk.f32.vlgmr.msra.gmra.mrb[4].mxu0 %vm299_vm1, %v15_v20  ;;  %v127_v20 = vld [vmem:[%s5222_s1 + $0x2a0] sm:$0xff] }
  0x34   :  { %3105 = vmatmul.mubr.msk.f32.vlgmr.msra.gmra.mrb[4].mxu1 %vm299_vm1, %v16_v22  ;;  %3675 = vmatpush3.bf16.msra.mxu0 %v3674_v21  ;;  %v128_v21 = vld [vmem:[%s5222_s1 + $0x2a8] sm:$0xff]  ;;  %v135_v22 = vld [vmem:[%s5222_s1 + $0x2e0] sm:$0xff] }
  0x35   :  { %3687 = vmatpush3.bf16.msra.mxu1 %v3686_v23  ;;  %3676 = vmatprep.subr.bf16.mxu0 %v3988_v0  ;;  %v136_v23 = vld [vmem:[%s5222_s1 + $0x2e8] sm:$0xff]  ;;  %v3728_v24 = vpack.c.bf16 %v128_v21, %v127_v20  ;;  %v3779_v20 = vpack.c.bf16 %v162_v17, %v161_v16  ;;  %v29_v16 = vld [vmem:[%s5223_s0 + $0x24] sm:$0x3] }
  0x36   :  { %3688 = vmatprep.subr.bf16.mxu1 %v3988_v0  ;;  %3123 = vmatprep.mubr.msk.f32.mxu0 %vm3989_vm0, %v3990_v8  ;;  %v3740_v25 = vpack.c.bf16 %v136_v23, %v135_v22  ;;  %v171_v22 = vld [vmem:[%s5222_s1 + $0x400] sm:$0xff]  ;;  %v172_v23 = vld [vmem:[%s5222_s1 + $0x408] sm:$0xff] }
  0x37   :  { %3142 = vmatprep.mubr.msk.f32.mxu1 %vm3989_vm0, %v3990_v8  ;;  %v3794_v27 = vpack.c.bf16 %v172_v23, %v171_v22  ;;  %v213_v22 = vld [vmem:[%s5222_s1 + $0x550] sm:$0xff]  ;;  %v214_v23 = vld [vmem:[%s5222_s1 + $0x558] sm:$0xff] }
  0x38   :  { %3678 = vmatpush3.bf16.msra.mxu0 %v3677_v28  ;;  %v137_v28 = vld [vmem:[%s5222_s1 + $0x2f0] sm:$0xff] }
  0x39   :  { %3690 = vmatpush3.bf16.msra.mxu1 %v3689_v29  ;;  %3679 = vmatprep.subr.bf16.mxu0 %v3988_v0  ;;  %v138_v29 = vld [vmem:[%s5222_s1 + $0x2f8] sm:$0xff] }
  0x3a   :  { %3691 = vmatprep.subr.bf16.mxu1 %v3988_v0  ;;  %v3743_v31 = vpack.c.bf16 %v138_v29, %v137_v28  ;;  %v26_v28 = vld [vmem:[%s5223_s0 + $0x1e] sm:$0x3] }
  0x3c   :  { %3681 = vmatpush3.bf16.msra.mxu0 %v3680_v34  ;;  %v147_v34 = vld [vmem:[%s5222_s1 + $0x340] sm:$0xff] }
  0x3d   :  { %3693 = vmatpush3.bf16.msra.mxu1 %v3692_v35  ;;  %3682 = vmatprep.subr.bf16.mxu0 %v3988_v0  ;;  %v148_v35 = vld [vmem:[%s5222_s1 + $0x348] sm:$0xff] }
  0x3e   :  { %3694 = vmatprep.subr.bf16.mxu1 %v3988_v0  ;;  %v3758_v39 = vpack.c.bf16 %v148_v35, %v147_v34  ;;  %v3809_v35 = vpack.c.bf16 %v182_v33, %v181_v32  ;;  %v209_v32 = vld [vmem:[%s5222_s1 + $0x530] sm:$0xff]  ;;  %v210_v33 = vld [vmem:[%s5222_s1 + $0x538] sm:$0xff] }
  0x40   :  { %3684 = vmatpush3.bf16.msra.mxu0 %v3683_v40  ;;  %v141_v40 = vld [vmem:[%s5222_s1 + $0x310] sm:$0xff] }
  0x41   :  { %3696 = vmatpush3.bf16.msra.mxu1 %v3695_v41  ;;  %3697 = vmatprep.subr.bf16.mxu0 %v3988_v0  ;;  %v142_v41 = vld [vmem:[%s5222_s1 + $0x318] sm:$0xff] }
  0x42   :  { %3709 = vmatprep.subr.bf16.mxu1 %v3988_v0  ;;  %v3749_v44 = vpack.c.bf16 %v142_v41, %v141_v40 }
  0x43   :  { %3124 = vmatmul.mubr.msk.f32.vlgmr.msra.gmra.mrb[6].mxu0 %vm299_vm1, %v17_v46  ;;  %v143_v46 = vld [vmem:[%s5222_s1 + $0x320] sm:$0xff] }
  0x44   :  { %3143 = vmatmul.mubr.msk.f32.vlgmr.msra.gmra.mrb[6].mxu1 %vm299_vm1, %v18_v48  ;;  %3699 = vmatpush3.bf16.msra.mxu0 %v3698_v47  ;;  %v144_v47 = vld [vmem:[%s5222_s1 + $0x328] sm:$0xff]  ;;  %v151_v48 = vld [vmem:[%s5222_s1 + $0x360] sm:$0xff] }
  0x45   :  { %3711 = vmatpush3.bf16.msra.mxu1 %v3710_v49  ;;  %3700 = vmatprep.subr.bf16.mxu0 %v3988_v0  ;;  %v152_v49 = vld [vmem:[%s5222_s1 + $0x368] sm:$0xff]  ;;  %v3752_v50 = vpack.c.bf16 %v144_v47, %v143_v46  ;;  %v3803_v46 = vpack.c.bf16 %v178_v43, %v177_v42 }
  0x46   :  { %3712 = vmatprep.subr.bf16.mxu1 %v3988_v0  ;;  %3161 = vmatprep.mubr.msk.f32.mxu0 %vm3989_vm0, %v3990_v8  ;;  %v3764_v51 = vpack.c.bf16 %v152_v49, %v151_v48  ;;  %v187_v48 = vld [vmem:[%s5222_s1 + $0x480] sm:$0xff]  ;;  %v188_v49 = vld [vmem:[%s5222_s1 + $0x488] sm:$0xff] }
  0x47   :  { %3180 = vmatprep.mubr.msk.f32.mxu1 %vm3989_vm0, %v3990_v8  ;;  %v3818_v53 = vpack.c.bf16 %v188_v49, %v187_v48  ;;  %v31_v42 = vld [vmem:[%s5223_s0 + $0x28] sm:$0x3]  ;;  %v229_v48 = vld [vmem:[%s5222_s1 + $0x5d0] sm:$0xff]  ;;  %v230_v49 = vld [vmem:[%s5222_s1 + $0x5d8] sm:$0xff] }
  0x48   :  { %3702 = vmatpush3.bf16.msra.mxu0 %v3701_v54  ;;  %v153_v54 = vld [vmem:[%s5222_s1 + $0x370] sm:$0xff] }
  0x49   :  { %3714 = vmatpush3.bf16.msra.mxu1 %v3713_v55  ;;  %3703 = vmatprep.subr.bf16.mxu0 %v3988_v0  ;;  %v154_v55 = vld [vmem:[%s5222_s1 + $0x378] sm:$0xff] }
  0x4a   :  { %3715 = vmatprep.subr.bf16.mxu1 %v3988_v0  ;;  %v3767_v57 = vpack.c.bf16 %v154_v55, %v153_v54  ;;  %v28_v54 = vld [vmem:[%s5223_s0 + $0x22] sm:$0x3] }
  0x4c   :  { %3705 = vmatpush3.bf16.msra.mxu0 %v3704_v60  ;;  %v163_v60 = vld [vmem:[%s5222_s1 + $0x3c0] sm:$0xff] }
  0x4d   :  { %3717 = vmatpush3.bf16.msra.mxu1 %v3716_v61  ;;  %3706 = vmatprep.subr.bf16.mxu0 %v3988_v0  ;;  %v164_v61 = vld [vmem:[%s5222_s1 + $0x3c8] sm:$0xff] }
  0x4e   :  { %3718 = vmatprep.subr.bf16.mxu1 %v3988_v0  ;;  %v3782_v2 = vpack.c.bf16 %v164_v61, %v163_v60  ;;  %v3833_v61 = vpack.c.bf16 %v198_v59, %v197_v58  ;;  %v225_v58 = vld [vmem:[%s5222_s1 + $0x5b0] sm:$0xff]  ;;  %v226_v59 = vld [vmem:[%s5222_s1 + $0x5b8] sm:$0xff] }
  0x50   :  { %3708 = vmatpush3.bf16.msra.mxu0 %v3707_v3  ;;  %v157_v3 = vld [vmem:[%s5222_s1 + $0x390] sm:$0xff] }
  0x51   :  { %3720 = vmatpush3.bf16.msra.mxu1 %v3719_v4  ;;  %3721 = vmatprep.subr.bf16.mxu0 %v3988_v0  ;;  %v158_v4 = vld [vmem:[%s5222_s1 + $0x398] sm:$0xff] }
  0x52   :  { %3733 = vmatprep.subr.bf16.mxu1 %v3988_v0  ;;  %v3773_v7 = vpack.c.bf16 %v158_v4, %v157_v3 }
  0x53   :  { %3162 = vmatmul.mubr.msk.f32.vlgmr.msra.gmra.mrb[8].mxu0 %vm299_vm1, %v19_v10  ;;  %v159_v10 = vld [vmem:[%s5222_s1 + $0x3a0] sm:$0xff] }
  0x54   :  { %3181 = vmatmul.mubr.msk.f32.vlgmr.msra.gmra.mrb[8].mxu1 %vm299_vm1, %v20_v12  ;;  %3723 = vmatpush3.bf16.msra.mxu0 %v3722_v11  ;;  %v160_v11 = vld [vmem:[%s5222_s1 + $0x3a8] sm:$0xff]  ;;  %v167_v12 = vld [vmem:[%s5222_s1 + $0x3e0] sm:$0xff] }
  0x55   :  { %3735 = vmatpush3.bf16.msra.mxu1 %v3734_v13  ;;  %3724 = vmatprep.subr.bf16.mxu0 %v3988_v0  ;;  %v168_v13 = vld [vmem:[%s5222_s1 + $0x3e8] sm:$0xff]  ;;  %v3776_v14 = vpack.c.bf16 %v160_v11, %v159_v10  ;;  %v3827_v10 = vpack.c.bf16 %v194_v6, %v193_v5 }
  0x56   :  { %3736 = vmatprep.subr.bf16.mxu1 %v3988_v0  ;;  %3199 = vmatprep.mubr.msk.f32.mxu0 %vm3989_vm0, %v3990_v8  ;;  %v3788_v15 = vpack.c.bf16 %v168_v13, %v167_v12  ;;  %v203_v12 = vld [vmem:[%s5222_s1 + $0x500] sm:$0xff]  ;;  %v204_v13 = vld [vmem:[%s5222_s1 + $0x508] sm:$0xff] }
  0x57   :  { %3218 = vmatprep.mubr.msk.f32.mxu1 %vm3989_vm0, %v3990_v8  ;;  %v3842_v17 = vpack.c.bf16 %v204_v13, %v203_v12  ;;  %v33_v5 = vld [vmem:[%s5223_s0 + $0x2c] sm:$0x3]  ;;  %v245_v12 = vld [vmem:[%s5222_s1 + $0x650] sm:$0xff]  ;;  %v246_v13 = vld [vmem:[%s5222_s1 + $0x658] sm:$0xff] }
  0x58   :  { %3726 = vmatpush3.bf16.msra.mxu0 %v3725_v18  ;;  %v169_v18 = vld [vmem:[%s5222_s1 + $0x3f0] sm:$0xff] }
  0x59   :  { %3738 = vmatpush3.bf16.msra.mxu1 %v3737_v19  ;;  %3727 = vmatprep.subr.bf16.mxu0 %v3988_v0  ;;  %v170_v19 = vld [vmem:[%s5222_s1 + $0x3f8] sm:$0xff] }
  0x5a   :  { %3739 = vmatprep.subr.bf16.mxu1 %v3988_v0  ;;  %v3791_v21 = vpack.c.bf16 %v170_v19, %v169_v18  ;;  %v30_v18 = vld [vmem:[%s5223_s0 + $0x26] sm:$0x3] }
  0x5c   :  { %3729 = vmatpush3.bf16.msra.mxu0 %v3728_v24  ;;  %v179_v24 = vld [vmem:[%s5222_s1 + $0x440] sm:$0xff] }
  0x5d   :  { %3741 = vmatpush3.bf16.msra.mxu1 %v3740_v25  ;;  %3730 = vmatprep.subr.bf16.mxu0 %v3988_v0  ;;  %v180_v25 = vld [vmem:[%s5222_s1 + $0x448] sm:$0xff] }
  0x5e   :  { %3742 = vmatprep.subr.bf16.mxu1 %v3988_v0  ;;  %v3806_v29 = vpack.c.bf16 %v180_v25, %v179_v24  ;;  %v3857_v25 = vpack.c.bf16 %v214_v23, %v213_v22  ;;  %v241_v22 = vld [vmem:[%s5222_s1 + $0x630] sm:$0xff]  ;;  %v242_v23 = vld [vmem:[%s5222_s1 + $0x638] sm:$0xff] }
  0x60   :  { %3732 = vmatpush3.bf16.msra.mxu0 %v3731_v30  ;;  %v173_v30 = vld [vmem:[%s5222_s1 + $0x410] sm:$0xff] }
  0x61   :  { %3744 = vmatpush3.bf16.msra.mxu1 %v3743_v31  ;;  %3745 = vmatprep.subr.bf16.mxu0 %v3988_v0  ;;  %v174_v31 = vld [vmem:[%s5222_s1 + $0x418] sm:$0xff] }
  0x62   :  { %3757 = vmatprep.subr.bf16.mxu1 %v3988_v0  ;;  %v3797_v34 = vpack.c.bf16 %v174_v31, %v173_v30 }
  0x63   :  { %3200 = vmatmul.mubr.msk.f32.vlgmr.msra.gmra.mrb[10].mxu0 %vm299_vm1, %v21_v36  ;;  %v175_v36 = vld [vmem:[%s5222_s1 + $0x420] sm:$0xff] }
  0x64   :  { %3219 = vmatmul.mubr.msk.f32.vlgmr.msra.gmra.mrb[10].mxu1 %vm299_vm1, %v22_v38  ;;  %3747 = vmatpush3.bf16.msra.mxu0 %v3746_v37  ;;  %v176_v37 = vld [vmem:[%s5222_s1 + $0x428] sm:$0xff]  ;;  %v183_v38 = vld [vmem:[%s5222_s1 + $0x460] sm:$0xff] }
  0x65   :  { %3759 = vmatpush3.bf16.msra.mxu1 %v3758_v39  ;;  %3748 = vmatprep.subr.bf16.mxu0 %v3988_v0  ;;  %v184_v39 = vld [vmem:[%s5222_s1 + $0x468] sm:$0xff]  ;;  %v3800_v40 = vpack.c.bf16 %v176_v37, %v175_v36  ;;  %v3851_v36 = vpack.c.bf16 %v210_v33, %v209_v32  ;;  %v35_v32 = vld [vmem:[%s5223_s0 + $0x30] sm:$0x3] }
  0x66   :  { %3760 = vmatprep.subr.bf16.mxu1 %v3988_v0  ;;  %3237 = vmatprep.mubr.msk.f32.mxu0 %vm3989_vm0, %v3990_v8  ;;  %v3812_v41 = vpack.c.bf16 %v184_v39, %v183_v38  ;;  %v219_v38 = vld [vmem:[%s5222_s1 + $0x580] sm:$0xff]  ;;  %v220_v39 = vld [vmem:[%s5222_s1 + $0x588] sm:$0xff] }
  0x67   :  { %3256 = vmatprep.mubr.msk.f32.mxu1 %vm3989_vm0, %v3990_v8  ;;  %v3866_v43 = vpack.c.bf16 %v220_v39, %v219_v38  ;;  %v261_v38 = vld [vmem:[%s5222_s1 + $0x6d0] sm:$0xff]  ;;  %v262_v39 = vld [vmem:[%s5222_s1 + $0x6d8] sm:$0xff] }
  0x68   :  { %3750 = vmatpush3.bf16.msra.mxu0 %v3749_v44  ;;  %v185_v44 = vld [vmem:[%s5222_s1 + $0x470] sm:$0xff] }
  0x69   :  { %3762 = vmatpush3.bf16.msra.mxu1 %v3761_v45  ;;  %3751 = vmatprep.subr.bf16.mxu0 %v3988_v0  ;;  %v186_v45 = vld [vmem:[%s5222_s1 + $0x478] sm:$0xff] }
  0x6a   :  { %3763 = vmatprep.subr.bf16.mxu1 %v3988_v0  ;;  %v3815_v47 = vpack.c.bf16 %v186_v45, %v185_v44  ;;  %v32_v44 = vld [vmem:[%s5223_s0 + $0x2a] sm:$0x3] }
  0x6c   :  { %3753 = vmatpush3.bf16.msra.mxu0 %v3752_v50  ;;  %v195_v50 = vld [vmem:[%s5222_s1 + $0x4c0] sm:$0xff] }
  0x6d   :  { %3765 = vmatpush3.bf16.msra.mxu1 %v3764_v51  ;;  %3754 = vmatprep.subr.bf16.mxu0 %v3988_v0  ;;  %v196_v51 = vld [vmem:[%s5222_s1 + $0x4c8] sm:$0xff] }
  0x6e   :  { %3766 = vmatprep.subr.bf16.mxu1 %v3988_v0  ;;  %v3830_v55 = vpack.c.bf16 %v196_v51, %v195_v50  ;;  %v3881_v51 = vpack.c.bf16 %v230_v49, %v229_v48  ;;  %v257_v48 = vld [vmem:[%s5222_s1 + $0x6b0] sm:$0xff]  ;;  %v258_v49 = vld [vmem:[%s5222_s1 + $0x6b8] sm:$0xff] }
  0x70   :  { %3756 = vmatpush3.bf16.msra.mxu0 %v3755_v56  ;;  %v189_v56 = vld [vmem:[%s5222_s1 + $0x490] sm:$0xff] }
  0x71   :  { %3768 = vmatpush3.bf16.msra.mxu1 %v3767_v57  ;;  %3769 = vmatprep.subr.bf16.mxu0 %v3988_v0  ;;  %v190_v57 = vld [vmem:[%s5222_s1 + $0x498] sm:$0xff] }
  0x72   :  { %3781 = vmatprep.subr.bf16.mxu1 %v3988_v0  ;;  %v3821_v60 = vpack.c.bf16 %v190_v57, %v189_v56 }
  0x73   :  { %3238 = vmatmul.mubr.msk.f32.vlgmr.msra.gmra.mrb[12].mxu0 %vm299_vm1, %v23_v62  ;;  %v191_v62 = vld [vmem:[%s5222_s1 + $0x4a0] sm:$0xff] }
  0x74   :  { %3257 = vmatmul.mubr.msk.f32.vlgmr.msra.gmra.mrb[12].mxu1 %vm299_vm1, %v24_v1  ;;  %3771 = vmatpush3.bf16.msra.mxu0 %v3770_v63  ;;  %v192_v63 = vld [vmem:[%s5222_s1 + $0x4a8] sm:$0xff]  ;;  %v199_v1 = vld [vmem:[%s5222_s1 + $0x4e0] sm:$0xff] }
  0x75   :  { %3783 = vmatpush3.bf16.msra.mxu1 %v3782_v2  ;;  %3772 = vmatprep.subr.bf16.mxu0 %v3988_v0  ;;  %v200_v2 = vld [vmem:[%s5222_s1 + $0x4e8] sm:$0xff]  ;;  %v3824_v3 = vpack.c.bf16 %v192_v63, %v191_v62  ;;  %v3875_v62 = vpack.c.bf16 %v226_v59, %v225_v58  ;;  %v37_v58 = vld [vmem:[%s5223_s0 + $0x34] sm:$0x3] }
  0x76   :  { %3784 = vmatprep.subr.bf16.mxu1 %v3988_v0  ;;  %3275 = vmatprep.mubr.msk.f32.mxu0 %vm3989_vm0, %v3990_v8  ;;  %v3836_v4 = vpack.c.bf16 %v200_v2, %v199_v1  ;;  %v235_v1 = vld [vmem:[%s5222_s1 + $0x600] sm:$0xff]  ;;  %v236_v2 = vld [vmem:[%s5222_s1 + $0x608] sm:$0xff] }
  0x77   :  { %3294 = vmatprep.mubr.msk.f32.mxu1 %vm3989_vm0, %v3990_v8  ;;  %v3890_v6 = vpack.c.bf16 %v236_v2, %v235_v1  ;;  %v277_v1 = vld [vmem:[%s5222_s1 + $0x750] sm:$0xff]  ;;  %v278_v2 = vld [vmem:[%s5222_s1 + $0x758] sm:$0xff] }
  0x78   :  { %3774 = vmatpush3.bf16.msra.mxu0 %v3773_v7  ;;  %v201_v7 = vld [vmem:[%s5222_s1 + $0x4f0] sm:$0xff] }
  0x79   :  { %3786 = vmatpush3.bf16.msra.mxu1 %v3785_v9  ;;  %3775 = vmatprep.subr.bf16.mxu0 %v3988_v0  ;;  %v202_v9 = vld [vmem:[%s5222_s1 + $0x4f8] sm:$0xff] }
  0x7a   :  { %3787 = vmatprep.subr.bf16.mxu1 %v3988_v0  ;;  %v3839_v11 = vpack.c.bf16 %v202_v9, %v201_v7  ;;  %v34_v7 = vld [vmem:[%s5223_s0 + $0x2e] sm:$0x3] }
  0x7c   :  { %3777 = vmatpush3.bf16.msra.mxu0 %v3776_v14  ;;  %v211_v14 = vld [vmem:[%s5222_s1 + $0x540] sm:$0xff] }
  0x7d   :  { %3789 = vmatpush3.bf16.msra.mxu1 %v3788_v15  ;;  %3778 = vmatprep.subr.bf16.mxu0 %v3988_v0  ;;  %v212_v15 = vld [vmem:[%s5222_s1 + $0x548] sm:$0xff] }
  0x7e   :  { %3790 = vmatprep.subr.bf16.mxu1 %v3988_v0  ;;  %v3854_v19 = vpack.c.bf16 %v212_v15, %v211_v14  ;;  %v3905_v15 = vpack.c.bf16 %v246_v13, %v245_v12 }
  0x80   :  { %3780 = vmatpush3.bf16.msra.mxu0 %v3779_v20  ;;  %v205_v20 = vld [vmem:[%s5222_s1 + $0x510] sm:$0xff] }
  0x81   :  { %3792 = vmatpush3.bf16.msra.mxu1 %v3791_v21  ;;  %3793 = vmatprep.subr.bf16.mxu0 %v3988_v0  ;;  %v206_v21 = vld [vmem:[%s5222_s1 + $0x518] sm:$0xff] }
  0x82   :  { %3805 = vmatprep.subr.bf16.mxu1 %v3988_v0  ;;  %v3845_v24 = vpack.c.bf16 %v206_v21, %v205_v20 }
  0x83   :  { %3276 = vmatmul.mubr.msk.f32.vlgmr.msra.gmra.mrb[14].mxu0 %vm299_vm1, %v25_v26  ;;  %v207_v26 = vld [vmem:[%s5222_s1 + $0x520] sm:$0xff] }
  0x84   :  { %3295 = vmatmul.mubr.msk.f32.vlgmr.msra.gmra.mrb[14].mxu1 %vm299_vm1, %v26_v28  ;;  %3795 = vmatpush3.bf16.msra.mxu0 %v3794_v27  ;;  %v208_v27 = vld [vmem:[%s5222_s1 + $0x528] sm:$0xff]  ;;  %v215_v28 = vld [vmem:[%s5222_s1 + $0x560] sm:$0xff] }
  0x85   :  { %3807 = vmatpush3.bf16.msra.mxu1 %v3806_v29  ;;  %3796 = vmatprep.subr.bf16.mxu0 %v3988_v0  ;;  %v216_v29 = vld [vmem:[%s5222_s1 + $0x568] sm:$0xff]  ;;  %v3848_v30 = vpack.c.bf16 %v208_v27, %v207_v26  ;;  %v3899_v26 = vpack.c.bf16 %v242_v23, %v241_v22  ;;  %v283_v22 = vld [vmem:[%s5222_s1 + $0x780] sm:$0xff] }
  0x86   :  { %3808 = vmatprep.subr.bf16.mxu1 %v3988_v0  ;;  %3313 = vmatprep.mubr.msk.f32.mxu0 %vm3989_vm0, %v3990_v8  ;;  %v3860_v31 = vpack.c.bf16 %v216_v29, %v215_v28  ;;  %v251_v28 = vld [vmem:[%s5222_s1 + $0x680] sm:$0xff]  ;;  %v252_v29 = vld [vmem:[%s5222_s1 + $0x688] sm:$0xff] }
  0x87   :  { %3332 = vmatprep.mubr.msk.f32.mxu1 %vm3989_vm0, %v3990_v8  ;;  %v3914_v33 = vpack.c.bf16 %v252_v29, %v251_v28  ;;  %v284_v23 = vld [vmem:[%s5222_s1 + $0x788] sm:$0xff]  ;;  %v40_v28 = vld [vmem:[%s5223_s0 + $0x3a] sm:$0x3] }
  0x88   :  { %3798 = vmatpush3.bf16.msra.mxu0 %v3797_v34  ;;  %v217_v34 = vld [vmem:[%s5222_s1 + $0x570] sm:$0xff] }
  0x89   :  { %3810 = vmatpush3.bf16.msra.mxu1 %v3809_v35  ;;  %3799 = vmatprep.subr.bf16.mxu0 %v3988_v0  ;;  %v218_v35 = vld [vmem:[%s5222_s1 + $0x578] sm:$0xff] }
  0x8a   :  { %3811 = vmatprep.subr.bf16.mxu1 %v3988_v0  ;;  %v3863_v37 = vpack.c.bf16 %v218_v35, %v217_v34  ;;  %v36_v34 = vld [vmem:[%s5223_s0 + $0x32] sm:$0x3] }
  0x8c   :  { %3801 = vmatpush3.bf16.msra.mxu0 %v3800_v40  ;;  %v227_v40 = vld [vmem:[%s5222_s1 + $0x5c0] sm:$0xff] }
  0x8d   :  { %3813 = vmatpush3.bf16.msra.mxu1 %v3812_v41  ;;  %3802 = vmatprep.subr.bf16.mxu0 %v3988_v0  ;;  %v228_v41 = vld [vmem:[%s5222_s1 + $0x5c8] sm:$0xff] }
  0x8e   :  { %3814 = vmatprep.subr.bf16.mxu1 %v3988_v0  ;;  %v3878_v45 = vpack.c.bf16 %v228_v41, %v227_v40  ;;  %v3929_v41 = vpack.c.bf16 %v262_v39, %v261_v38  ;;  %v295_v39 = vld [vmem:[%s5222_s1 + $0x7e0] sm:$0xff] }
  0x90   :  { %3804 = vmatpush3.bf16.msra.mxu0 %v3803_v46  ;;  %v221_v46 = vld [vmem:[%s5222_s1 + $0x590] sm:$0xff] }
  0x91   :  { %3816 = vmatpush3.bf16.msra.mxu1 %v3815_v47  ;;  %3817 = vmatprep.subr.bf16.mxu0 %v3988_v0  ;;  %v222_v47 = vld [vmem:[%s5222_s1 + $0x598] sm:$0xff] }
  0x92   :  { %3829 = vmatprep.subr.bf16.mxu1 %v3988_v0  ;;  %v3869_v50 = vpack.c.bf16 %v222_v47, %v221_v46 }
  0x93   :  { %3314 = vmatmul.mubr.msk.f32.vlgmr.msra.gmra.mrb[16].mxu0 %vm299_vm1, %v27_v52  ;;  %v223_v52 = vld [vmem:[%s5222_s1 + $0x5a0] sm:$0xff] }
  0x94   :  { %3333 = vmatmul.mubr.msk.f32.vlgmr.msra.gmra.mrb[16].mxu1 %vm299_vm1, %v28_v54  ;;  %3819 = vmatpush3.bf16.msra.mxu0 %v3818_v53  ;;  %v224_v53 = vld [vmem:[%s5222_s1 + $0x5a8] sm:$0xff]  ;;  %v231_v54 = vld [vmem:[%s5222_s1 + $0x5e0] sm:$0xff] }
  0x95   :  { %3831 = vmatpush3.bf16.msra.mxu1 %v3830_v55  ;;  %3820 = vmatprep.subr.bf16.mxu0 %v3988_v0  ;;  %v232_v55 = vld [vmem:[%s5222_s1 + $0x5e8] sm:$0xff]  ;;  %v3872_v56 = vpack.c.bf16 %v224_v53, %v223_v52  ;;  %v3923_v52 = vpack.c.bf16 %v258_v49, %v257_v48  ;;  %v298_v48 = vld [vmem:[%s5222_s1 + $0x7f8] sm:$0xff] }
  0x96   :  { %3832 = vmatprep.subr.bf16.mxu1 %v3988_v0  ;;  %3351 = vmatprep.mubr.msk.f32.mxu0 %vm3989_vm0, %v3990_v8  ;;  %v3884_v57 = vpack.c.bf16 %v232_v55, %v231_v54  ;;  %v267_v54 = vld [vmem:[%s5222_s1 + $0x700] sm:$0xff]  ;;  %v268_v55 = vld [vmem:[%s5222_s1 + $0x708] sm:$0xff] }
  0x97   :  { %3370 = vmatprep.mubr.msk.f32.mxu1 %vm3989_vm0, %v3990_v8  ;;  %v3938_v59 = vpack.c.bf16 %v268_v55, %v267_v54 }
  0x98   :  { %3822 = vmatpush3.bf16.msra.mxu0 %v3821_v60  ;;  %v233_v60 = vld [vmem:[%s5222_s1 + $0x5f0] sm:$0xff] }
  0x99   :  { %3834 = vmatpush3.bf16.msra.mxu1 %v3833_v61  ;;  %3823 = vmatprep.subr.bf16.mxu0 %v3988_v0  ;;  %v234_v61 = vld [vmem:[%s5222_s1 + $0x5f8] sm:$0xff] }
  0x9a   :  { %3835 = vmatprep.subr.bf16.mxu1 %v3988_v0  ;;  %v3887_v63 = vpack.c.bf16 %v234_v61, %v233_v60  ;;  %v38_v60 = vld [vmem:[%s5223_s0 + $0x36] sm:$0x3] }
  0x9c   :  { %3825 = vmatpush3.bf16.msra.mxu0 %v3824_v3  ;;  %v243_v3 = vld [vmem:[%s5222_s1 + $0x640] sm:$0xff] }
  0x9d   :  { %3837 = vmatpush3.bf16.msra.mxu1 %v3836_v4  ;;  %3826 = vmatprep.subr.bf16.mxu0 %v3988_v0  ;;  %v244_v4 = vld [vmem:[%s5222_s1 + $0x648] sm:$0xff] }
  0x9e   :  { %3838 = vmatprep.subr.bf16.mxu1 %v3988_v0  ;;  %v3902_v9 = vpack.c.bf16 %v244_v4, %v243_v3  ;;  %v3953_v4 = vpack.c.bf16 %v278_v2, %v277_v1 }
  0xa0   :  { %3828 = vmatpush3.bf16.msra.mxu0 %v3827_v10  ;;  %v237_v10 = vld [vmem:[%s5222_s1 + $0x610] sm:$0xff] }
  0xa1   :  { %3840 = vmatpush3.bf16.msra.mxu1 %v3839_v11  ;;  %3841 = vmatprep.subr.bf16.mxu0 %v3988_v0  ;;  %v238_v11 = vld [vmem:[%s5222_s1 + $0x618] sm:$0xff] }
  0xa2   :  { %3853 = vmatprep.subr.bf16.mxu1 %v3988_v0  ;;  %v3893_v14 = vpack.c.bf16 %v238_v11, %v237_v10  ;;  %v280_v10 = vld [vmem:[%s5222_s1 + $0x768] sm:$0xff] }
  0xa3   :  { %3352 = vmatmul.mubr.msk.f32.vlgmr.msra.gmra.mrb[18].mxu0 %vm299_vm1, %v29_v16  ;;  %v239_v16 = vld [vmem:[%s5222_s1 + $0x620] sm:$0xff] }
  0xa4   :  { %3371 = vmatmul.mubr.msk.f32.vlgmr.msra.gmra.mrb[18].mxu1 %vm299_vm1, %v30_v18  ;;  %3843 = vmatpush3.bf16.msra.mxu0 %v3842_v17  ;;  %v240_v17 = vld [vmem:[%s5222_s1 + $0x628] sm:$0xff]  ;;  %v247_v18 = vld [vmem:[%s5222_s1 + $0x660] sm:$0xff] }
  0xa5   :  { %3855 = vmatpush3.bf16.msra.mxu1 %v3854_v19  ;;  %3844 = vmatprep.subr.bf16.mxu0 %v3988_v0  ;;  %v248_v19 = vld [vmem:[%s5222_s1 + $0x668] sm:$0xff]  ;;  %v3896_v20 = vpack.c.bf16 %v240_v17, %v239_v16  ;;  %v273_v16 = vld [vmem:[%s5222_s1 + $0x730] sm:$0xff]  ;;  %v274_v17 = vld [vmem:[%s5222_s1 + $0x738] sm:$0xff] }
  0xa6   :  { %3856 = vmatprep.subr.bf16.mxu1 %v3988_v0  ;;  %3389 = vmatprep.mubr.msk.f32.mxu0 %vm3989_vm0, %v3990_v8  ;;  %v3908_v21 = vpack.c.bf16 %v248_v19, %v247_v18  ;;  %v281_v18 = vld [vmem:[%s5222_s1 + $0x770] sm:$0xff]  ;;  %v282_v19 = vld [vmem:[%s5222_s1 + $0x778] sm:$0xff] }
  0xa7   :  { %3408 = vmatprep.mubr.msk.f32.mxu1 %vm3989_vm0, %v3990_v8 }
  0xa8   :  { %3846 = vmatpush3.bf16.msra.mxu0 %v3845_v24  ;;  %v249_v24 = vld [vmem:[%s5222_s1 + $0x670] sm:$0xff] }
  0xa9   :  { %3858 = vmatpush3.bf16.msra.mxu1 %v3857_v25  ;;  %3847 = vmatprep.subr.bf16.mxu0 %v3988_v0  ;;  %v250_v25 = vld [vmem:[%s5222_s1 + $0x678] sm:$0xff] }
  0xaa   :  { %3859 = vmatprep.subr.bf16.mxu1 %v3988_v0  ;;  %v3911_v27 = vpack.c.bf16 %v250_v25, %v249_v24  ;;  %v291_v24 = vld [vmem:[%s5222_s1 + $0x7c0] sm:$0xff]  ;;  %v292_v25 = vld [vmem:[%s5222_s1 + $0x7c8] sm:$0xff] }
  0xab   :  { %v3974_v29 = vpack.c.bf16 %v292_v25, %v291_v24 }
  0xac   :  { %3849 = vmatpush3.bf16.msra.mxu0 %v3848_v30  ;;  %v259_v30 = vld [vmem:[%s5222_s1 + $0x6c0] sm:$0xff] }
  0xad   :  { %3861 = vmatpush3.bf16.msra.mxu1 %v3860_v31  ;;  %3850 = vmatprep.subr.bf16.mxu0 %v3988_v0  ;;  %v260_v31 = vld [vmem:[%s5222_s1 + $0x6c8] sm:$0xff] }
  0xae   :  { %3862 = vmatprep.subr.bf16.mxu1 %v3988_v0  ;;  %v3926_v35 = vpack.c.bf16 %v260_v31, %v259_v30  ;;  %v285_v30 = vld [vmem:[%s5222_s1 + $0x790] sm:$0xff]  ;;  %v286_v31 = vld [vmem:[%s5222_s1 + $0x798] sm:$0xff] }
  0xb0   :  { %3852 = vmatpush3.bf16.msra.mxu0 %v3851_v36  ;;  %v253_v36 = vld [vmem:[%s5222_s1 + $0x690] sm:$0xff] }
  0xb1   :  { %3864 = vmatpush3.bf16.msra.mxu1 %v3863_v37  ;;  %3865 = vmatprep.subr.bf16.mxu0 %v3988_v0  ;;  %v254_v37 = vld [vmem:[%s5222_s1 + $0x698] sm:$0xff] }
  0xb2   :  { %3877 = vmatprep.subr.bf16.mxu1 %v3988_v0  ;;  %v3917_v40 = vpack.c.bf16 %v254_v37, %v253_v36  ;;  %v287_v36 = vld [vmem:[%s5222_s1 + $0x7a0] sm:$0xff]  ;;  %v288_v37 = vld [vmem:[%s5222_s1 + $0x7a8] sm:$0xff] }
  0xb3   :  { %3390 = vmatmul.mubr.msk.f32.vlgmr.msra.gmra.mrb[20].mxu0 %vm299_vm1, %v31_v42  ;;  %v255_v42 = vld [vmem:[%s5222_s1 + $0x6a0] sm:$0xff] }
  0xb4   :  { %3409 = vmatmul.mubr.msk.f32.vlgmr.msra.gmra.mrb[20].mxu1 %vm299_vm1, %v32_v44  ;;  %3867 = vmatpush3.bf16.msra.mxu0 %v3866_v43  ;;  %v256_v43 = vld [vmem:[%s5222_s1 + $0x6a8] sm:$0xff]  ;;  %v263_v44 = vld [vmem:[%s5222_s1 + $0x6e0] sm:$0xff] }
  0xb5   :  { %3879 = vmatpush3.bf16.msra.mxu1 %v3878_v45  ;;  %3868 = vmatprep.subr.bf16.mxu0 %v3988_v0  ;;  %v264_v45 = vld [vmem:[%s5222_s1 + $0x6e8] sm:$0xff]  ;;  %v3920_v46 = vpack.c.bf16 %v256_v43, %v255_v42 }
  0xb6   :  { %3880 = vmatprep.subr.bf16.mxu1 %v3988_v0  ;;  %3427 = vmatprep.mubr.msk.f32.mxu0 %vm3989_vm0, %v3990_v8  ;;  %v3932_v47 = vpack.c.bf16 %v264_v45, %v263_v44  ;;  %v3968_v44 = vpack.c.bf16 %v288_v37, %v287_v36 }
  0xb7   :  { %3446 = vmatprep.mubr.msk.f32.mxu1 %vm3989_vm0, %v3990_v8 }
  0xb8   :  { %3870 = vmatpush3.bf16.msra.mxu0 %v3869_v50  ;;  %v265_v50 = vld [vmem:[%s5222_s1 + $0x6f0] sm:$0xff] }
  0xb9   :  { %3882 = vmatpush3.bf16.msra.mxu1 %v3881_v51  ;;  %3871 = vmatprep.subr.bf16.mxu0 %v3988_v0  ;;  %v266_v51 = vld [vmem:[%s5222_s1 + $0x6f8] sm:$0xff] }
  0xba   :  { %3883 = vmatprep.subr.bf16.mxu1 %v3988_v0  ;;  %v3935_v53 = vpack.c.bf16 %v266_v51, %v265_v50  ;;  %v41_v51 = vld [vmem:[%s5223_s0 + $0x3c] sm:$0x3] }
  0xbc   :  { %3873 = vmatpush3.bf16.msra.mxu0 %v3872_v56  ;;  %v275_v56 = vld [vmem:[%s5222_s1 + $0x740] sm:$0xff] }
  0xbd   :  { %3885 = vmatpush3.bf16.msra.mxu1 %v3884_v57  ;;  %3874 = vmatprep.subr.bf16.mxu0 %v3988_v0  ;;  %v276_v57 = vld [vmem:[%s5222_s1 + $0x748] sm:$0xff] }
  0xbe   :  { %3886 = vmatprep.subr.bf16.mxu1 %v3988_v0  ;;  %v3950_v61 = vpack.c.bf16 %v276_v57, %v275_v56 }
  0xc0   :  { %3876 = vmatpush3.bf16.msra.mxu0 %v3875_v62  ;;  %v269_v62 = vld [vmem:[%s5222_s1 + $0x710] sm:$0xff] }
  0xc1   :  { %3888 = vmatpush3.bf16.msra.mxu1 %v3887_v63  ;;  %3889 = vmatprep.subr.bf16.mxu0 %v3988_v0  ;;  %v270_v63 = vld [vmem:[%s5222_s1 + $0x718] sm:$0xff] }
  0xc2   :  { %3901 = vmatprep.subr.bf16.mxu1 %v3988_v0  ;;  %v3941_v3 = vpack.c.bf16 %v270_v63, %v269_v62 }
  0xc3   :  { %3428 = vmatmul.mubr.msk.f32.vlgmr.msra.gmra.mrb[22].mxu0 %vm299_vm1, %v33_v5  ;;  %v271_v5 = vld [vmem:[%s5222_s1 + $0x720] sm:$0xff] }
  0xc4   :  { %3447 = vmatmul.mubr.msk.f32.vlgmr.msra.gmra.mrb[22].mxu1 %vm299_vm1, %v34_v7  ;;  %3891 = vmatpush3.bf16.msra.mxu0 %v3890_v6  ;;  %v272_v6 = vld [vmem:[%s5222_s1 + $0x728] sm:$0xff] }
  0xc5   :  { %3903 = vmatpush3.bf16.msra.mxu1 %v3902_v9  ;;  %3892 = vmatprep.subr.bf16.mxu0 %v3988_v0  ;;  %v279_v9 = vld [vmem:[%s5222_s1 + $0x760] sm:$0xff] }
  0xc6   :  { %3904 = vmatprep.subr.bf16.mxu1 %v3988_v0  ;;  %3465 = vmatprep.mubr.msk.f32.mxu0 %vm3989_vm0, %v3990_v8 }
  0xc7   :  { %3484 = vmatprep.mubr.msk.f32.mxu1 %vm3989_vm0, %v3990_v8 }
  0xc8   :  { %3894 = vmatpush3.bf16.msra.mxu0 %v3893_v14  ;;  %v3944_v14 = vpack.c.bf16 %v272_v6, %v271_v5 }
  0xc9   :  { %3906 = vmatpush3.bf16.msra.mxu1 %v3905_v15  ;;  %3895 = vmatprep.subr.bf16.mxu0 %v3988_v0  ;;  %v3956_v15 = vpack.c.bf16 %v280_v10, %v279_v9 }
  0xca   :  { %3907 = vmatprep.subr.bf16.mxu1 %v3988_v0 }
  0xcc   :  { %3897 = vmatpush3.bf16.msra.mxu0 %v3896_v20  ;;  %v3947_v20 = vpack.c.bf16 %v274_v17, %v273_v16 }
  0xcd   :  { %3909 = vmatpush3.bf16.msra.mxu1 %v3908_v21  ;;  %3898 = vmatprep.subr.bf16.mxu0 %v3988_v0  ;;  %v3959_v21 = vpack.c.bf16 %v282_v19, %v281_v18 }
  0xce   :  { %3910 = vmatprep.subr.bf16.mxu1 %v3988_v0 }
  0xd0   :  { %3900 = vmatpush3.bf16.msra.mxu0 %v3899_v26  ;;  %v39_v26 = vld [vmem:[%s5223_s0 + $0x38] sm:$0x3] }
  0xd1   :  { %3912 = vmatpush3.bf16.msra.mxu1 %v3911_v27  ;;  %3913 = vmatprep.subr.bf16.mxu0 %v3988_v0  ;;  %v3962_v27 = vpack.c.bf16 %v284_v23, %v283_v22 }
  0xd2   :  { %3925 = vmatprep.subr.bf16.mxu1 %v3988_v0 }
  0xd3   :  { %3466 = vmatmul.mubr.msk.f32.vlgmr.msra.gmra.mrb[24].mxu0 %vm299_vm1, %v35_v32  ;;  %v293_v32 = vld [vmem:[%s5222_s1 + $0x7d0] sm:$0xff] }
  0xd4   :  { %3485 = vmatmul.mubr.msk.f32.vlgmr.msra.gmra.mrb[24].mxu1 %vm299_vm1, %v36_v34  ;;  %3915 = vmatpush3.bf16.msra.mxu0 %v3914_v33  ;;  %v294_v33 = vld [vmem:[%s5222_s1 + $0x7d8] sm:$0xff]  ;;  %v3965_v34 = vpack.c.bf16 %v286_v31, %v285_v30 }
  0xd5   :  { %3927 = vmatpush3.bf16.msra.mxu1 %v3926_v35  ;;  %3916 = vmatprep.subr.bf16.mxu0 %v3988_v0  ;;  %v3977_v35 = vpack.c.bf16 %v294_v33, %v293_v32 }
  0xd6   :  { %3928 = vmatprep.subr.bf16.mxu1 %v3988_v0  ;;  %3503 = vmatprep.mubr.msk.f32.mxu0 %vm3989_vm0, %v3990_v8 }
  0xd7   :  { %3522 = vmatprep.mubr.msk.f32.mxu1 %vm3989_vm0, %v3990_v8 }
  0xd8   :  { %3918 = vmatpush3.bf16.msra.mxu0 %v3917_v40  ;;  %v296_v40 = vld [vmem:[%s5222_s1 + $0x7e8] sm:$0xff] }
  0xd9   :  { %3930 = vmatpush3.bf16.msra.mxu1 %v3929_v41  ;;  %3919 = vmatprep.subr.bf16.mxu0 %v3988_v0  ;;  %v3980_v45 = vpack.c.bf16 %v296_v40, %v295_v39 }
  0xda   :  { %3931 = vmatprep.subr.bf16.mxu1 %v3988_v0 }
  0xdc   :  { %3921 = vmatpush3.bf16.msra.mxu0 %v3920_v46  ;;  %v289_v46 = vld [vmem:[%s5222_s1 + $0x7b0] sm:$0xff] }
  0xdd   :  { %3933 = vmatpush3.bf16.msra.mxu1 %v3932_v47  ;;  %3922 = vmatprep.subr.bf16.mxu0 %v3988_v0  ;;  %v297_v47 = vld [vmem:[%s5222_s1 + $0x7f0] sm:$0xff] }
  0xde   :  { %3934 = vmatprep.subr.bf16.mxu1 %v3988_v0  ;;  %v3983_v50 = vpack.c.bf16 %v298_v48, %v297_v47 }
  0xe0   :  { %3924 = vmatpush3.bf16.msra.mxu0 %v3923_v52  ;;  %v42_v52 = vld [vmem:[%s5223_s0 + $0x3e] sm:$0x3] }
  0xe1   :  { %3936 = vmatpush3.bf16.msra.mxu1 %v3935_v53  ;;  %3937 = vmatprep.subr.bf16.mxu0 %v3988_v0 }
  0xe2   :  { %3949 = vmatprep.subr.bf16.mxu1 %v3988_v0 }
  0xe3   :  { %3504 = vmatmul.mubr.msk.f32.vlgmr.msra.gmra.mrb[26].mxu0 %vm299_vm1, %v37_v58 }
  0xe4   :  { %3523 = vmatmul.mubr.msk.f32.vlgmr.msra.gmra.mrb[26].mxu1 %vm299_vm1, %v38_v60  ;;  %3939 = vmatpush3.bf16.msra.mxu0 %v3938_v59 }
  0xe5   :  { %3951 = vmatpush3.bf16.msra.mxu1 %v3950_v61  ;;  %3940 = vmatprep.subr.bf16.mxu0 %v3988_v0 }
  0xe6   :  { %v369_v7 = vpop.f32.mrb[0].mxu0  ;;  %3952 = vmatprep.subr.bf16.mxu1 %v3988_v0  ;;  %3541 = vmatprep.mubr.msk.f32.mxu0 %vm3989_vm0, %v3990_v8 }
  0xe7   :  { %2637 = vst.msk [vmem:[%s5224_s2] sm:$0x3] %vm2636_vm2, %v369_v7  ;;  %v442_v11 = vpop.f32.mrb[0].mxu1  ;;  %v3011_v12 = vpop.f32.mrb[1].mxu0  ;;  %3560 = vmatprep.mubr.msk.f32.mxu1 %vm3989_vm0, %v3990_v8 }
  0xe8   :  { %2638 = vst.msk [vmem:[%s5224_s2 + $0x2] sm:$0x3] %vm2636_vm2, %v442_v11  ;;  %v3030_v13 = vpop.f32.mrb[1].mxu1  ;;  %3942 = vmatpush3.bf16.msra.mxu0 %v3941_v3 }
  0xe9   :  { %3954 = vmatpush3.bf16.msra.mxu1 %v3953_v4  ;;  %3943 = vmatprep.subr.bf16.mxu0 %v3988_v0 }
  0xea   :  { %3955 = vmatprep.subr.bf16.mxu1 %v3988_v0 }
  0xec   :  { %3945 = vmatpush3.bf16.msra.mxu0 %v3944_v14 }
  0xed   :  { %3957 = vmatpush3.bf16.msra.mxu1 %v3956_v15  ;;  %3946 = vmatprep.subr.bf16.mxu0 %v3988_v0 }
  0xee   :  { %3958 = vmatprep.subr.bf16.mxu1 %v3988_v0 }
  0xf0   :  { %3948 = vmatpush3.bf16.msra.mxu0 %v3947_v20 }
  0xf1   :  { %3960 = vmatpush3.bf16.msra.mxu1 %v3959_v21  ;;  %3961 = vmatprep.subr.bf16.mxu0 %v3988_v0 }
  0xf2   :  { %3973 = vmatprep.subr.bf16.mxu1 %v3988_v0 }
  0xf3   :  { %3542 = vmatmul.mubr.msk.f32.vlgmr.msra.gmra.mrb[28].mxu0 %vm299_vm1, %v39_v26 }
  0xf4   :  { %3561 = vmatmul.mubr.msk.f32.vlgmr.msra.gmra.mrb[28].mxu1 %vm299_vm1, %v40_v28  ;;  %3963 = vmatpush3.bf16.msra.mxu0 %v3962_v27 }
  0xf5   :  { %3975 = vmatpush3.bf16.msra.mxu1 %v3974_v29  ;;  %3964 = vmatprep.subr.bf16.mxu0 %v3988_v0 }
  0xf6   :  { %v515_v38 = vpop.f32.mrb[2].mxu0  ;;  %3976 = vmatprep.subr.bf16.mxu1 %v3988_v0  ;;  %3579 = vmatprep.mubr.msk.f32.mxu0 %vm3989_vm0, %v3990_v8 }
  0xf7   :  { %2639 = vst.msk [vmem:[%s5224_s2 + $0x4] sm:$0x3] %vm2636_vm2, %v515_v38  ;;  %v588_v41 = vpop.f32.mrb[2].mxu1  ;;  %v3049_v42 = vpop.f32.mrb[3].mxu0  ;;  %3598 = vmatprep.mubr.msk.f32.mxu1 %vm3989_vm0, %v3990_v8  ;;  %v290_v8 = vld [vmem:[%s5222_s1 + $0x7b8] sm:$0xff] }
  0xf8   :  { %2640 = vst.msk [vmem:[%s5224_s2 + $0x6] sm:$0x3] %vm2636_vm2, %v588_v41  ;;  %v3068_v43 = vpop.f32.mrb[3].mxu1  ;;  %3966 = vmatpush3.bf16.msra.mxu0 %v3965_v34  ;;  %v3971_v49 = vpack.c.bf16 %v290_v8, %v289_v46 }
  0xf9   :  { %3978 = vmatpush3.bf16.msra.mxu1 %v3977_v35  ;;  %3967 = vmatprep.subr.bf16.mxu0 %v3988_v0 }
  0xfa   :  { %3979 = vmatprep.subr.bf16.mxu1 %v3988_v0 }
  0xfc   :  { %3969 = vmatpush3.bf16.msra.mxu0 %v3968_v44 }
  0xfd   :  { %3981 = vmatpush3.bf16.msra.mxu1 %v3980_v45  ;;  %3970 = vmatprep.subr.bf16.mxu0 %v3988_v0 }
  0xfe   :  { %3982 = vmatprep.subr.bf16.mxu1 %v3988_v0 }
 0x100   :  { %3972 = vmatpush3.bf16.msra.mxu0 %v3971_v49 }
 0x101   :  { %3984 = vmatpush3.bf16.msra.mxu1 %v3983_v50 }
 0x103   :  { %3580 = vmatmul.mubr.msk.f32.vlgmr.msra.gmra.mrb[30].mxu0 %vm299_vm1, %v41_v51 }
 0x104   :  { %3599 = vmatmul.mubr.msk.f32.vlgmr.msra.gmra.mrb[30].mxu1 %vm299_vm1, %v42_v52 }
 0x106   :  { %v661_v53 = vpop.f32.mrb[4].mxu0 }
 0x107   :  { %2641 = vst.msk [vmem:[%s5224_s2 + $0x8] sm:$0x3] %vm2636_vm2, %v661_v53  ;;  %v734_v0 = vpop.f32.mrb[4].mxu1  ;;  %v3087_v54 = vpop.f32.mrb[5].mxu0 }
 0x108   :  { %2642 = vst.msk [vmem:[%s5224_s2 + $0xa] sm:$0x3] %vm2636_vm2, %v734_v0  ;;  %v3106_v55 = vpop.f32.mrb[5].mxu1 }
 0x116   :  { %v807_v56 = vpop.f32.mrb[6].mxu0 }
 0x117   :  { %2643 = vst.msk [vmem:[%s5224_s2 + $0xc] sm:$0x3] %vm2636_vm2, %v807_v56  ;;  %v880_v57 = vpop.f32.mrb[6].mxu1  ;;  %v3125_v58 = vpop.f32.mrb[7].mxu0 }
 0x118   :  { %2644 = vst.msk [vmem:[%s5224_s2 + $0xe] sm:$0x3] %vm2636_vm2, %v880_v57  ;;  %v3144_v59 = vpop.f32.mrb[7].mxu1 }
 0x126   :  { %v953_v60 = vpop.f32.mrb[8].mxu0 }
 0x127   :  { %2645 = vst.msk [vmem:[%s5224_s2 + $0x10] sm:$0x3] %vm2636_vm2, %v953_v60  ;;  %v1026_v61 = vpop.f32.mrb[8].mxu1  ;;  %v3163_v62 = vpop.f32.mrb[9].mxu0 }
 0x128   :  { %2646 = vst.msk [vmem:[%s5224_s2 + $0x12] sm:$0x3] %vm2636_vm2, %v1026_v61  ;;  %v3182_v63 = vpop.f32.mrb[9].mxu1 }
 0x136   :  { %v1099_v1 = vpop.f32.mrb[10].mxu0 }
 0x137   :  { %2647 = vst.msk [vmem:[%s5224_s2 + $0x14] sm:$0x3] %vm2636_vm2, %v1099_v1  ;;  %v1172_v2 = vpop.f32.mrb[10].mxu1  ;;  %v3201_v3 = vpop.f32.mrb[11].mxu0 }
 0x138   :  { %2648 = vst.msk [vmem:[%s5224_s2 + $0x16] sm:$0x3] %vm2636_vm2, %v1172_v2  ;;  %v3220_v4 = vpop.f32.mrb[11].mxu1 }
 0x146   :  { %v1245_v5 = vpop.f32.mrb[12].mxu0 }
 0x147   :  { %2649 = vst.msk [vmem:[%s5224_s2 + $0x18] sm:$0x3] %vm2636_vm2, %v1245_v5  ;;  %v1318_v6 = vpop.f32.mrb[12].mxu1  ;;  %v3239_v7 = vpop.f32.mrb[13].mxu0 }
 0x148   :  { %2650 = vst.msk [vmem:[%s5224_s2 + $0x1a] sm:$0x3] %vm2636_vm2, %v1318_v6  ;;  %v3258_v9 = vpop.f32.mrb[13].mxu1 }
 0x156   :  { %v1391_v10 = vpop.f32.mrb[14].mxu0 }
 0x157   :  { %2651 = vst.msk [vmem:[%s5224_s2 + $0x1c] sm:$0x3] %vm2636_vm2, %v1391_v10  ;;  %v1464_v11 = vpop.f32.mrb[14].mxu1  ;;  %v3277_v12 = vpop.f32.mrb[15].mxu0 }
 0x158   :  { %2652 = vst.msk [vmem:[%s5224_s2 + $0x1e] sm:$0x3] %vm2636_vm2, %v1464_v11  ;;  %v3296_v13 = vpop.f32.mrb[15].mxu1 }
 0x166   :  { %v1537_v14 = vpop.f32.mrb[16].mxu0 }
 0x167   :  { %2653 = vst.msk [vmem:[%s5224_s2 + $0x20] sm:$0x3] %vm2636_vm2, %v1537_v14  ;;  %v1610_v15 = vpop.f32.mrb[16].mxu1  ;;  %v3315_v16 = vpop.f32.mrb[17].mxu0 }
 0x168   :  { %2654 = vst.msk [vmem:[%s5224_s2 + $0x22] sm:$0x3] %vm2636_vm2, %v1610_v15  ;;  %v3334_v17 = vpop.f32.mrb[17].mxu1 }
 0x176   :  { %v1683_v18 = vpop.f32.mrb[18].mxu0 }
 0x177   :  { %2655 = vst.msk [vmem:[%s5224_s2 + $0x24] sm:$0x3] %vm2636_vm2, %v1683_v18  ;;  %v1756_v19 = vpop.f32.mrb[18].mxu1  ;;  %v3353_v20 = vpop.f32.mrb[19].mxu0 }
 0x178   :  { %2656 = vst.msk [vmem:[%s5224_s2 + $0x26] sm:$0x3] %vm2636_vm2, %v1756_v19  ;;  %v3372_v21 = vpop.f32.mrb[19].mxu1 }
 0x186   :  { %v1829_v22 = vpop.f32.mrb[20].mxu0 }
 0x187   :  { %2657 = vst.msk [vmem:[%s5224_s2 + $0x28] sm:$0x3] %vm2636_vm2, %v1829_v22  ;;  %v1902_v23 = vpop.f32.mrb[20].mxu1  ;;  %v3391_v24 = vpop.f32.mrb[21].mxu0 }
 0x188   :  { %2658 = vst.msk [vmem:[%s5224_s2 + $0x2a] sm:$0x3] %vm2636_vm2, %v1902_v23  ;;  %v3410_v25 = vpop.f32.mrb[21].mxu1 }
 0x196   :  { %v1975_v26 = vpop.f32.mrb[22].mxu0 }
 0x197   :  { %2659 = vst.msk [vmem:[%s5224_s2 + $0x2c] sm:$0x3] %vm2636_vm2, %v1975_v26  ;;  %v2048_v27 = vpop.f32.mrb[22].mxu1  ;;  %v3429_v28 = vpop.f32.mrb[23].mxu0 }
 0x198   :  { %2660 = vst.msk [vmem:[%s5224_s2 + $0x2e] sm:$0x3] %vm2636_vm2, %v2048_v27  ;;  %v3448_v29 = vpop.f32.mrb[23].mxu1 }
 0x1a6   :  { %v2121_v30 = vpop.f32.mrb[24].mxu0 }
 0x1a7   :  { %2661 = vst.msk [vmem:[%s5224_s2 + $0x30] sm:$0x3] %vm2636_vm2, %v2121_v30  ;;  %v2194_v31 = vpop.f32.mrb[24].mxu1  ;;  %v3467_v32 = vpop.f32.mrb[25].mxu0 }
 0x1a8   :  { %2662 = vst.msk [vmem:[%s5224_s2 + $0x32] sm:$0x3] %vm2636_vm2, %v2194_v31  ;;  %v3486_v33 = vpop.f32.mrb[25].mxu1 }
 0x1b6   :  { %v2267_v34 = vpop.f32.mrb[26].mxu0 }
 0x1b7   :  { %2663 = vst.msk [vmem:[%s5224_s2 + $0x34] sm:$0x3] %vm2636_vm2, %v2267_v34  ;;  %v2340_v35 = vpop.f32.mrb[26].mxu1  ;;  %v3505_v36 = vpop.f32.mrb[27].mxu0 }
 0x1b8   :  { %2664 = vst.msk [vmem:[%s5224_s2 + $0x36] sm:$0x3] %vm2636_vm2, %v2340_v35  ;;  %v3524_v37 = vpop.f32.mrb[27].mxu1 }
 0x1c6   :  { %v2413_v38 = vpop.f32.mrb[28].mxu0 }
 0x1c7   :  { %2665 = vst.msk [vmem:[%s5224_s2 + $0x38] sm:$0x3] %vm2636_vm2, %v2413_v38  ;;  %v2486_v39 = vpop.f32.mrb[28].mxu1  ;;  %v3543_v40 = vpop.f32.mrb[29].mxu0 }
 0x1c8   :  { %2666 = vst.msk [vmem:[%s5224_s2 + $0x3a] sm:$0x3] %vm2636_vm2, %v2486_v39  ;;  %v3562_v41 = vpop.f32.mrb[29].mxu1 }
 0x1d6   :  { %v2559_v42 = vpop.f32.mrb[30].mxu0 }
 0x1d7   :  { %2667 = vst.msk [vmem:[%s5224_s2 + $0x3c] sm:$0x3] %vm2636_vm2, %v2559_v42  ;;  %v2632_v43 = vpop.f32.mrb[30].mxu1  ;;  %v3581_v44 = vpop.f32.mrb[31].mxu0 }
 0x1d8   :  { %2668 = vst.msk [vmem:[%s5224_s2 + $0x3e] sm:$0x3] %vm2636_vm2, %v2632_v43  ;;  %v3600_v45 = vpop.f32.mrb[31].mxu1 }

// kernel: fno2d_forward.10
= control target key start
LH: loop header
LB: loop body
LE: loop exit
PB: predicated region body
PF: predicated region fallthrough
CT: control target
= control target key end

     0   :  { %s1426_s1 = inlined_call_operand.vmem [shape: f32[128,128], index: 1, kind: input, shape index: {}]   ;;  %s1427_s0 = inlined_call_operand.vmem [shape: f32[128,128], index: 0, kind: input, shape index: {}]   ;;  %s1428_s2 = inlined_call_operand.vmem [shape: f32[1,128], index: 2, kind: input, shape index: {}]   ;;  %s1429_s3 = inlined_call_operand.vmem [shape: f32[128,128], index: 3, kind: input, shape index: {}]   ;;  %s1430_s4 = inlined_call_operand.vmem [shape: f32[128,128], index: 4, kind: output, shape index: {}]  }
   0x1   :  { %v33_v0 = vld [vmem:[%s1426_s1] sm:$0xff]  ;;  %v34_v1 = vld [vmem:[%s1426_s1 + $0x8] sm:$0xff]  ;;  %v35_v2 = vld [vmem:[%s1426_s1 + $0x10] sm:$0xff] }
   0x2   :  { %v774_v3 = vpack.c.bf16 %v34_v1, %v33_v0  ;;  %v36_v4 = vld [vmem:[%s1426_s1 + $0x18] sm:$0xff]  ;;  %v37_v6 = vld [vmem:[%s1426_s1 + $0x20] sm:$0xff]  ;;  %v38_v7 = vld [vmem:[%s1426_s1 + $0x28] sm:$0xff] }
   0x3   :  { %v778_v5 = vpack.c.bf16 %v36_v4, %v35_v2  ;;  %v782_v8 = vpack.c.bf16 %v38_v7, %v37_v6  ;;  %v17_v9 = vld [vmem:[%s1427_s0] sm:$0xff]  ;;  %v39_v11 = vld [vmem:[%s1426_s1 + $0x30] sm:$0xff]  ;;  %v40_v12 = vld [vmem:[%s1426_s1 + $0x38] sm:$0xff] }
   0x4   :  { %775 = vmatprep.subr.bf16.mxu0 %v774_v3  ;;  %806 = vmatprep.subr.bf16.mxu1 %v774_v3  ;;  %v25_v10 = vld [vmem:[%s1427_s0 + $0x40] sm:$0xff]  ;;  %v786_v13 = vpack.c.bf16 %v40_v12, %v39_v11  ;;  %v42_v15 = vld [vmem:[%s1426_s1 + $0x48] sm:$0xff]  ;;  %v43_v17 = vld [vmem:[%s1426_s1 + $0x50] sm:$0xff] }
   0x5   :  { %777 = vmatpush3.bf16.msra.mxu0 %v774_v3  ;;  %814 = vmatpush3.bf16.msra.mxu1 %v774_v3  ;;  %v41_v14 = vld [vmem:[%s1426_s1 + $0x40] sm:$0xff]  ;;  %v44_v18 = vld [vmem:[%s1426_s1 + $0x58] sm:$0xff]  ;;  %v46_v21 = vld [vmem:[%s1426_s1 + $0x68] sm:$0xff] }
   0x6   :  { %779 = vmatprep.subr.bf16.mxu0 %v778_v5  ;;  %807 = vmatprep.subr.bf16.mxu1 %v778_v5  ;;  %v790_v16 = vpack.c.bf16 %v42_v15, %v41_v14  ;;  %v794_v19 = vpack.c.bf16 %v44_v18, %v43_v17  ;;  %v45_v20 = vld [vmem:[%s1426_s1 + $0x60] sm:$0xff]  ;;  %v47_v23 = vld [vmem:[%s1426_s1 + $0x70] sm:$0xff]  ;;  %v48_v24 = vld [vmem:[%s1426_s1 + $0x78] sm:$0xff] }
   0x7   :  { %750 = vmatprep.mubr.f32.mxu0 %v17_v9  ;;  %762 = vmatprep.mubr.f32.mxu1 %v25_v10  ;;  %v798_v22 = vpack.c.bf16 %v46_v21, %v45_v20  ;;  %v802_v25 = vpack.c.bf16 %v48_v24, %v47_v23  ;;  %v18_v26 = vld [vmem:[%s1427_s0 + $0x8] sm:$0xff]  ;;  %v19_v28 = vld [vmem:[%s1427_s0 + $0x10] sm:$0xff]  ;;  %v20_v30 = vld [vmem:[%s1427_s0 + $0x18] sm:$0xff] }
   0x8   :  { %v26_v27 = vld [vmem:[%s1427_s0 + $0x48] sm:$0xff]  ;;  %v27_v29 = vld [vmem:[%s1427_s0 + $0x50] sm:$0xff]  ;;  %v28_v31 = vld [vmem:[%s1427_s0 + $0x58] sm:$0xff] }
   0x9   :  { %781 = vmatpush3.bf16.msra.mxu0 %v778_v5  ;;  %815 = vmatpush3.bf16.msra.mxu1 %v778_v5  ;;  %v21_v32 = vld [vmem:[%s1427_s0 + $0x20] sm:$0xff]  ;;  %v22_v34 = vld [vmem:[%s1427_s0 + $0x28] sm:$0xff]  ;;  %v23_v36 = vld [vmem:[%s1427_s0 + $0x30] sm:$0xff] }
   0xa   :  { %783 = vmatprep.subr.bf16.mxu0 %v782_v8  ;;  %808 = vmatprep.subr.bf16.mxu1 %v782_v8  ;;  %v29_v33 = vld [vmem:[%s1427_s0 + $0x60] sm:$0xff]  ;;  %v30_v35 = vld [vmem:[%s1427_s0 + $0x68] sm:$0xff]  ;;  %v31_v37 = vld [vmem:[%s1427_s0 + $0x70] sm:$0xff] }
   0xb   :  { %v24_v38 = vld [vmem:[%s1427_s0 + $0x38] sm:$0xff]  ;;  %v1010_v40 = vld [vmem:[%s1428_s2] ss:$0 sm:$0xff]  ;;  %v202_v42 = vld [vmem:[%s1429_s3 + $0x8] sm:$0xff] }
   0xc   :  { %v32_v39 = vld [vmem:[%s1427_s0 + $0x78] sm:$0xff]  ;;  %v210_v44 = vld [vmem:[%s1429_s3 + $0x48] sm:$0xff]  ;;  %v201_v48 = vld [vmem:[%s1429_s3] sm:$0xff] }
   0xd   :  { %785 = vmatpush3.bf16.msra.mxu0 %v782_v8  ;;  %816 = vmatpush3.bf16.msra.mxu1 %v782_v8  ;;  %v209_v50 = vld [vmem:[%s1429_s3 + $0x40] sm:$0xff] }
   0xe   :  { %787 = vmatprep.subr.bf16.mxu0 %v786_v13  ;;  %809 = vmatprep.subr.bf16.mxu1 %v786_v13 }
  0x11   :  { %789 = vmatpush3.bf16.msra.mxu0 %v786_v13  ;;  %817 = vmatpush3.bf16.msra.mxu1 %v786_v13 }
  0x12   :  { %791 = vmatprep.subr.bf16.mxu0 %v790_v16  ;;  %810 = vmatprep.subr.bf16.mxu1 %v790_v16 }
  0x15   :  { %793 = vmatpush3.bf16.msra.mxu0 %v790_v16  ;;  %818 = vmatpush3.bf16.msra.mxu1 %v790_v16  ;;  %v204_v16 = vld [vmem:[%s1429_s3 + $0x18] sm:$0xff] }
  0x16   :  { %795 = vmatprep.subr.bf16.mxu0 %v794_v19  ;;  %811 = vmatprep.subr.bf16.mxu1 %v794_v19 }
  0x19   :  { %797 = vmatpush3.bf16.msra.mxu0 %v794_v19  ;;  %819 = vmatpush3.bf16.msra.mxu1 %v794_v19 }
  0x1a   :  { %799 = vmatprep.subr.bf16.mxu0 %v798_v22  ;;  %812 = vmatprep.subr.bf16.mxu1 %v798_v22 }
  0x1d   :  { %801 = vmatpush3.bf16.msra.mxu0 %v798_v22  ;;  %820 = vmatpush3.bf16.msra.mxu1 %v798_v22  ;;  %v212_v22 = vld [vmem:[%s1429_s3 + $0x58] sm:$0xff] }
  0x1e   :  { %803 = vmatprep.subr.bf16.mxu0 %v802_v25  ;;  %813 = vmatprep.subr.bf16.mxu1 %v802_v25 }
  0x21   :  { %805 = vmatpush3.bf16.msra.mxu0 %v802_v25  ;;  %821 = vmatpush3.bf16.msra.mxu1 %v802_v25 }
  0x24   :  { %751 = vmatmul.mubr.f32.vlgmr.msra.gmra.mrb[0].mxu0 %v18_v26  ;;  %763 = vmatmul.mubr.f32.vlgmr.msra.gmra.mrb[0].mxu1 %v26_v27 }
  0x25   :  { %753 = vmatprep.mubr.f32.mxu0 %v19_v28  ;;  %765 = vmatprep.mubr.f32.mxu1 %v27_v29  ;;  %v203_v28 = vld [vmem:[%s1429_s3 + $0x10] sm:$0xff] }
  0x28   :  { %754 = vmatmul.mubr.f32.gmra.mrb[2].mxu0 %v20_v30  ;;  %766 = vmatmul.mubr.f32.gmra.mrb[2].mxu1 %v28_v31 }
  0x29   :  { %756 = vmatprep.mubr.f32.mxu0 %v21_v32  ;;  %768 = vmatprep.mubr.f32.mxu1 %v29_v33 }
  0x2c   :  { %757 = vmatmul.mubr.f32.gmra.mrb[4].mxu0 %v22_v34  ;;  %769 = vmatmul.mubr.f32.gmra.mrb[4].mxu1 %v30_v35  ;;  %v211_v35 = vld [vmem:[%s1429_s3 + $0x50] sm:$0xff] }
  0x2d   :  { %759 = vmatprep.mubr.f32.mxu0 %v23_v36  ;;  %771 = vmatprep.mubr.f32.mxu1 %v31_v37 }
  0x30   :  { %760 = vmatmul.mubr.f32.gmra.mrb[6].mxu0 %v24_v38  ;;  %772 = vmatmul.mubr.f32.gmra.mrb[6].mxu1 %v32_v39 }
  0xf7   :  { %v752_v41 = vpop.f32.mrb[0].mxu0  ;;  %v764_v43 = vpop.f32.mrb[0].mxu1 }
  0xf8   :  { %v128_v45 = vadd.f32 %v752_v41, %v1010_v40  ;;  %v168_v46 = vadd.f32 %v764_v43, %v1010_v40  ;;  %v122_v47 = vpop.f32.mrb[1].mxu0  ;;  %v162_v49 = vpop.f32.mrb[1].mxu1 }
  0xf9   :  { %v123_v51 = vadd.f32 %v1010_v40, %v122_v47  ;;  %v163_v52 = vadd.f32 %v1010_v40, %v162_v49 }
  0xfa   :  { %v218_v53 = vadd.f32 %v202_v42, %v128_v45  ;;  %v226_v54 = vadd.f32 %v210_v44, %v168_v46 }
  0xfb   :  { %v217_v55 = vadd.f32 %v201_v48, %v123_v51  ;;  %v1028_v56 = vadd.f32 %v209_v50, %v163_v52  ;;  %v755_v57 = vpop.f32.mrb[2].mxu0  ;;  %v767_v58 = vpop.f32.mrb[2].mxu1 }
  0xfc   :  { %v1030_v59 = vmul.f32 0.70710677, %v218_v53  ;;  %v1032_v60 = vmul.f32 0.70710677, %v226_v54  ;;  %v132_v13 = vpop.f32.mrb[3].mxu0  ;;  %v172_v14 = vpop.f32.mrb[3].mxu1  ;;  %v138_v21 = vadd.f32 %v755_v57, %v1010_v40  ;;  %v178_v27 = vadd.f32 %v767_v58, %v1010_v40 }
  0xfd   :  { %v1034_v61 = vmul.f32 0.70710677, %v217_v55  ;;  %v1037_v62 = vmul.f32 0.70710677, %v1028_v56  ;;  %v133_v33 = vadd.f32 %v1010_v40, %v132_v13  ;;  %v173_v34 = vadd.f32 %v1010_v40, %v172_v14 }
  0xfe   :  { %v266_v63 = vand.u32 2147483647, %v1030_v59  ;;  %v274_v0 = vand.u32 2147483647, %v1032_v60  ;;  %v1066_v32 = vadd.f32 %v204_v16, %v138_v21  ;;  %v1077_v38 = vmul.f32 0.5, %v218_v53 }
  0xff   :  { %v265_v1 = vand.u32 2147483647, %v1034_v61  ;;  %v273_v2 = vand.u32 2147483647, %v1037_v62  ;;  %v1046_v17 = vpop.f32.mrb[4].mxu0  ;;  %v1048_v18 = vpop.f32.mrb[4].mxu1  ;;  %v1079_v41 = vadd.f32 %v212_v22, %v178_v27  ;;  %v1084_v44 = vadd.f32 %v203_v28, %v133_v33 }
 0x100   :  { %v282_v3 = vmul.f32 0.3275911, %v266_v63  ;;  %v490_v4 = vsub.f32 0.0, %v266_v63  ;;  %v290_v5 = vmul.f32 0.3275911, %v274_v0  ;;  %v498_v6 = vsub.f32 0.0, %v274_v0 }
 0x101   :  { %v281_v7 = vmul.f32 0.3275911, %v265_v1  ;;  %v489_v8 = vsub.f32 0.0, %v265_v1  ;;  %v289_v9 = vmul.f32 0.3275911, %v273_v2  ;;  %v497_v12 = vsub.f32 0.0, %v273_v2 }
 0x102   :  { %v298_v10 = vadd.f32 1.0, %v282_v3  ;;  %v306_v11 = vadd.f32 1.0, %v290_v5  ;;  %v506_v15 = vmul.f32 %v490_v4, %v266_v63  ;;  %v514_v19 = vmul.f32 %v498_v6, %v274_v0  ;;  %v1054_v23 = vpop.f32.mrb[5].mxu0  ;;  %v1056_v24 = vpop.f32.mrb[5].mxu1 }
 0x103   :  { %v297_v20 = vadd.f32 1.0, %v281_v7  ;;  %v505_v25 = vmul.f32 %v489_v8, %v265_v1  ;;  %v305_v26 = vadd.f32 1.0, %v289_v9  ;;  %v1062_v29 = vpop.f32.mrb[6].mxu0  ;;  %v1064_v30 = vpop.f32.mrb[6].mxu1  ;;  %v513_v31 = vmul.f32 %v497_v12, %v273_v2 }
 0x104   :  { %822 = vrcp.f32 %v298_v10  ;;  %v1073_v36 = vpop.f32.mrb[7].mxu0  ;;  %v1075_v37 = vpop.f32.mrb[7].mxu1  ;;  %v523_v39 = vmul.f32 1.442695, %v506_v15  ;;  %v539_v42 = vmul.f32 1.442695, %v514_v19  ;;  %v1091_v48 = vadd.f32 %v211_v35, %v173_v34 }
 0x105   :  { %824 = vrcp.f32 %v306_v11  ;;  %v1082_v43 = vmul.f32 0.70710677, %v1066_v32  ;;  %v1086_v45 = vmul.f32 0.5, %v226_v54  ;;  %v521_v46 = vmul.f32 1.442695, %v505_v25 }
 0x106   :  { %826 = vrcp.f32 %v297_v20  ;;  %v1089_v47 = vmul.f32 0.70710677, %v1079_v41  ;;  %v1093_v49 = vmul.f32 0.5, %v217_v55  ;;  %v537_v50 = vmul.f32 1.442695, %v513_v31 }
 0x107   :  { %828 = vrcp.f32 %v305_v26  ;;  %v268_v51 = vand.u32 2147483647, %v1082_v43  ;;  %v1097_v52 = vmul.f32 0.5, %v1028_v56  ;;  %v1101_v54 = vmul.f32 0.70710677, %v1084_v44 }
 0x108   :  { %830 = vpow2.f32 %v523_v39  ;;  %v276_v53 = vand.u32 2147483647, %v1089_v47  ;;  %v1104_v63 = vmul.f32 0.70710677, %v1091_v48  ;;  %v148_v12 = vadd.f32 %v1046_v17, %v1010_v40  ;;  %v206_v17 = vld [vmem:[%s1429_s3 + $0x28] sm:$0xff] }
 0x109   :  { %832 = vpow2.f32 %v539_v42  ;;  %v284_v57 = vmul.f32 0.3275911, %v268_v51  ;;  %v492_v58 = vsub.f32 0.0, %v268_v51  ;;  %v267_v1 = vand.u32 2147483647, %v1101_v54 }
 0x10a   :  { %834 = vpow2.f32 %v521_v46  ;;  %v292_v55 = vmul.f32 0.3275911, %v276_v53  ;;  %v500_v0 = vsub.f32 0.0, %v276_v53  ;;  %v275_v4 = vand.u32 2147483647, %v1104_v63 }
 0x10b   :  { %836 = vpow2.f32 %v537_v50  ;;  %v300_v56 = vadd.f32 1.0, %v284_v57  ;;  %v508_v3 = vmul.f32 %v492_v58, %v268_v51  ;;  %v283_v9 = vmul.f32 0.3275911, %v267_v1 }
 0x10c   :  { %v308_v7 = vadd.f32 1.0, %v292_v55  ;;  %v516_v8 = vmul.f32 %v500_v0, %v276_v53  ;;  %v491_v11 = vsub.f32 0.0, %v267_v1  ;;  %v188_v15 = vadd.f32 %v1048_v18, %v1010_v40 }
 0x10d   :  { %838 = vrcp.f32 %v300_v56  ;;  %v299_v14 = vadd.f32 1.0, %v283_v9  ;;  %v527_v20 = vmul.f32 1.442695, %v508_v3  ;;  %v291_v22 = vmul.f32 0.3275911, %v275_v4  ;;  %v214_v3 = vld [vmem:[%s1429_s3 + $0x68] sm:$0xff] }
 0x10e   :  { %v1107_v2 = vpop.eup %822  ;;  %840 = vrcp.f32 %v308_v7  ;;  %v507_v21 = vmul.f32 %v491_v11, %v267_v1  ;;  %v543_v27 = vmul.f32 1.442695, %v516_v8  ;;  %v499_v28 = vsub.f32 0.0, %v275_v4 }
 0x10f   :  { %v1110_v5 = vpop.eup %824  ;;  %v346_v6 = vmul.f32 1.0614054, %v1107_v2  ;;  %842 = vrcp.f32 %v299_v14  ;;  %v307_v34 = vadd.f32 1.0, %v291_v22  ;;  %v1130_v57 = vmul.f32 0.5, %v1066_v32 }
 0x110   :  { %v354_v10 = vmul.f32 1.0614054, %v1110_v5  ;;  %v1118_v16 = vpop.eup %826  ;;  %v525_v33 = vmul.f32 1.442695, %v507_v21  ;;  %v515_v50 = vmul.f32 %v499_v28, %v275_v4  ;;  %844 = vpow2.f32 %v527_v20 }
 0x111   :  { %v362_v13 = vadd.f32 -1.4531521, %v346_v6  ;;  %v345_v26 = vmul.f32 1.0614054, %v1118_v16  ;;  %v1125_v31 = vpop.eup %828  ;;  %v1132_v58 = vadd.f32 %v206_v17, %v148_v12  ;;  %846 = vrcp.f32 %v307_v34 }
 0x112   :  { %v370_v19 = vadd.f32 -1.4531521, %v354_v10  ;;  %v831_v35 = vpop.eup %830  ;;  %v353_v46 = vmul.f32 1.0614054, %v1125_v31  ;;  %848 = vpow2.f32 %v543_v27  ;;  %v541_v6 = vmul.f32 1.442695, %v515_v50 }
 0x113   :  { %v378_v25 = vmul.f32 %v1107_v2, %v362_v13  ;;  %v361_v42 = vadd.f32 -1.4531521, %v345_v26  ;;  %v833_v51 = vpop.eup %832  ;;  %v1145_v7 = vmul.f32 0.70710677, %v1132_v58  ;;  %850 = vpow2.f32 %v525_v33 }
 0x114   :  { %v386_v18 = vmul.f32 %v1110_v5, %v370_v19  ;;  %v1134_v55 = vpop.eup %834  ;;  %v369_v56 = vadd.f32 -1.4531521, %v353_v46  ;;  %852 = vpow2.f32 %v541_v6  ;;  %v1151_v14 = vadd.f32 %v214_v3, %v188_v15 }
 0x115   :  { %v394_v39 = vadd.f32 1.4214138, %v378_v25  ;;  %v377_v1 = vmul.f32 %v1118_v16, %v361_v42  ;;  %v1141_v4 = vpop.eup %836  ;;  %v270_v13 = vand.u32 2147483647, %v1145_v7  ;;  %vm586_vm0 = vcmp.ge.f32.partialorder %v1030_v59, 0.0 }
 0x116   :  { %v402_v53 = vadd.f32 1.4214138, %v386_v18  ;;  %v385_v10 = vmul.f32 %v1125_v31, %v369_v56  ;;  %vm594_vm1 = vcmp.ge.f32.partialorder %v1032_v60, 0.0  ;;  %vm585_vm2 = vcmp.ge.f32.partialorder %v1034_v61, 0.0 }
 0x117   :  { %v410_v0 = vmul.f32 %v1107_v2, %v394_v39  ;;  %v393_v9 = vadd.f32 1.4214138, %v377_v1  ;;  %v1148_v11 = vpop.eup %838  ;;  %v286_v28 = vmul.f32 0.3275911, %v270_v13  ;;  %v494_v17 = vsub.f32 0.0, %v270_v13 }
 0x118   :  { %v418_v32 = vmul.f32 %v1110_v5, %v402_v53  ;;  %v1153_v19 = vpop.eup %840  ;;  %v401_v22 = vadd.f32 1.4214138, %v385_v10  ;;  %v348_v25 = vmul.f32 1.0614054, %v1148_v11  ;;  %vm593_vm3 = vcmp.ge.f32.partialorder %v1037_v62, 0.0 }
 0x119   :  { %v426_v8 = vadd.f32 -0.28449672, %v410_v0  ;;  %v409_v21 = vmul.f32 %v1118_v16, %v393_v9  ;;  %v356_v27 = vmul.f32 1.0614054, %v1153_v19  ;;  %v1161_v39 = vpop.eup %842  ;;  %v302_v50 = vadd.f32 1.0, %v286_v28 }
 0x11a   :  { %v434_v12 = vadd.f32 -0.28449672, %v418_v32  ;;  %v417_v15 = vmul.f32 %v1125_v31, %v401_v22  ;;  %v364_v34 = vadd.f32 -1.4531521, %v348_v25  ;;  %v1164_v53 = vmul.f32 %v494_v17, %v270_v13  ;;  %v1170_v32 = vpop.eup %844 }
 0x11b   :  { %v442_v20 = vmul.f32 %v1107_v2, %v426_v8  ;;  %v425_v33 = vadd.f32 -0.28449672, %v409_v21  ;;  %v372_v46 = vadd.f32 -1.4531521, %v356_v27  ;;  %v347_v9 = vmul.f32 1.0614054, %v1161_v39  ;;  %v1175_v10 = vpop.eup %846 }
 0x11c   :  { %v450_v26 = vmul.f32 %v1110_v5, %v434_v12  ;;  %v433_v56 = vadd.f32 -0.28449672, %v417_v15  ;;  %v380_v3 = vmul.f32 %v1148_v11, %v364_v34  ;;  %854 = vrcp.f32 %v302_v50  ;;  %v849_v21 = vpop.eup %848 }
 0x11d   :  { %v458_v18 = vadd.f32 0.2548296, %v442_v20  ;;  %v441_v1 = vmul.f32 %v1118_v16, %v425_v33  ;;  %v388_v8 = vmul.f32 %v1153_v19, %v372_v46  ;;  %v1180_v27 = vpop.eup %850  ;;  %vm588_vm4 = vcmp.ge.f32.partialorder %v1082_v43, 0.0 }
 0x11e   :  { %v466_v42 = vadd.f32 0.2548296, %v450_v26  ;;  %v449_v13 = vmul.f32 %v1125_v31, %v433_v56  ;;  %v396_v20 = vadd.f32 1.4214138, %v380_v3  ;;  %v363_v26 = vadd.f32 -1.4531521, %v347_v9  ;;  %v1184_v33 = vpop.eup %852 }
 0x11f   :  { %v474_v0 = vmul.f32 %v1107_v2, %v458_v18  ;;  %v457_v2 = vadd.f32 0.2548296, %v441_v1  ;;  %v404_v25 = vadd.f32 1.4214138, %v388_v8  ;;  %vm596_vm5 = vcmp.ge.f32.partialorder %v1089_v47, 0.0 }
 0x120   :  { %v482_v6 = vmul.f32 %v1110_v5, %v466_v42  ;;  %v355_v5 = vmul.f32 1.0614054, %v1175_v10  ;;  %v465_v18 = vadd.f32 0.2548296, %v449_v13  ;;  %v379_v34 = vmul.f32 %v1161_v39, %v363_v26 }
 0x121   :  { %v554_v12 = vmul.f32 %v831_v35, %v474_v0  ;;  %v473_v17 = vmul.f32 %v1118_v16, %v457_v2  ;;  %v412_v35 = vmul.f32 %v1148_v11, %v396_v20  ;;  %vm587_vm6 = vcmp.ge.f32.partialorder %v1101_v54, 0.0 }
 0x122   :  { %v562_v22 = vmul.f32 %v833_v51, %v482_v6  ;;  %v420_v51 = vmul.f32 %v1153_v19, %v404_v25  ;;  %v371_v42 = vadd.f32 -1.4531521, %v355_v5  ;;  %v481_v0 = vmul.f32 %v1125_v31, %v465_v18 }
 0x123   :  { %v570_v28 = vsub.f32 1.0, %v554_v12  ;;  %v553_v50 = vmul.f32 %v1134_v55, %v473_v17  ;;  %v428_v1 = vadd.f32 -0.28449672, %v412_v35  ;;  %v395_v3 = vadd.f32 1.4214138, %v379_v34 }
 0x124   :  { %v578_v15 = vsub.f32 1.0, %v562_v22  ;;  %v436_v56 = vadd.f32 -0.28449672, %v420_v51  ;;  %v387_v6 = vmul.f32 %v1175_v10, %v371_v42  ;;  %v561_v12 = vmul.f32 %v1141_v4, %v481_v0 }
 0x125   :  { %v602_v46 = vsub.f32 0.0, %v570_v28  ;;  %v569_v9 = vsub.f32 1.0, %v553_v50  ;;  %v444_v2 = vmul.f32 %v1148_v11, %v428_v1  ;;  %v411_v20 = vmul.f32 %v1161_v39, %v395_v3 }
 0x126   :  { %v610_v16 = vsub.f32 0.0, %v578_v15  ;;  %v452_v31 = vmul.f32 %v1153_v19, %v436_v56  ;;  %v577_v26 = vsub.f32 1.0, %v561_v12  ;;  %v1200_v17 = vpop.eup %854  ;;  %v403_v18 = vadd.f32 1.4214138, %v387_v6 }
 0x127   :  { %v618_v8 = vsel %vm586_vm0, %v570_v28, %v602_v46  ;;  %v601_v25 = vsub.f32 0.0, %v569_v9  ;;  %v460_v5 = vadd.f32 0.2548296, %v444_v2  ;;  %v427_v28 = vadd.f32 -0.28449672, %v411_v20 }
 0x128   :  { %v634_v13 = vadd.f32 1.0, %v618_v8  ;;  %v626_v55 = vsel %vm594_vm1, %v578_v15, %v610_v16  ;;  %v468_v4 = vadd.f32 0.2548296, %v452_v31  ;;  %v609_v15 = vsub.f32 0.0, %v577_v26 }
 0x129   :  { %v642_v22 = vadd.f32 1.0, %v626_v55  ;;  %v617_v35 = vsel %vm585_vm2, %v569_v9, %v601_v25  ;;  %v476_v51 = vmul.f32 %v1148_v11, %v460_v5  ;;  %v443_v42 = vmul.f32 %v1161_v39, %v427_v28 }
 0x12a   :  { %v650_v59 = vmul.f32 %v634_v13, %v1077_v38  ;;  %v633_v34 = vadd.f32 1.0, %v617_v35  ;;  %v484_v38 = vmul.f32 %v1153_v19, %v468_v4  ;;  %v419_v46 = vmul.f32 %v1175_v10, %v403_v18 }
 0x12b   :  { %v658_v60 = vmul.f32 %v642_v22, %v1086_v45  ;;  %v625_v61 = vsel %vm593_vm3, %v577_v26, %v609_v15  ;;  %v556_v45 = vmul.f32 %v1170_v32, %v476_v51  ;;  %v350_v11 = vmul.f32 1.0614054, %v1200_v17  ;;  %v213_v51 = vld [vmem:[%s1429_s3 + $0x60] sm:$0xff] }
 0x12c   :  { %666 = vst [vmem:[%s1430_s4 + $0x8] sm:$0xff] %v650_v59  ;;  %v531_v50 = vmul.f32 1.442695, %v1164_v53  ;;  %v649_v0 = vmul.f32 %v633_v34, %v1093_v49  ;;  %v641_v19 = vadd.f32 1.0, %v625_v61  ;;  %v564_v1 = vmul.f32 %v849_v21, %v484_v38  ;;  %v205_v49 = vld [vmem:[%s1429_s3 + $0x20] sm:$0xff] }
 0x12d   :  { %674 = vst [vmem:[%s1430_s4 + $0x48] sm:$0xff] %v658_v60  ;;  %v459_v16 = vadd.f32 0.2548296, %v443_v42  ;;  %v572_v56 = vsub.f32 1.0, %v556_v45  ;;  %v435_v3 = vadd.f32 -0.28449672, %v419_v46  ;;  %v143_v2 = vadd.f32 %v1010_v40, %v1054_v23 }
 0x12e   :  { %v366_v6 = vadd.f32 -1.4531521, %v350_v11  ;;  %665 = vst [vmem:[%s1430_s4] sm:$0xff] %v649_v0  ;;  %v657_v62 = vmul.f32 %v641_v19, %v1097_v52  ;;  %v580_v32 = vsub.f32 1.0, %v564_v1  ;;  %v1230_v53 = vmul.f32 0.70710677, %v1151_v14 }
 0x12f   :  { %v475_v8 = vmul.f32 %v1161_v39, %v459_v16  ;;  %v604_v21 = vsub.f32 0.0, %v572_v56  ;;  %v451_v9 = vmul.f32 %v1175_v10, %v435_v3  ;;  %856 = vpow2.f32 %v531_v50 }
 0x130   :  { %v382_v12 = vmul.f32 %v1200_v17, %v366_v6  ;;  %673 = vst [vmem:[%s1430_s4 + $0x40] sm:$0xff] %v657_v62  ;;  %v612_v52 = vsub.f32 0.0, %v580_v32  ;;  %v278_v13 = vand.u32 2147483647, %v1230_v53  ;;  %v1246_v22 = vadd.f32 %v205_v49, %v143_v2  ;;  %v216_v49 = vld [vmem:[%s1429_s3 + $0x78] sm:$0xff] }
 0x131   :  { %v555_v39 = vmul.f32 %v1180_v27, %v475_v8  ;;  %v620_v55 = vsel %vm588_vm4, %v572_v56, %v604_v21  ;;  %v467_v31 = vadd.f32 0.2548296, %v451_v9  ;;  %v244_v59 = vmul.f32 0.5, %v1079_v41 }
 0x132   :  { %v398_v20 = vadd.f32 1.4214138, %v382_v12  ;;  %v636_v25 = vadd.f32 1.0, %v620_v55  ;;  %v628_v23 = vsel %vm596_vm5, %v580_v32, %v612_v52  ;;  %v294_v5 = vmul.f32 0.3275911, %v278_v13 }
 0x133   :  { %v571_v26 = vsub.f32 1.0, %v555_v39  ;;  %v644_v4 = vadd.f32 1.0, %v628_v23  ;;  %v483_v27 = vmul.f32 %v1175_v10, %v467_v31  ;;  %v183_v10 = vadd.f32 %v1010_v40, %v1056_v24  ;;  %v208_v24 = vld [vmem:[%s1429_s3 + $0x38] sm:$0xff] }
 0x134   :  { %v414_v28 = vmul.f32 %v1200_v17, %v398_v20  ;;  %v652_v43 = vmul.f32 %v636_v25, %v1130_v57  ;;  %v310_v60 = vadd.f32 1.0, %v294_v5  ;;  %v1263_v57 = vmul.f32 0.70710677, %v1246_v22 }
 0x135   :  { %v603_v18 = vsub.f32 0.0, %v571_v26  ;;  %v660_v35 = vmul.f32 %v644_v4, %v244_v59  ;;  %v563_v15 = vmul.f32 %v1184_v33, %v483_v27  ;;  %v235_v54 = vmul.f32 0.5, %v1084_v44 }
 0x136   :  { %v430_v47 = vadd.f32 -0.28449672, %v414_v28  ;;  %668 = vst [vmem:[%s1430_s4 + $0x18] sm:$0xff] %v652_v43  ;;  %858 = vrcp.f32 %v310_v60  ;;  %v269_v42 = vand.u32 2147483647, %v1263_v57  ;;  %v1273_v46 = vadd.f32 %v213_v51, %v183_v10 }
 0x137   :  { %v619_v41 = vsel %vm587_vm6, %v571_v26, %v603_v18  ;;  %676 = vst [vmem:[%s1430_s4 + $0x58] sm:$0xff] %v660_v35  ;;  %v579_v34 = vsub.f32 1.0, %v563_v15  ;;  %v158_v61 = vadd.f32 %v1062_v29, %v1010_v40  ;;  %v243_v44 = vmul.f32 0.5, %v1091_v48  ;;  %v215_v35 = vld [vmem:[%s1429_s3 + $0x70] sm:$0xff] }
 0x138   :  { %v635_v33 = vadd.f32 1.0, %v619_v41  ;;  %v446_v38 = vmul.f32 %v1200_v17, %v430_v47  ;;  %vm595_vm7 = vcmp.ge.f32.partialorder %v1104_v63, 0.0  ;;  %v285_v19 = vmul.f32 0.3275911, %v269_v42 }
 0x139   :  { %v611_v11 = vsub.f32 0.0, %v579_v34  ;;  %v857_v0 = vpop.eup %856  ;;  %v1283_v1 = vmul.f32 0.70710677, %v1273_v46  ;;  %v502_v56 = vsub.f32 0.0, %v278_v13  ;;  %v1289_v3 = vadd.f32 %v208_v24, %v158_v61 }
 0x13a   :  { %v651_v45 = vmul.f32 %v635_v33, %v235_v54  ;;  %v462_v50 = vadd.f32 0.2548296, %v446_v38  ;;  %v301_v62 = vadd.f32 1.0, %v285_v19  ;;  %v198_v63 = vadd.f32 %v1064_v30, %v1010_v40 }
 0x13b   :  { %v627_v29 = vsel %vm595_vm7, %v579_v34, %v611_v11  ;;  %v277_v48 = vand.u32 2147483647, %v1283_v1  ;;  %v1295_v8 = vmul.f32 0.70710677, %v1289_v3  ;;  %v518_v30 = vmul.f32 %v502_v56, %v278_v13  ;;  %v207_v13 = vld [vmem:[%s1429_s3 + $0x30] sm:$0xff] }
 0x13c   :  { %667 = vst [vmem:[%s1430_s4 + $0x10] sm:$0xff] %v651_v45  ;;  %v478_v16 = vmul.f32 %v1200_v17, %v462_v50  ;;  %v643_v6 = vadd.f32 1.0, %v627_v29  ;;  %860 = vrcp.f32 %v301_v62  ;;  %v1306_v39 = vadd.f32 %v216_v49, %v198_v63 }
 0x13d   :  { %v293_v17 = vmul.f32 0.3275911, %v277_v48  ;;  %v272_v12 = vand.u32 2147483647, %v1295_v8  ;;  %v153_v25 = vadd.f32 %v1010_v40, %v1073_v36  ;;  %vm590_vm8 = vcmp.ge.f32.partialorder %v1145_v7, 0.0 }
 0x13e   :  { %v558_v32 = vmul.f32 %v857_v0, %v478_v16  ;;  %v659_v21 = vmul.f32 %v643_v6, %v243_v44  ;;  %v1313_v23 = vmul.f32 0.70710677, %v1306_v39  ;;  %v493_v59 = vsub.f32 0.0, %v269_v42 }
 0x13f   :  { %v309_v52 = vadd.f32 1.0, %v293_v17  ;;  %v288_v20 = vmul.f32 0.3275911, %v272_v12  ;;  %v238_v27 = vmul.f32 0.5, %v1132_v58  ;;  %v547_v43 = vmul.f32 1.442695, %v518_v30 }
 0x140   :  { %v574_v9 = vsub.f32 1.0, %v558_v32  ;;  %v1301_v2 = vpop.eup %858  ;;  %675 = vst [vmem:[%s1430_s4 + $0x50] sm:$0xff] %v659_v21  ;;  %v280_v36 = vand.u32 2147483647, %v1313_v23  ;;  %v1321_v18 = vadd.f32 %v207_v13, %v153_v25  ;;  %v193_v60 = vadd.f32 %v1010_v40, %v1075_v37 }
 0x141   :  { %v358_v31 = vmul.f32 1.0614054, %v1301_v2  ;;  %862 = vrcp.f32 %v309_v52  ;;  %v304_v4 = vadd.f32 1.0, %v288_v20  ;;  %v501_v47 = vsub.f32 0.0, %v277_v48 }
 0x142   :  { %v606_v55 = vsub.f32 0.0, %v574_v9  ;;  %v296_v51 = vmul.f32 0.3275911, %v280_v36  ;;  %v509_v41 = vmul.f32 %v493_v59, %v269_v42  ;;  %v1329_v10 = vmul.f32 0.70710677, %v1321_v18 }
 0x143   :  { %v374_v5 = vadd.f32 -1.4531521, %v358_v31  ;;  %864 = vrcp.f32 %v304_v4  ;;  %v1336_v37 = vadd.f32 %v215_v35, %v193_v60  ;;  %v517_v42 = vmul.f32 %v501_v47, %v277_v48 }
 0x144   :  { %v622_v26 = vsel %vm590_vm8, %v574_v9, %v606_v55  ;;  %866 = vpow2.f32 %v547_v43  ;;  %v312_v40 = vadd.f32 1.0, %v296_v51  ;;  %v271_v38 = vand.u32 2147483647, %v1329_v10 }
 0x145   :  { %v638_v28 = vadd.f32 1.0, %v622_v26  ;;  %v390_v7 = vmul.f32 %v1301_v2, %v374_v5  ;;  %v1342_v61 = vmul.f32 0.70710677, %v1336_v37  ;;  %v529_v11 = vmul.f32 1.442695, %v509_v41 }
 0x146   :  { %v1331_v54 = vpop.eup %860  ;;  %868 = vrcp.f32 %v312_v40  ;;  %v496_v0 = vsub.f32 0.0, %v272_v12  ;;  %v287_v44 = vmul.f32 0.3275911, %v271_v38  ;;  %v545_v6 = vmul.f32 1.442695, %v517_v42 }
 0x147   :  { %v654_v15 = vmul.f32 %v638_v28, %v238_v27  ;;  %v406_v58 = vadd.f32 1.4214138, %v390_v7  ;;  %v349_v34 = vmul.f32 1.0614054, %v1331_v54  ;;  %v1347_v19 = vand.u32 2147483647, %v1342_v61 }
 0x148   :  { %v303_v62 = vadd.f32 1.0, %v287_v44  ;;  %870 = vpow2.f32 %v529_v11  ;;  %v512_v17 = vmul.f32 %v496_v0, %v272_v12  ;;  %v504_v9 = vsub.f32 0.0, %v280_v36 }
 0x149   :  { %670 = vst [vmem:[%s1430_s4 + $0x28] sm:$0xff] %v654_v15  ;;  %v422_v33 = vmul.f32 %v1301_v2, %v406_v58  ;;  %v365_v45 = vadd.f32 -1.4531521, %v349_v34  ;;  %v295_v48 = vmul.f32 0.3275911, %v1347_v19  ;;  %v495_v28 = vsub.f32 0.0, %v271_v38 }
 0x14a   :  { %872 = vrcp.f32 %v303_v62  ;;  %v535_v12 = vmul.f32 1.442695, %v512_v17  ;;  %v520_v27 = vmul.f32 %v504_v9, %v280_v36  ;;  %v246_v35 = vmul.f32 0.5, %v1151_v14 }
 0x14b   :  { %v438_v24 = vadd.f32 -0.28449672, %v422_v33  ;;  %v1344_v50 = vpop.eup %862  ;;  %v381_v16 = vmul.f32 %v1331_v54, %v365_v45  ;;  %v311_v30 = vadd.f32 1.0, %v295_v48  ;;  %874 = vpow2.f32 %v545_v6 }
 0x14c   :  { %v357_v56 = vmul.f32 1.0614054, %v1344_v50  ;;  %vm598_vm9 = vcmp.ge.f32.partialorder %v1230_v53, 0.0  ;;  %v511_v40 = vmul.f32 %v495_v28, %v271_v38  ;;  %v551_v45 = vmul.f32 1.442695, %v520_v27 }
 0x14d   :  { %v454_v29 = vmul.f32 %v1301_v2, %v438_v24  ;;  %v397_v32 = vadd.f32 1.4214138, %v381_v16  ;;  %v1353_v21 = vpop.eup %864  ;;  %876 = vrcp.f32 %v311_v30  ;;  %v503_v44 = vsub.f32 0.0, %v1347_v19 }
 0x14e   :  { %v373_v49 = vadd.f32 -1.4531521, %v357_v56  ;;  %v352_v20 = vmul.f32 1.0614054, %v1353_v21  ;;  %v867_v25 = vpop.eup %866  ;;  %878 = vpow2.f32 %v535_v12  ;;  %v533_v48 = vmul.f32 1.442695, %v511_v40 }
 0x14f   :  { %v470_v63 = vadd.f32 0.2548296, %v454_v29  ;;  %v413_v55 = vmul.f32 %v1331_v54, %v397_v32  ;;  %880 = vpow2.f32 %v551_v45  ;;  %v237_v9 = vmul.f32 0.5, %v1246_v22 }
 0x150   :  { %v389_v31 = vmul.f32 %v1344_v50, %v373_v49  ;;  %v368_v59 = vadd.f32 -1.4531521, %v352_v20  ;;  %v1359_v4 = vpop.eup %868  ;;  %vm589_vm10 = vcmp.ge.f32.partialorder %v1263_v57, 0.0  ;;  %882 = vpow2.f32 %v533_v48 }
 0x151   :  { %v486_v52 = vmul.f32 %v1301_v2, %v470_v63  ;;  %v429_v26 = vadd.f32 -0.28449672, %v413_v55  ;;  %v360_v15 = vmul.f32 1.0614054, %v1359_v4  ;;  %v519_v55 = vmul.f32 %v503_v44, %v1347_v19 }
 0x152   :  { %v405_v5 = vadd.f32 1.4214138, %v389_v31  ;;  %v384_v60 = vmul.f32 %v1353_v21, %v368_v59  ;;  %v871_v33 = vpop.eup %870  ;;  %vm597_vm11 = vcmp.ge.f32.partialorder %v1283_v1, 0.0  ;;  %vm592_vm12 = vcmp.ge.f32.partialorder %v1295_v8, 0.0 }
 0x153   :  { %v566_v13 = vmul.f32 %v867_v25, %v486_v52  ;;  %v445_v2 = vmul.f32 %v1331_v54, %v429_v26  ;;  %v376_v36 = vadd.f32 -1.4531521, %v360_v15  ;;  %vm600_vm13 = vcmp.ge.f32.partialorder %v1313_v23, 0.0 }
 0x154   :  { %v421_v7 = vmul.f32 %v1344_v50, %v405_v5  ;;  %v400_v41 = vadd.f32 1.4214138, %v384_v60  ;;  %v1369_v11 = vpop.eup %872  ;;  %vm591_vm14 = vcmp.ge.f32.partialorder %v1329_v10, 0.0  ;;  %vm599_vm15 = vcmp.ge.f32.partialorder %v1342_v61, 0.0 }
 0x155   :  { %v582_v43 = vsub.f32 1.0, %v566_v13  ;;  %v461_v51 = vadd.f32 0.2548296, %v445_v2  ;;  %v392_v53 = vmul.f32 %v1359_v4, %v376_v36  ;;  %v351_v38 = vmul.f32 1.0614054, %v1369_v11  ;;  %v875_v56 = vpop.eup %874 }
 0x156   :  { %v437_v58 = vadd.f32 -0.28449672, %v421_v7  ;;  %v416_v0 = vmul.f32 %v1353_v21, %v400_v41  ;;  %v549_v2 = vmul.f32 1.442695, %v519_v55  ;;  %v247_v10 = vmul.f32 0.5, %v1336_v37 }
 0x157   :  { %v614_v47 = vsub.f32 0.0, %v582_v43  ;;  %v477_v42 = vmul.f32 %v1331_v54, %v461_v51  ;;  %v408_v54 = vadd.f32 1.4214138, %v392_v53  ;;  %v367_v49 = vadd.f32 -1.4531521, %v351_v38  ;;  %v1376_v17 = vpop.eup %876 }
 0x158   :  { %v453_v24 = vmul.f32 %v1344_v50, %v437_v58  ;;  %v432_v62 = vadd.f32 -0.28449672, %v416_v0  ;;  %v359_v25 = vmul.f32 1.0614054, %v1376_v17  ;;  %v879_v27 = vpop.eup %878  ;;  %v245_v51 = vmul.f32 0.5, %v1273_v46 }
 0x159   :  { %v630_v34 = vsel %vm598_vm9, %v582_v43, %v614_v47  ;;  %v557_v29 = vmul.f32 %v871_v33, %v477_v42  ;;  %v424_v52 = vmul.f32 %v1359_v4, %v408_v54  ;;  %884 = vpow2.f32 %v549_v2 }
 0x15a   :  { %v646_v14 = vadd.f32 1.0, %v630_v34  ;;  %v469_v16 = vadd.f32 0.2548296, %v453_v24  ;;  %v448_v30 = vmul.f32 %v1353_v21, %v432_v62  ;;  %v375_v12 = vadd.f32 -1.4531521, %v359_v25  ;;  %v881_v34 = vpop.eup %880 }
 0x15b   :  { %v573_v63 = vsub.f32 1.0, %v557_v29  ;;  %v440_v26 = vadd.f32 -0.28449672, %v424_v52  ;;  %v883_v53 = vpop.eup %882  ;;  %v240_v29 = vmul.f32 0.5, %v1289_v3 }
 0x15c   :  { %v662_v6 = vmul.f32 %v646_v14, %v246_v35  ;;  %v485_v32 = vmul.f32 %v1344_v50, %v469_v16  ;;  %v383_v50 = vmul.f32 %v1369_v11, %v367_v49  ;;  %v464_v13 = vadd.f32 0.2548296, %v448_v30 }
 0x15d   :  { %v605_v31 = vsub.f32 0.0, %v573_v63  ;;  %v456_v19 = vmul.f32 %v1359_v4, %v440_v26  ;;  %v391_v35 = vmul.f32 %v1376_v17, %v375_v12 }
 0x15e   :  { %678 = vst [vmem:[%s1430_s4 + $0x68] sm:$0xff] %v662_v6  ;;  %v565_v20 = vmul.f32 %v875_v56, %v485_v32  ;;  %v399_v22 = vadd.f32 1.4214138, %v383_v50  ;;  %v480_v43 = vmul.f32 %v1353_v21, %v464_v13 }
 0x15f   :  { %v621_v5 = vsel %vm589_vm10, %v573_v63, %v605_v31  ;;  %v472_v47 = vadd.f32 0.2548296, %v456_v19  ;;  %v407_v36 = vadd.f32 1.4214138, %v391_v35  ;;  %v248_v63 = vmul.f32 0.5, %v1306_v39 }
 0x160   :  { %v581_v59 = vsub.f32 1.0, %v565_v20  ;;  %v637_v28 = vadd.f32 1.0, %v621_v5  ;;  %v415_v60 = vmul.f32 %v1369_v11, %v399_v22  ;;  %v560_v15 = vmul.f32 %v879_v27, %v480_v43 }
 0x161   :  { %v488_v33 = vmul.f32 %v1359_v4, %v472_v47  ;;  %v423_v1 = vmul.f32 %v1376_v17, %v407_v36  ;;  %v239_v31 = vmul.f32 0.5, %v1321_v18 }
 0x162   :  { %v613_v7 = vsub.f32 0.0, %v581_v59  ;;  %v653_v57 = vmul.f32 %v637_v28, %v237_v9  ;;  %v431_v41 = vadd.f32 -0.28449672, %v415_v60  ;;  %v576_v40 = vsub.f32 1.0, %v560_v15 }
 0x163   :  { %v568_v46 = vmul.f32 %v881_v34, %v488_v33  ;;  %v439_v0 = vadd.f32 -0.28449672, %v423_v1 }
 0x164   :  { %v629_v58 = vsel %vm597_vm11, %v581_v59, %v613_v7  ;;  %669 = vst [vmem:[%s1430_s4 + $0x20] sm:$0xff] %v653_v57  ;;  %v447_v42 = vmul.f32 %v1369_v11, %v431_v41  ;;  %v608_v45 = vsub.f32 0.0, %v576_v40 }
 0x165   :  { %v645_v21 = vadd.f32 1.0, %v629_v58  ;;  %v584_v4 = vsub.f32 1.0, %v568_v46  ;;  %v455_v56 = vmul.f32 %v1376_v17, %v439_v0 }
 0x166   :  { %v463_v14 = vadd.f32 0.2548296, %v447_v42  ;;  %v624_v44 = vsel %vm592_vm12, %v576_v40, %v608_v45 }
 0x167   :  { %v661_v24 = vmul.f32 %v645_v21, %v245_v51  ;;  %v640_v16 = vadd.f32 1.0, %v624_v44  ;;  %v616_v6 = vsub.f32 0.0, %v584_v4  ;;  %v471_v54 = vadd.f32 0.2548296, %v455_v56 }
 0x168   :  { %v479_v38 = vmul.f32 %v1369_v11, %v463_v14  ;;  %v885_v11 = vpop.eup %884 }
 0x169   :  { %677 = vst [vmem:[%s1430_s4 + $0x60] sm:$0xff] %v661_v24  ;;  %v656_v62 = vmul.f32 %v640_v16, %v240_v29  ;;  %v632_v48 = vsel %vm600_vm13, %v584_v4, %v616_v6  ;;  %v487_v49 = vmul.f32 %v1376_v17, %v471_v54 }
 0x16a   :  { %v559_v8 = vmul.f32 %v883_v53, %v479_v38  ;;  %v648_v32 = vadd.f32 1.0, %v632_v48 }
 0x16b   :  { %672 = vst [vmem:[%s1430_s4 + $0x38] sm:$0xff] %v656_v62  ;;  %v567_v52 = vmul.f32 %v885_v11, %v487_v49 }
 0x16c   :  { %v575_v3 = vsub.f32 1.0, %v559_v8  ;;  %v664_v9 = vmul.f32 %v648_v32, %v248_v63 }
 0x16d   :  { %v583_v55 = vsub.f32 1.0, %v567_v52 }
 0x16e   :  { %v607_v30 = vsub.f32 0.0, %v575_v3  ;;  %680 = vst [vmem:[%s1430_s4 + $0x78] sm:$0xff] %v664_v9 }
 0x16f   :  { %v615_v39 = vsub.f32 0.0, %v583_v55 }
 0x170   :  { %v623_v23 = vsel %vm591_vm14, %v575_v3, %v607_v30 }
 0x171   :  { %v639_v20 = vadd.f32 1.0, %v623_v23  ;;  %v631_v17 = vsel %vm599_vm15, %v583_v55, %v615_v39 }
 0x172   :  { %v647_v25 = vadd.f32 1.0, %v631_v17 }
 0x173   :  { %v655_v50 = vmul.f32 %v639_v20, %v239_v31 }
 0x174   :  { %v663_v13 = vmul.f32 %v647_v25, %v247_v10 }
 0x175   :  { %671 = vst [vmem:[%s1430_s4 + $0x30] sm:$0xff] %v655_v50 }
 0x176   :  { %679 = vst [vmem:[%s1430_s4 + $0x70] sm:$0xff] %v663_v13 }

// kernel: fno2d_forward.14
= control target key start
LH: loop header
LB: loop body
LE: loop exit
PB: predicated region body
PF: predicated region fallthrough
CT: control target
= control target key end

     0   :  { %s628_s1 = inlined_call_operand.vmem [shape: f32[128,128], index: 1, kind: input, shape index: {}]   ;;  %s629_s0 = inlined_call_operand.vmem [shape: f32[128,128], index: 0, kind: input, shape index: {}]   ;;  %s630_s2 = inlined_call_operand.vmem [shape: f32[1,128], index: 2, kind: input, shape index: {}]   ;;  %s631_s3 = inlined_call_operand.vmem [shape: f32[128,128], index: 3, kind: input, shape index: {}]   ;;  %s632_s4 = inlined_call_operand.vmem [shape: f32[128,128], index: 4, kind: output, shape index: {}]  }
   0x1   :  { %v33_v0 = vld [vmem:[%s628_s1] sm:$0xff]  ;;  %v34_v1 = vld [vmem:[%s628_s1 + $0x8] sm:$0xff]  ;;  %v35_v2 = vld [vmem:[%s628_s1 + $0x10] sm:$0xff] }
   0x2   :  { %v342_v3 = vpack.c.bf16 %v34_v1, %v33_v0  ;;  %v36_v4 = vld [vmem:[%s628_s1 + $0x18] sm:$0xff]  ;;  %v37_v6 = vld [vmem:[%s628_s1 + $0x20] sm:$0xff]  ;;  %v38_v7 = vld [vmem:[%s628_s1 + $0x28] sm:$0xff] }
   0x3   :  { %v346_v5 = vpack.c.bf16 %v36_v4, %v35_v2  ;;  %v350_v8 = vpack.c.bf16 %v38_v7, %v37_v6  ;;  %v17_v9 = vld [vmem:[%s629_s0] sm:$0xff]  ;;  %v39_v11 = vld [vmem:[%s628_s1 + $0x30] sm:$0xff]  ;;  %v40_v12 = vld [vmem:[%s628_s1 + $0x38] sm:$0xff] }
   0x4   :  { %343 = vmatprep.subr.bf16.mxu0 %v342_v3  ;;  %374 = vmatprep.subr.bf16.mxu1 %v342_v3  ;;  %v25_v10 = vld [vmem:[%s629_s0 + $0x40] sm:$0xff]  ;;  %v354_v13 = vpack.c.bf16 %v40_v12, %v39_v11  ;;  %v42_v15 = vld [vmem:[%s628_s1 + $0x48] sm:$0xff]  ;;  %v43_v17 = vld [vmem:[%s628_s1 + $0x50] sm:$0xff] }
   0x5   :  { %345 = vmatpush3.bf16.msra.mxu0 %v342_v3  ;;  %382 = vmatpush3.bf16.msra.mxu1 %v342_v3  ;;  %v41_v14 = vld [vmem:[%s628_s1 + $0x40] sm:$0xff]  ;;  %v44_v18 = vld [vmem:[%s628_s1 + $0x58] sm:$0xff]  ;;  %v46_v21 = vld [vmem:[%s628_s1 + $0x68] sm:$0xff] }
   0x6   :  { %347 = vmatprep.subr.bf16.mxu0 %v346_v5  ;;  %375 = vmatprep.subr.bf16.mxu1 %v346_v5  ;;  %v358_v16 = vpack.c.bf16 %v42_v15, %v41_v14  ;;  %v362_v19 = vpack.c.bf16 %v44_v18, %v43_v17  ;;  %v45_v20 = vld [vmem:[%s628_s1 + $0x60] sm:$0xff]  ;;  %v47_v23 = vld [vmem:[%s628_s1 + $0x70] sm:$0xff]  ;;  %v48_v24 = vld [vmem:[%s628_s1 + $0x78] sm:$0xff] }
   0x7   :  { %318 = vmatprep.mubr.f32.mxu0 %v17_v9  ;;  %330 = vmatprep.mubr.f32.mxu1 %v25_v10  ;;  %v366_v22 = vpack.c.bf16 %v46_v21, %v45_v20  ;;  %v370_v25 = vpack.c.bf16 %v48_v24, %v47_v23  ;;  %v18_v26 = vld [vmem:[%s629_s0 + $0x8] sm:$0xff]  ;;  %v19_v28 = vld [vmem:[%s629_s0 + $0x10] sm:$0xff]  ;;  %v20_v30 = vld [vmem:[%s629_s0 + $0x18] sm:$0xff] }
   0x8   :  { %v26_v27 = vld [vmem:[%s629_s0 + $0x48] sm:$0xff]  ;;  %v27_v29 = vld [vmem:[%s629_s0 + $0x50] sm:$0xff]  ;;  %v28_v31 = vld [vmem:[%s629_s0 + $0x58] sm:$0xff] }
   0x9   :  { %349 = vmatpush3.bf16.msra.mxu0 %v346_v5  ;;  %383 = vmatpush3.bf16.msra.mxu1 %v346_v5  ;;  %v21_v32 = vld [vmem:[%s629_s0 + $0x20] sm:$0xff]  ;;  %v22_v34 = vld [vmem:[%s629_s0 + $0x28] sm:$0xff]  ;;  %v23_v36 = vld [vmem:[%s629_s0 + $0x30] sm:$0xff] }
   0xa   :  { %351 = vmatprep.subr.bf16.mxu0 %v350_v8  ;;  %376 = vmatprep.subr.bf16.mxu1 %v350_v8  ;;  %v29_v33 = vld [vmem:[%s629_s0 + $0x60] sm:$0xff]  ;;  %v30_v35 = vld [vmem:[%s629_s0 + $0x68] sm:$0xff]  ;;  %v31_v37 = vld [vmem:[%s629_s0 + $0x70] sm:$0xff] }
   0xb   :  { %v24_v38 = vld [vmem:[%s629_s0 + $0x38] sm:$0xff]  ;;  %v514_v40 = vld [vmem:[%s630_s2] ss:$0 sm:$0xff]  ;;  %v202_v42 = vld [vmem:[%s631_s3 + $0x8] sm:$0xff] }
   0xc   :  { %v32_v39 = vld [vmem:[%s629_s0 + $0x78] sm:$0xff]  ;;  %v210_v44 = vld [vmem:[%s631_s3 + $0x48] sm:$0xff]  ;;  %v201_v48 = vld [vmem:[%s631_s3] sm:$0xff] }
   0xd   :  { %353 = vmatpush3.bf16.msra.mxu0 %v350_v8  ;;  %384 = vmatpush3.bf16.msra.mxu1 %v350_v8  ;;  %v209_v50 = vld [vmem:[%s631_s3 + $0x40] sm:$0xff]  ;;  %v204_v58 = vld [vmem:[%s631_s3 + $0x18] sm:$0xff]  ;;  %v203_v0 = vld [vmem:[%s631_s3 + $0x10] sm:$0xff] }
   0xe   :  { %355 = vmatprep.subr.bf16.mxu0 %v354_v13  ;;  %377 = vmatprep.subr.bf16.mxu1 %v354_v13  ;;  %v212_v60 = vld [vmem:[%s631_s3 + $0x58] sm:$0xff]  ;;  %v211_v2 = vld [vmem:[%s631_s3 + $0x50] sm:$0xff]  ;;  %v206_v10 = vld [vmem:[%s631_s3 + $0x28] sm:$0xff] }
   0xf   :  { %v214_v12 = vld [vmem:[%s631_s3 + $0x68] sm:$0xff]  ;;  %v213_v18 = vld [vmem:[%s631_s3 + $0x60] sm:$0xff] }
  0x11   :  { %357 = vmatpush3.bf16.msra.mxu0 %v354_v13  ;;  %385 = vmatpush3.bf16.msra.mxu1 %v354_v13 }
  0x12   :  { %359 = vmatprep.subr.bf16.mxu0 %v358_v16  ;;  %378 = vmatprep.subr.bf16.mxu1 %v358_v16 }
  0x15   :  { %361 = vmatpush3.bf16.msra.mxu0 %v358_v16  ;;  %386 = vmatpush3.bf16.msra.mxu1 %v358_v16  ;;  %v205_v16 = vld [vmem:[%s631_s3 + $0x20] sm:$0xff] }
  0x16   :  { %363 = vmatprep.subr.bf16.mxu0 %v362_v19  ;;  %379 = vmatprep.subr.bf16.mxu1 %v362_v19 }
  0x19   :  { %365 = vmatpush3.bf16.msra.mxu0 %v362_v19  ;;  %387 = vmatpush3.bf16.msra.mxu1 %v362_v19 }
  0x1a   :  { %367 = vmatprep.subr.bf16.mxu0 %v366_v22  ;;  %380 = vmatprep.subr.bf16.mxu1 %v366_v22 }
  0x1d   :  { %369 = vmatpush3.bf16.msra.mxu0 %v366_v22  ;;  %388 = vmatpush3.bf16.msra.mxu1 %v366_v22 }
  0x1e   :  { %371 = vmatprep.subr.bf16.mxu0 %v370_v25  ;;  %381 = vmatprep.subr.bf16.mxu1 %v370_v25 }
  0x21   :  { %373 = vmatpush3.bf16.msra.mxu0 %v370_v25  ;;  %389 = vmatpush3.bf16.msra.mxu1 %v370_v25 }
  0x24   :  { %319 = vmatmul.mubr.f32.vlgmr.msra.gmra.mrb[0].mxu0 %v18_v26  ;;  %331 = vmatmul.mubr.f32.vlgmr.msra.gmra.mrb[0].mxu1 %v26_v27  ;;  %v208_v26 = vld [vmem:[%s631_s3 + $0x38] sm:$0xff] }
  0x25   :  { %321 = vmatprep.mubr.f32.mxu0 %v19_v28  ;;  %333 = vmatprep.mubr.f32.mxu1 %v27_v29  ;;  %v216_v28 = vld [vmem:[%s631_s3 + $0x78] sm:$0xff] }
  0x28   :  { %322 = vmatmul.mubr.f32.gmra.mrb[2].mxu0 %v20_v30  ;;  %334 = vmatmul.mubr.f32.gmra.mrb[2].mxu1 %v28_v31 }
  0x29   :  { %324 = vmatprep.mubr.f32.mxu0 %v21_v32  ;;  %336 = vmatprep.mubr.f32.mxu1 %v29_v33  ;;  %v207_v32 = vld [vmem:[%s631_s3 + $0x30] sm:$0xff] }
  0x2c   :  { %325 = vmatmul.mubr.f32.gmra.mrb[4].mxu0 %v22_v34  ;;  %337 = vmatmul.mubr.f32.gmra.mrb[4].mxu1 %v30_v35  ;;  %v215_v34 = vld [vmem:[%s631_s3 + $0x70] sm:$0xff] }
  0x2d   :  { %327 = vmatprep.mubr.f32.mxu0 %v23_v36  ;;  %339 = vmatprep.mubr.f32.mxu1 %v31_v37 }
  0x30   :  { %328 = vmatmul.mubr.f32.gmra.mrb[6].mxu0 %v24_v38  ;;  %340 = vmatmul.mubr.f32.gmra.mrb[6].mxu1 %v32_v39 }
  0xf7   :  { %v320_v41 = vpop.f32.mrb[0].mxu0  ;;  %v332_v43 = vpop.f32.mrb[0].mxu1 }
  0xf8   :  { %v128_v45 = vadd.f32 %v320_v41, %v514_v40  ;;  %v168_v46 = vadd.f32 %v332_v43, %v514_v40  ;;  %v122_v47 = vpop.f32.mrb[1].mxu0  ;;  %v162_v49 = vpop.f32.mrb[1].mxu1 }
  0xf9   :  { %v123_v51 = vadd.f32 %v514_v40, %v122_v47  ;;  %v163_v52 = vadd.f32 %v514_v40, %v162_v49 }
  0xfa   :  { %v218_v53 = vadd.f32 %v202_v42, %v128_v45  ;;  %v226_v54 = vadd.f32 %v210_v44, %v168_v46 }
  0xfb   :  { %v217_v55 = vadd.f32 %v201_v48, %v123_v51  ;;  %v225_v56 = vadd.f32 %v209_v50, %v163_v52  ;;  %v323_v57 = vpop.f32.mrb[2].mxu0  ;;  %v335_v59 = vpop.f32.mrb[2].mxu1 }
  0xfc   :  { %234 = vst [vmem:[%s632_s4 + $0x8] sm:$0xff] %v218_v53  ;;  %242 = vst [vmem:[%s632_s4 + $0x48] sm:$0xff] %v226_v54  ;;  %v138_v61 = vadd.f32 %v323_v57, %v514_v40  ;;  %v178_v62 = vadd.f32 %v335_v59, %v514_v40  ;;  %v132_v63 = vpop.f32.mrb[3].mxu0  ;;  %v172_v1 = vpop.f32.mrb[3].mxu1 }
  0xfd   :  { %233 = vst [vmem:[%s632_s4] sm:$0xff] %v217_v55  ;;  %241 = vst [vmem:[%s632_s4 + $0x40] sm:$0xff] %v225_v56  ;;  %v133_v3 = vadd.f32 %v514_v40, %v132_v63  ;;  %v173_v4 = vadd.f32 %v514_v40, %v172_v1 }
  0xfe   :  { %v220_v5 = vadd.f32 %v204_v58, %v138_v61  ;;  %v228_v6 = vadd.f32 %v212_v60, %v178_v62 }
  0xff   :  { %v219_v7 = vadd.f32 %v203_v0, %v133_v3  ;;  %v227_v8 = vadd.f32 %v211_v2, %v173_v4  ;;  %v326_v9 = vpop.f32.mrb[4].mxu0  ;;  %v338_v11 = vpop.f32.mrb[4].mxu1 }
 0x100   :  { %236 = vst [vmem:[%s632_s4 + $0x18] sm:$0xff] %v220_v5  ;;  %244 = vst [vmem:[%s632_s4 + $0x58] sm:$0xff] %v228_v6  ;;  %v148_v13 = vadd.f32 %v326_v9, %v514_v40  ;;  %v188_v14 = vadd.f32 %v338_v11, %v514_v40  ;;  %v142_v15 = vpop.f32.mrb[5].mxu0  ;;  %v182_v17 = vpop.f32.mrb[5].mxu1 }
 0x101   :  { %235 = vst [vmem:[%s632_s4 + $0x10] sm:$0xff] %v219_v7  ;;  %243 = vst [vmem:[%s632_s4 + $0x50] sm:$0xff] %v227_v8  ;;  %v143_v19 = vadd.f32 %v514_v40, %v142_v15  ;;  %v183_v20 = vadd.f32 %v514_v40, %v182_v17 }
 0x102   :  { %v222_v21 = vadd.f32 %v206_v10, %v148_v13  ;;  %v230_v22 = vadd.f32 %v214_v12, %v188_v14 }
 0x103   :  { %v221_v23 = vadd.f32 %v205_v16, %v143_v19  ;;  %v229_v24 = vadd.f32 %v213_v18, %v183_v20  ;;  %v329_v25 = vpop.f32.mrb[6].mxu0  ;;  %v341_v27 = vpop.f32.mrb[6].mxu1 }
 0x104   :  { %238 = vst [vmem:[%s632_s4 + $0x28] sm:$0xff] %v222_v21  ;;  %246 = vst [vmem:[%s632_s4 + $0x68] sm:$0xff] %v230_v22  ;;  %v158_v29 = vadd.f32 %v329_v25, %v514_v40  ;;  %v198_v30 = vadd.f32 %v341_v27, %v514_v40  ;;  %v152_v31 = vpop.f32.mrb[7].mxu0  ;;  %v192_v33 = vpop.f32.mrb[7].mxu1 }
 0x105   :  { %237 = vst [vmem:[%s632_s4 + $0x20] sm:$0xff] %v221_v23  ;;  %245 = vst [vmem:[%s632_s4 + $0x60] sm:$0xff] %v229_v24  ;;  %v153_v35 = vadd.f32 %v514_v40, %v152_v31  ;;  %v193_v36 = vadd.f32 %v514_v40, %v192_v33 }
 0x106   :  { %v224_v37 = vadd.f32 %v208_v26, %v158_v29  ;;  %v232_v38 = vadd.f32 %v216_v28, %v198_v30 }
 0x107   :  { %v223_v39 = vadd.f32 %v207_v32, %v153_v35  ;;  %v231_v41 = vadd.f32 %v215_v34, %v193_v36 }
 0x108   :  { %240 = vst [vmem:[%s632_s4 + $0x38] sm:$0xff] %v224_v37  ;;  %248 = vst [vmem:[%s632_s4 + $0x78] sm:$0xff] %v232_v38 }
 0x109   :  { %239 = vst [vmem:[%s632_s4 + $0x30] sm:$0xff] %v223_v39  ;;  %247 = vst [vmem:[%s632_s4 + $0x70] sm:$0xff] %v231_v41 }

// kernel: fno2d_forward.15
= control target key start
LH: loop header
LB: loop body
LE: loop exit
PB: predicated region body
PF: predicated region fallthrough
CT: control target
= control target key end

     0   :  { %s1709_s1 = inlined_call_operand.vmem [shape: f32[128,128], index: 1, kind: input, shape index: {}]   ;;  %s1710_s0 = inlined_call_operand.vmem [shape: f32[128,128], index: 0, kind: input, shape index: {}]   ;;  %s1711_s3 = inlined_call_operand.vmem [shape: f32[128,4], index: 3, kind: input, shape index: {}]   ;;  %s1712_s2 = inlined_call_operand.vmem [shape: f32[1,128], index: 2, kind: input, shape index: {}]   ;;  %s1713_s4 = inlined_call_operand.vmem [shape: f32[1,4], index: 4, kind: input, shape index: {}]   ;;  %s1714_s5 = inlined_call_operand.vmem [shape: f32[128,4], index: 5, kind: output, shape index: {}]  }
   0x1   :  { %v36_v0 = vld [vmem:[%s1709_s1] sm:$0xff]  ;;  %v37_v1 = vld [vmem:[%s1709_s1 + $0x8] sm:$0xff]  ;;  %v38_v2 = vld [vmem:[%s1709_s1 + $0x10] sm:$0xff] }
   0x2   :  { %v1003_v3 = vpack.c.bf16 %v37_v1, %v36_v0  ;;  %v39_v4 = vld [vmem:[%s1709_s1 + $0x18] sm:$0xff]  ;;  %v40_v6 = vld [vmem:[%s1709_s1 + $0x20] sm:$0xff]  ;;  %v41_v7 = vld [vmem:[%s1709_s1 + $0x28] sm:$0xff] }
   0x3   :  { %v1007_v5 = vpack.c.bf16 %v39_v4, %v38_v2  ;;  %v1011_v8 = vpack.c.bf16 %v41_v7, %v40_v6  ;;  %v20_v9 = vld [vmem:[%s1710_s0] sm:$0xff]  ;;  %v42_v10 = vld [vmem:[%s1709_s1 + $0x30] sm:$0xff]  ;;  %v43_v11 = vld [vmem:[%s1709_s1 + $0x38] sm:$0xff] }
   0x4   :  { %1004 = vmatprep.subr.bf16.mxu0 %v1003_v3  ;;  %923 = vmatprep.mubr.f32.mxu0 %v20_v9  ;;  %v1015_v12 = vpack.c.bf16 %v43_v11, %v42_v10  ;;  %v44_v13 = vld [vmem:[%s1709_s1 + $0x40] sm:$0xff]  ;;  %v45_v14 = vld [vmem:[%s1709_s1 + $0x48] sm:$0xff]  ;;  %v46_v16 = vld [vmem:[%s1709_s1 + $0x50] sm:$0xff] }
   0x5   :  { %1006 = vmatpush3.bf16.msra.mxu0 %v1003_v3  ;;  %v1019_v15 = vpack.c.bf16 %v45_v14, %v44_v13  ;;  %v47_v17 = vld [vmem:[%s1709_s1 + $0x58] sm:$0xff]  ;;  %v48_v19 = vld [vmem:[%s1709_s1 + $0x60] sm:$0xff]  ;;  %v49_v20 = vld [vmem:[%s1709_s1 + $0x68] sm:$0xff] }
   0x6   :  { %1008 = vmatprep.subr.bf16.mxu0 %v1007_v5  ;;  %v1023_v18 = vpack.c.bf16 %v47_v17, %v46_v16  ;;  %v1027_v21 = vpack.c.bf16 %v49_v20, %v48_v19  ;;  %v50_v22 = vld [vmem:[%s1709_s1 + $0x70] sm:$0xff]  ;;  %v51_v23 = vld [vmem:[%s1709_s1 + $0x78] sm:$0xff]  ;;  %v21_v25 = vld [vmem:[%s1710_s0 + $0x8] sm:$0xff] }
   0x7   :  { %v1031_v24 = vpack.c.bf16 %v51_v23, %v50_v22  ;;  %v22_v26 = vld [vmem:[%s1710_s0 + $0x10] sm:$0xff]  ;;  %v23_v27 = vld [vmem:[%s1710_s0 + $0x18] sm:$0xff]  ;;  %v24_v28 = vld [vmem:[%s1710_s0 + $0x20] sm:$0xff] }
   0x8   :  { %v25_v29 = vld [vmem:[%s1710_s0 + $0x28] sm:$0xff]  ;;  %v26_v30 = vld [vmem:[%s1710_s0 + $0x30] sm:$0xff]  ;;  %v27_v31 = vld [vmem:[%s1710_s0 + $0x38] sm:$0xff] }
   0x9   :  { %1010 = vmatpush3.bf16.msra.mxu0 %v1007_v5  ;;  %v28_v32 = vld [vmem:[%s1710_s0 + $0x40] sm:$0xff]  ;;  %v29_v33 = vld [vmem:[%s1710_s0 + $0x48] sm:$0xff]  ;;  %v30_v34 = vld [vmem:[%s1710_s0 + $0x50] sm:$0xff] }
   0xa   :  { %1012 = vmatprep.subr.bf16.mxu0 %v1011_v8  ;;  %v31_v35 = vld [vmem:[%s1710_s0 + $0x58] sm:$0xff]  ;;  %v32_v36 = vld [vmem:[%s1710_s0 + $0x60] sm:$0xff]  ;;  %v33_v37 = vld [vmem:[%s1710_s0 + $0x68] sm:$0xff] }
   0xb   :  { %v34_v38 = vld [vmem:[%s1710_s0 + $0x70] sm:$0xff]  ;;  %v35_v39 = vld [vmem:[%s1710_s0 + $0x78] sm:$0xff]  ;;  %v636_v40 = vld [vmem:[%s1711_s3] sm:$0xff] }
   0xc   :  { %v637_v41 = vld [vmem:[%s1711_s3 + $0x8] sm:$0xff]  ;;  %v638_v43 = vld [vmem:[%s1711_s3 + $0x10] sm:$0xff]  ;;  %v639_v44 = vld [vmem:[%s1711_s3 + $0x18] sm:$0xff] }
   0xd   :  { %1014 = vmatpush3.bf16.msra.mxu0 %v1011_v8  ;;  %v1035_v42 = vpack.c.bf16 %v637_v41, %v636_v40  ;;  %v1039_v45 = vpack.c.bf16 %v639_v44, %v638_v43  ;;  %v640_v46 = vld [vmem:[%s1711_s3 + $0x20] sm:$0xff]  ;;  %v641_v47 = vld [vmem:[%s1711_s3 + $0x28] sm:$0xff]  ;;  %v642_v49 = vld [vmem:[%s1711_s3 + $0x30] sm:$0xff] }
   0xe   :  { %1016 = vmatprep.subr.bf16.mxu0 %v1015_v12  ;;  %v1043_v48 = vpack.c.bf16 %v641_v47, %v640_v46  ;;  %v643_v50 = vld [vmem:[%s1711_s3 + $0x38] sm:$0xff]  ;;  %v644_v52 = vld [vmem:[%s1711_s3 + $0x40] sm:$0xff]  ;;  %v645_v53 = vld [vmem:[%s1711_s3 + $0x48] sm:$0xff] }
   0xf   :  { %1036 = vmatprep.subr.bf16.mxu1 %v1035_v42  ;;  %v1047_v51 = vpack.c.bf16 %v643_v50, %v642_v49  ;;  %v1051_v54 = vpack.c.bf16 %v645_v53, %v644_v52  ;;  %v646_v55 = vld [vmem:[%s1711_s3 + $0x50] sm:$0xff]  ;;  %v647_v56 = vld [vmem:[%s1711_s3 + $0x58] sm:$0xff]  ;;  %v648_v58 = vld [vmem:[%s1711_s3 + $0x60] sm:$0xff] }
  0x10   :  { %1038 = vmatpush3.bf16.msra.mxu1 %v1035_v42  ;;  %v1055_v57 = vpack.c.bf16 %v647_v56, %v646_v55  ;;  %v649_v59 = vld [vmem:[%s1711_s3 + $0x68] sm:$0xff]  ;;  %v650_v60 = vld [vmem:[%s1711_s3 + $0x70] sm:$0xff]  ;;  %v651_v62 = vld [vmem:[%s1711_s3 + $0x78] sm:$0xff] }
  0x11   :  { %1018 = vmatpush3.bf16.msra.mxu0 %v1015_v12  ;;  %1040 = vmatprep.subr.bf16.mxu1 %v1039_v45  ;;  %v1059_v61 = vpack.c.bf16 %v649_v59, %v648_v58  ;;  %v1063_v63 = vpack.c.bf16 %v651_v62, %v650_v60  ;;  %v1308_v0 = vld [vmem:[%s1712_s2] ss:$0 sm:$0xff] }
  0x12   :  { %1020 = vmatprep.subr.bf16.mxu0 %v1019_v15 }
  0x14   :  { %1042 = vmatpush3.bf16.msra.mxu1 %v1039_v45 }
  0x15   :  { %1022 = vmatpush3.bf16.msra.mxu0 %v1019_v15  ;;  %1044 = vmatprep.subr.bf16.mxu1 %v1043_v48 }
  0x16   :  { %1024 = vmatprep.subr.bf16.mxu0 %v1023_v18 }
  0x18   :  { %1046 = vmatpush3.bf16.msra.mxu1 %v1043_v48 }
  0x19   :  { %1026 = vmatpush3.bf16.msra.mxu0 %v1023_v18  ;;  %1048 = vmatprep.subr.bf16.mxu1 %v1047_v51 }
  0x1a   :  { %1028 = vmatprep.subr.bf16.mxu0 %v1027_v21 }
  0x1c   :  { %1050 = vmatpush3.bf16.msra.mxu1 %v1047_v51 }
  0x1d   :  { %1030 = vmatpush3.bf16.msra.mxu0 %v1027_v21  ;;  %1052 = vmatprep.subr.bf16.mxu1 %v1051_v54 }
  0x1e   :  { %1032 = vmatprep.subr.bf16.mxu0 %v1031_v24 }
  0x20   :  { %1054 = vmatpush3.bf16.msra.mxu1 %v1051_v54 }
  0x21   :  { %1034 = vmatpush3.bf16.msra.mxu0 %v1031_v24  ;;  %1056 = vmatprep.subr.bf16.mxu1 %v1055_v57 }
  0x24   :  { %924 = vmatmul.mubr.f32.vlgmr.msra.gmra.mrb[0].mxu0 %v21_v25  ;;  %1058 = vmatpush3.bf16.msra.mxu1 %v1055_v57 }
  0x25   :  { %926 = vmatprep.mubr.f32.mxu0 %v22_v26  ;;  %1060 = vmatprep.subr.bf16.mxu1 %v1059_v61 }
  0x28   :  { %927 = vmatmul.mubr.f32.gmra.mrb[2].mxu0 %v23_v27  ;;  %1062 = vmatpush3.bf16.msra.mxu1 %v1059_v61 }
  0x29   :  { %929 = vmatprep.mubr.f32.mxu0 %v24_v28  ;;  %1064 = vmatprep.subr.bf16.mxu1 %v1063_v63 }
  0x2c   :  { %930 = vmatmul.mubr.f32.gmra.mrb[4].mxu0 %v25_v29  ;;  %1066 = vmatpush3.bf16.msra.mxu1 %v1063_v63 }
  0x2d   :  { %932 = vmatprep.mubr.f32.mxu0 %v26_v30 }
  0x30   :  { %933 = vmatmul.mubr.f32.gmra.mrb[6].mxu0 %v27_v31 }
  0x31   :  { %935 = vmatprep.mubr.f32.mxu0 %v28_v32 }
  0x34   :  { %936 = vmatmul.mubr.f32.gmra.mrb[8].mxu0 %v29_v33 }
  0x35   :  { %938 = vmatprep.mubr.f32.mxu0 %v30_v34 }
  0x38   :  { %939 = vmatmul.mubr.f32.gmra.mrb[10].mxu0 %v31_v35 }
  0x39   :  { %941 = vmatprep.mubr.f32.mxu0 %v32_v36 }
  0x3c   :  { %942 = vmatmul.mubr.f32.gmra.mrb[12].mxu0 %v33_v37 }
  0x3d   :  { %944 = vmatprep.mubr.f32.mxu0 %v34_v38 }
  0x40   :  { %945 = vmatmul.mubr.f32.gmra.mrb[14].mxu0 %v35_v39 }
  0xf7   :  { %v925_v1 = vpop.f32.mrb[0].mxu0 }
  0xf8   :  { %v131_v2 = vadd.f32 %v925_v1, %v1308_v0  ;;  %v125_v3 = vpop.f32.mrb[1].mxu0 }
  0xf9   :  { %v126_v4 = vadd.f32 %v1308_v0, %v125_v3 }
  0xfa   :  { %v1312_v5 = vmul.f32 0.70710677, %v131_v2  ;;  %v1327_v29 = vmul.f32 0.5, %v131_v2 }
  0xfb   :  { %v1314_v6 = vmul.f32 0.70710677, %v126_v4  ;;  %v928_v7 = vpop.f32.mrb[2].mxu0  ;;  %v1332_v36 = vmul.f32 0.5, %v126_v4 }
  0xfc   :  { %v237_v8 = vand.u32 2147483647, %v1312_v5  ;;  %v141_v9 = vadd.f32 %v928_v7, %v1308_v0  ;;  %v135_v10 = vpop.f32.mrb[3].mxu0  ;;  %vm557_vm1 = vcmp.ge.f32.partialorder %v1312_v5, 0.0 }
  0xfd   :  { %v236_v11 = vand.u32 2147483647, %v1314_v6  ;;  %v136_v12 = vadd.f32 %v1308_v0, %v135_v10  ;;  %vm556_vm0 = vcmp.ge.f32.partialorder %v1314_v6, 0.0 }
  0xfe   :  { %v1320_v13 = vmul.f32 0.70710677, %v141_v9  ;;  %v253_v14 = vmul.f32 0.3275911, %v237_v8  ;;  %v461_v16 = vsub.f32 0.0, %v237_v8  ;;  %v1334_v37 = vmul.f32 0.5, %v141_v9 }
  0xff   :  { %v1322_v15 = vmul.f32 0.70710677, %v136_v12  ;;  %v931_v18 = vpop.f32.mrb[4].mxu0  ;;  %v460_v19 = vsub.f32 0.0, %v236_v11  ;;  %v252_v22 = vmul.f32 0.3275911, %v236_v11 }
 0x100   :  { %v239_v17 = vand.u32 2147483647, %v1320_v13  ;;  %v145_v21 = vpop.f32.mrb[5].mxu0  ;;  %v269_v23 = vadd.f32 1.0, %v253_v14  ;;  %v477_v25 = vmul.f32 %v461_v16, %v237_v8  ;;  %v151_v27 = vadd.f32 %v931_v18, %v1308_v0 }
 0x101   :  { %v238_v20 = vand.u32 2147483647, %v1322_v15  ;;  %v476_v30 = vmul.f32 %v460_v19, %v236_v11  ;;  %v146_v32 = vadd.f32 %v1308_v0, %v145_v21  ;;  %v268_v33 = vadd.f32 1.0, %v252_v22 }
 0x102   :  { %v463_v26 = vsub.f32 0.0, %v239_v17  ;;  %v255_v34 = vmul.f32 0.3275911, %v239_v17  ;;  %v1330_v35 = vmul.f32 0.70710677, %v151_v27  ;;  %1067 = vrcp.f32 %v269_v23 }
 0x103   :  { %v934_v24 = vpop.f32.mrb[6].mxu0  ;;  %v462_v31 = vsub.f32 0.0, %v238_v20  ;;  %v254_v38 = vmul.f32 0.3275911, %v238_v20  ;;  %v1336_v39 = vmul.f32 0.70710677, %v146_v32  ;;  %1069 = vrcp.f32 %v268_v33 }
 0x104   :  { %v155_v28 = vpop.f32.mrb[7].mxu0  ;;  %v494_v41 = vmul.f32 1.442695, %v477_v25  ;;  %v479_v42 = vmul.f32 %v463_v26, %v239_v17  ;;  %v241_v43 = vand.u32 2147483647, %v1330_v35  ;;  %v161_v44 = vadd.f32 %v934_v24, %v1308_v0 }
 0x105   :  { %v492_v46 = vmul.f32 1.442695, %v476_v30  ;;  %v478_v47 = vmul.f32 %v462_v31, %v238_v20  ;;  %v240_v48 = vand.u32 2147483647, %v1336_v39  ;;  %v156_v49 = vadd.f32 %v1308_v0, %v155_v28 }
 0x106   :  { %v271_v50 = vadd.f32 1.0, %v255_v34  ;;  %v257_v51 = vmul.f32 0.3275911, %v241_v43  ;;  %v1342_v52 = vmul.f32 0.70710677, %v161_v44  ;;  %v270_v53 = vadd.f32 1.0, %v254_v38 }
 0x107   :  { %v937_v40 = vpop.f32.mrb[8].mxu0  ;;  %v465_v54 = vsub.f32 0.0, %v241_v43  ;;  %v256_v55 = vmul.f32 0.3275911, %v240_v48  ;;  %v1344_v56 = vmul.f32 0.70710677, %v156_v49  ;;  %1071 = vpow2.f32 %v494_v41 }
 0x108   :  { %v165_v45 = vpop.f32.mrb[9].mxu0  ;;  %v498_v57 = vmul.f32 1.442695, %v479_v42  ;;  %v464_v58 = vsub.f32 0.0, %v240_v48  ;;  %v243_v59 = vand.u32 2147483647, %v1342_v52  ;;  %1073 = vpow2.f32 %v492_v46 }
 0x109   :  { %v1347_v61 = vmul.f32 0.5, %v136_v12  ;;  %v496_v62 = vmul.f32 1.442695, %v478_v47  ;;  %v242_v63 = vand.u32 2147483647, %v1344_v56  ;;  %1075 = vrcp.f32 %v271_v50 }
 0x10a   :  { %v1350_v2 = vmul.f32 0.5, %v151_v27  ;;  %v273_v3 = vadd.f32 1.0, %v257_v51  ;;  %v467_v4 = vsub.f32 0.0, %v243_v59  ;;  %1077 = vrcp.f32 %v270_v53 }
 0x10b   :  { %v940_v60 = vpop.f32.mrb[10].mxu0  ;;  %v481_v7 = vmul.f32 %v465_v54, %v241_v43  ;;  %v1352_v8 = vmul.f32 0.5, %v146_v32  ;;  %v272_v9 = vadd.f32 1.0, %v256_v55  ;;  %1079 = vpow2.f32 %v498_v57 }
 0x10c   :  { %v175_v1 = vpop.f32.mrb[11].mxu0  ;;  %v480_v11 = vmul.f32 %v464_v58, %v240_v48  ;;  %v466_v12 = vsub.f32 0.0, %v242_v63  ;;  %v1357_v14 = vadd.f32 %v937_v40, %v1308_v0  ;;  %v1361_v17 = vpop.eup %1067  ;;  %1081 = vpow2.f32 %v496_v62 }
 0x10d   :  { %v259_v18 = vmul.f32 0.3275911, %v243_v59  ;;  %v483_v19 = vmul.f32 %v467_v4, %v243_v59  ;;  %v1364_v20 = vadd.f32 %v1308_v0, %v165_v45  ;;  %1083 = vrcp.f32 %v273_v3  ;;  %v1376_v28 = vpop.eup %1069 }
 0x10e   :  { %v1366_v21 = vmul.f32 0.5, %v161_v44  ;;  %v258_v22 = vmul.f32 0.3275911, %v242_v63  ;;  %v1369_v23 = vmul.f32 0.70710677, %v1357_v14  ;;  %1085 = vrcp.f32 %v272_v9 }
 0x10f   :  { %v1354_v10 = vpop.f32.mrb[12].mxu0  ;;  %v502_v24 = vmul.f32 1.442695, %v481_v7  ;;  %v1371_v25 = vmul.f32 0.5, %v156_v49  ;;  %v1374_v26 = vmul.f32 0.70710677, %v1364_v20  ;;  %v482_v31 = vmul.f32 %v466_v12, %v242_v63 }
 0x110   :  { %v1359_v16 = vpop.f32.mrb[13].mxu0  ;;  %v500_v30 = vmul.f32 1.442695, %v480_v11  ;;  %v245_v32 = vand.u32 2147483647, %v1369_v23  ;;  %v1380_v33 = vadd.f32 %v940_v60, %v1308_v0  ;;  %v275_v38 = vadd.f32 1.0, %v259_v18 }
 0x111   :  { %v506_v40 = vmul.f32 1.442695, %v483_v19  ;;  %v244_v41 = vand.u32 2147483647, %v1374_v26  ;;  %v176_v42 = vadd.f32 %v1308_v0, %v175_v1  ;;  %v1384_v43 = vpop.eup %1071  ;;  %v274_v44 = vadd.f32 1.0, %v258_v22 }
 0x112   :  { %1724 = vst [vmem:[#allocation2_spill] sm:$0xff] %v1380_v33  ;;  %v261_v45 = vmul.f32 0.3275911, %v245_v32  ;;  %v469_v46 = vsub.f32 0.0, %v245_v32  ;;  %v1387_v47 = vmul.f32 0.70710677, %v1380_v33  ;;  %v1389_v48 = vpop.eup %1073  ;;  %1087 = vpow2.f32 %v502_v24 }
 0x113   :  { %v946_v27 = vpop.f32.mrb[14].mxu0  ;;  %v260_v49 = vmul.f32 0.3275911, %v244_v41  ;;  %v468_v50 = vsub.f32 0.0, %v244_v41  ;;  %v1391_v51 = vmul.f32 0.70710677, %v176_v42  ;;  %v1393_v53 = vpop.eup %1075  ;;  %1089 = vpow2.f32 %v500_v30 }
 0x114   :  { %v195_v34 = vpop.f32.mrb[15].mxu0  ;;  %v504_v54 = vmul.f32 1.442695, %v482_v31  ;;  %v485_v55 = vmul.f32 %v469_v46, %v245_v32  ;;  %v247_v57 = vand.u32 2147483647, %v1387_v47  ;;  %v1396_v58 = vpop.eup %1077  ;;  %1091 = vrcp.f32 %v275_v38 }
 0x115   :  { %v277_v59 = vadd.f32 1.0, %v261_v45  ;;  %v484_v60 = vmul.f32 %v468_v50, %v244_v41  ;;  %v246_v62 = vand.u32 2147483647, %v1391_v51  ;;  %v1399_v63 = vpop.eup %1079  ;;  %1093 = vrcp.f32 %v274_v44 }
 0x116   :  { %v276_v1 = vadd.f32 1.0, %v260_v49  ;;  %v263_v3 = vmul.f32 0.3275911, %v247_v57  ;;  %v471_v4 = vsub.f32 0.0, %v247_v57  ;;  %v1401_v7 = vpop.eup %1081  ;;  %1095 = vpow2.f32 %v506_v40 }
 0x117   :  { %v510_v9 = vmul.f32 1.442695, %v485_v55  ;;  %v262_v11 = vmul.f32 0.3275911, %v246_v62  ;;  %v470_v12 = vsub.f32 0.0, %v246_v62  ;;  %v1403_v18 = vpop.eup %1083  ;;  %1097 = vpow2.f32 %v504_v54 }
 0x118   :  { %v508_v19 = vmul.f32 1.442695, %v484_v60  ;;  %v487_v22 = vmul.f32 %v471_v4, %v247_v57  ;;  %v1407_v24 = vadd.f32 %v1354_v10, %v1308_v0  ;;  %v1409_v30 = vpop.eup %1085  ;;  %1099 = vrcp.f32 %v277_v59 }
 0x119   :  { %v279_v31 = vadd.f32 1.0, %v263_v3  ;;  %v486_v32 = vmul.f32 %v470_v12, %v246_v62  ;;  %v186_v38 = vadd.f32 %v1308_v0, %v1359_v16  ;;  %v1414_v40 = vmul.f32 0.5, %v1357_v14 }
 0x11a   :  { %1725 = vst [vmem:[#allocation3_spill] sm:$0xff] %v1407_v24  ;;  %1101 = vrcp.f32 %v276_v1  ;;  %v278_v41 = vadd.f32 1.0, %v262_v11  ;;  %v1417_v44 = vmul.f32 0.70710677, %v1407_v24  ;;  %v1420_v10 = vmul.f32 0.5, %v1364_v20 }
 0x11b   :  { %1726 = vst [vmem:[#allocation4_spill] sm:$0xff] %v1414_v40  ;;  %1103 = vpow2.f32 %v510_v9  ;;  %v1422_v45 = vmul.f32 0.5, %v176_v42  ;;  %v1424_v46 = vmul.f32 0.70710677, %v186_v38  ;;  %v514_v49 = vmul.f32 1.442695, %v487_v22 }
 0x11c   :  { %1727 = vst [vmem:[#allocation5_spill] sm:$0xff] %v1417_v44  ;;  %1728 = vst [vmem:[#allocation6_spill] sm:$0xff] %v1420_v10  ;;  %1105 = vpow2.f32 %v508_v19  ;;  %v249_v16 = vand.u32 2147483647, %v1417_v44  ;;  %v1428_v14 = vadd.f32 %v946_v27, %v1308_v0  ;;  %v1430_v50 = vpop.eup %1087  ;;  %v512_v54 = vmul.f32 1.442695, %v486_v32 }
 0x11d   :  { %1729 = vst [vmem:[#allocation7_spill] sm:$0xff] %v1422_v45  ;;  %1730 = vst [vmem:[#allocation8_spill] sm:$0xff] %v1424_v46  ;;  %1107 = vrcp.f32 %v279_v31  ;;  %v248_v55 = vand.u32 2147483647, %v1424_v46  ;;  %v1434_v20 = vadd.f32 %v1308_v0, %v195_v34  ;;  %v1436_v42 = vpop.eup %1089  ;;  %v1443_v27 = vmul.f32 0.5, %v186_v38 }
 0x11e   :  { %1731 = vst [vmem:[#allocation9_spill] sm:$0xff] %v1428_v14  ;;  %1109 = vrcp.f32 %v278_v41  ;;  %v265_v57 = vmul.f32 0.3275911, %v249_v16  ;;  %v473_v59 = vsub.f32 0.0, %v249_v16  ;;  %v1439_v60 = vmul.f32 0.70710677, %v1428_v14  ;;  %v1441_v62 = vpop.eup %1091 }
 0x11f   :  { %1732 = vst [vmem:[#allocation10_spill] sm:$0xff] %v1434_v20  ;;  %1734 = vst [vmem:[#allocation12_spill] sm:$0xff] %v1443_v27  ;;  %v264_v1 = vmul.f32 0.3275911, %v248_v55  ;;  %v472_v3 = vsub.f32 0.0, %v248_v55  ;;  %v1448_v9 = vpop.eup %1093  ;;  %1111 = vpow2.f32 %v514_v49  ;;  %vm558_vm2 = vcmp.ge.f32.partialorder %v1322_v15, 0.0 }
 0x120   :  { %1733 = vst [vmem:[#allocation11_spill] sm:$0xff] %v1439_v60  ;;  %v1446_v4 = vmul.f32 0.70710677, %v1434_v20  ;;  %v281_v0 = vadd.f32 1.0, %v265_v57  ;;  %v489_v34 = vmul.f32 %v473_v59, %v249_v16  ;;  %v251_v11 = vand.u32 2147483647, %v1439_v60  ;;  %v1451_v12 = vpop.eup %1095 }
 0x121   :  { %1113 = vpow2.f32 %v512_v54  ;;  %v280_v19 = vadd.f32 1.0, %v264_v1  ;;  %v488_v22 = vmul.f32 %v472_v3, %v248_v55  ;;  %v1454_v32 = vpop.eup %1097  ;;  %v316_v55 = vmul.f32 1.0614054, %v1376_v28 }
 0x122   :  { %1735 = vst [vmem:[#allocation13_spill] sm:$0xff] %v1446_v4  ;;  %v250_v31 = vand.u32 2147483647, %v1446_v4  ;;  %1115 = vrcp.f32 %v281_v0  ;;  %v518_v38 = vmul.f32 1.442695, %v489_v34  ;;  %v475_v14 = vsub.f32 0.0, %v251_v11  ;;  %v1456_v24 = vpop.eup %1099 }
 0x123   :  { %v267_v41 = vmul.f32 0.3275911, %v251_v11  ;;  %1117 = vrcp.f32 %v280_v19  ;;  %v516_v49 = vmul.f32 1.442695, %v488_v22  ;;  %v317_v60 = vmul.f32 1.0614054, %v1361_v17 }
 0x124   :  { %v266_v16 = vmul.f32 0.3275911, %v250_v31  ;;  %v474_v57 = vsub.f32 0.0, %v250_v31  ;;  %v1458_v59 = vpop.eup %1101  ;;  %1119 = vpow2.f32 %v518_v38  ;;  %v491_v1 = vmul.f32 %v475_v14, %v251_v11 }
 0x125   :  { %v283_v54 = vadd.f32 1.0, %v267_v41  ;;  %v1461_v3 = vpop.eup %1103  ;;  %1121 = vpow2.f32 %v516_v49  ;;  %v332_v22 = vadd.f32 -1.4531521, %v316_v55  ;;  %v318_v27 = vmul.f32 1.0614054, %v1396_v58 }
 0x126   :  { %1736 = vst [vmem:[#allocation14_spill] sm:$0xff] %v1461_v3  ;;  %v282_v0 = vadd.f32 1.0, %v266_v16  ;;  %v490_v34 = vmul.f32 %v474_v57, %v250_v31  ;;  %v1464_v20 = vpop.eup %1105  ;;  %v522_v19 = vmul.f32 1.442695, %v491_v1  ;;  %v333_v11 = vadd.f32 -1.4531521, %v317_v60 }
 0x127   :  { %1737 = vst [vmem:[#allocation15_spill] sm:$0xff] %v1464_v20  ;;  %1123 = vrcp.f32 %v283_v54  ;;  %v1467_v33 = vpop.eup %1107  ;;  %v319_v38 = vmul.f32 1.0614054, %v1393_v53  ;;  %v348_v31 = vmul.f32 %v1376_v28, %v332_v22  ;;  %v334_v49 = vadd.f32 -1.4531521, %v318_v27 }
 0x128   :  { %1125 = vrcp.f32 %v282_v0  ;;  %v520_v14 = vmul.f32 1.442695, %v490_v34  ;;  %v1470_v41 = vpop.eup %1109  ;;  %v320_v16 = vmul.f32 1.0614054, %v1409_v30  ;;  %v349_v57 = vmul.f32 %v1361_v17, %v333_v11 }
 0x129   :  { %1127 = vpow2.f32 %v522_v19  ;;  %v335_v54 = vadd.f32 -1.4531521, %v319_v38  ;;  %v321_v1 = vmul.f32 1.0614054, %v1403_v18  ;;  %v1476_v55 = vpop.eup %1111  ;;  %v364_v0 = vadd.f32 1.4214138, %v348_v31 }
 0x12a   :  { %1129 = vpow2.f32 %v520_v14  ;;  %1738 = vst [vmem:[#allocation16_spill] sm:$0xff] %v1476_v55  ;;  %v350_v60 = vmul.f32 %v1396_v58, %v334_v49  ;;  %v336_v34 = vadd.f32 -1.4531521, %v320_v16  ;;  %v322_v45 = vmul.f32 1.0614054, %v1448_v9 }
 0x12b   :  { %v1480_v19 = vpop.eup %1113  ;;  %v365_v22 = vadd.f32 1.4214138, %v349_v57  ;;  %v351_v27 = vmul.f32 %v1393_v53, %v335_v54  ;;  %v337_v4 = vadd.f32 -1.4531521, %v321_v1  ;;  %v323_v14 = vmul.f32 1.0614054, %v1441_v62 }
 0x12c   :  { %1739 = vst [vmem:[#allocation17_spill] sm:$0xff] %v1480_v19  ;;  %v1484_v11 = vpop.eup %1115  ;;  %v380_v38 = vmul.f32 %v1376_v28, %v364_v0  ;;  %v366_v44 = vadd.f32 1.4214138, %v350_v60  ;;  %v352_v31 = vmul.f32 %v1409_v30, %v336_v34  ;;  %v338_v40 = vadd.f32 -1.4531521, %v322_v45 }
 0x12d   :  { %v1488_v49 = vpop.eup %1117  ;;  %v381_v16 = vmul.f32 %v1361_v17, %v365_v22  ;;  %v367_v10 = vadd.f32 1.4214138, %v351_v27  ;;  %v353_v57 = vmul.f32 %v1403_v18, %v337_v4  ;;  %v339_v55 = vadd.f32 -1.4531521, %v323_v14 }
 0x12e   :  { %v1492_v54 = vpop.eup %1119  ;;  %v396_v1 = vadd.f32 -0.28449672, %v380_v38  ;;  %v382_v19 = vmul.f32 %v1396_v58, %v366_v44  ;;  %v368_v3 = vadd.f32 1.4214138, %v352_v31  ;;  %v354_v0 = vmul.f32 %v1448_v9, %v338_v40 }
 0x12f   :  { %1740 = vst [vmem:[#allocation18_spill] sm:$0xff] %v1492_v54  ;;  %v1496_v60 = vpop.eup %1121  ;;  %v397_v34 = vadd.f32 -0.28449672, %v381_v16  ;;  %v383_v45 = vmul.f32 %v1393_v53, %v367_v10  ;;  %v369_v20 = vadd.f32 1.4214138, %v353_v57  ;;  %v355_v22 = vmul.f32 %v1441_v62, %v339_v55 }
 0x130   :  { %1741 = vst [vmem:[#allocation19_spill] sm:$0xff] %v1496_v60  ;;  %v412_v4 = vmul.f32 %v1376_v28, %v396_v1  ;;  %v398_v14 = vadd.f32 -0.28449672, %v382_v19  ;;  %v384_v38 = vmul.f32 %v1409_v30, %v368_v3  ;;  %v370_v54 = vadd.f32 1.4214138, %v354_v0 }
 0x131   :  { %v1500_v27 = vpop.eup %1123  ;;  %v413_v40 = vmul.f32 %v1361_v17, %v397_v34  ;;  %v399_v31 = vadd.f32 -0.28449672, %v383_v45  ;;  %v385_v16 = vmul.f32 %v1403_v18, %v369_v20  ;;  %v371_v60 = vadd.f32 1.4214138, %v355_v22 }
 0x132   :  { %v1504_v44 = vpop.eup %1125  ;;  %v428_v57 = vadd.f32 0.2548296, %v412_v4  ;;  %v414_v55 = vmul.f32 %v1396_v58, %v398_v14  ;;  %v400_v46 = vadd.f32 -0.28449672, %v384_v38  ;;  %v386_v1 = vmul.f32 %v1448_v9, %v370_v54 }
 0x133   :  { %v1508_v10 = vpop.eup %1127  ;;  %v429_v3 = vadd.f32 0.2548296, %v413_v40  ;;  %v415_v0 = vmul.f32 %v1393_v53, %v399_v31  ;;  %v401_v34 = vadd.f32 -0.28449672, %v385_v16  ;;  %v387_v45 = vmul.f32 %v1441_v62, %v371_v60 }
 0x134   :  { %1742 = vst [vmem:[#allocation20_spill] sm:$0xff] %v1508_v10  ;;  %v1512_v19 = vpop.eup %1129  ;;  %v444_v20 = vmul.f32 %v1376_v28, %v428_v57  ;;  %v430_v22 = vadd.f32 0.2548296, %v414_v55  ;;  %v416_v4 = vmul.f32 %v1409_v30, %v400_v46  ;;  %v402_v14 = vadd.f32 -0.28449672, %v386_v1 }
 0x135   :  { %v445_v54 = vmul.f32 %v1361_v17, %v429_v3  ;;  %v431_v38 = vadd.f32 0.2548296, %v415_v0  ;;  %v417_v40 = vmul.f32 %v1403_v18, %v401_v34  ;;  %v403_v10 = vadd.f32 -0.28449672, %v387_v45 }
 0x136   :  { %vm559_vm3 = vcmp.ge.f32.partialorder %v1320_v13, 0.0  ;;  %v524_v60 = vmul.f32 %v1389_v48, %v444_v20  ;;  %v446_v31 = vmul.f32 %v1396_v58, %v430_v22  ;;  %v432_v16 = vadd.f32 0.2548296, %v416_v4 }
 0x137   :  { %v418_v28 = vmul.f32 %v1448_v9, %v402_v14  ;;  %vm560_vm4 = vcmp.ge.f32.partialorder %v1336_v39, 0.0  ;;  %v525_v46 = vmul.f32 %v1384_v43, %v445_v54  ;;  %v447_v57 = vmul.f32 %v1393_v53, %v431_v38 }
 0x138   :  { %v433_v17 = vadd.f32 0.2548296, %v417_v40  ;;  %v419_v55 = vmul.f32 %v1441_v62, %v403_v10  ;;  %vm561_vm5 = vcmp.ge.f32.partialorder %v1330_v35, 0.0  ;;  %v540_v1 = vsub.f32 1.0, %v524_v60 }
 0x139   :  { %v526_v3 = vmul.f32 %v1401_v7, %v446_v31  ;;  %v448_v48 = vmul.f32 %v1409_v30, %v432_v16  ;;  %v434_v58 = vadd.f32 0.2548296, %v418_v28  ;;  %vm562_vm6 = vcmp.ge.f32.partialorder %v1344_v56, 0.0 }
 0x13a   :  { %v541_v0 = vsub.f32 1.0, %v525_v46  ;;  %v527_v34 = vmul.f32 %v1399_v63, %v447_v57  ;;  %v449_v43 = vmul.f32 %v1403_v18, %v433_v17  ;;  %v435_v45 = vadd.f32 0.2548296, %v419_v55 }
 0x13b   :  { %v572_v53 = vsub.f32 0.0, %v540_v1  ;;  %v542_v20 = vsub.f32 1.0, %v526_v3  ;;  %v528_v10 = vmul.f32 %v1436_v42, %v448_v48  ;;  %v450_v22 = vmul.f32 %v1448_v9, %v434_v58 }
 0x13c   :  { %v573_v4 = vsub.f32 0.0, %v541_v0  ;;  %v543_v14 = vsub.f32 1.0, %v527_v34  ;;  %v529_v7 = vmul.f32 %v1430_v50, %v449_v43  ;;  %v451_v30 = vmul.f32 %v1441_v62, %v435_v45 }
 0x13d   :  { %v588_v54 = vsel %vm556_vm0, %v540_v1, %v572_v53  ;;  %v574_v38 = vsub.f32 0.0, %v542_v20  ;;  %v544_v63 = vsub.f32 1.0, %v528_v10  ;;  %v530_v18 = vmul.f32 %v1454_v32, %v450_v22 }
 0x13e   :  { %v604_v40 = vadd.f32 1.0, %v588_v54  ;;  %v589_v60 = vsel %vm557_vm1, %v541_v0, %v573_v4  ;;  %v575_v42 = vsub.f32 0.0, %v543_v14  ;;  %v545_v31 = vsub.f32 1.0, %v529_v7 }
 0x13f   :  { %vm563_vm7 = vcmp.ge.f32.partialorder %v1342_v52, 0.0  ;;  %v605_v9 = vadd.f32 1.0, %v589_v60  ;;  %v590_v50 = vsel %vm558_vm2, %v542_v20, %v574_v38  ;;  %v576_v62 = vsub.f32 0.0, %v544_v63 }
 0x140   :  { %v546_v16 = vsub.f32 1.0, %v530_v18  ;;  %v620_v6 = vmul.f32 %v604_v40, %v1332_v36  ;;  %v606_v28 = vadd.f32 1.0, %v590_v50  ;;  %v591_v32 = vsel %vm559_vm3, %v543_v14, %v575_v42 }
 0x141   :  { %v577_v46 = vsub.f32 0.0, %v545_v31  ;;  %v621_v5 = vmul.f32 %v605_v9, %v1327_v29  ;;  %v607_v57 = vadd.f32 1.0, %v591_v32  ;;  %v592_v17 = vsel %vm560_vm4, %v544_v63, %v576_v62 }
 0x142   :  { %v578_v55 = vsub.f32 0.0, %v546_v16  ;;  %979 = vmatprep.mubr.f32.mxu1 %v620_v6  ;;  %v622_v15 = vmul.f32 %v606_v28, %v1347_v61  ;;  %v608_v1 = vadd.f32 1.0, %v592_v17  ;;  %v531_v36 = vmul.f32 %v1451_v12, %v451_v30 }
 0x143   :  { %v593_v3 = vsel %vm561_vm5, %v545_v31, %v577_v46  ;;  %980 = vmatmul.mubr.f32.vlgmr.msra.gmra.mrb[0].mxu1 %v621_v5  ;;  %v623_v13 = vmul.f32 %v607_v57, %v1334_v37  ;;  %v324_v39 = vmul.f32 1.0614054, %v1458_v59  ;;  %v325_v34 = vmul.f32 1.0614054, %v1456_v24 }
 0x144   :  { %v609_v48 = vadd.f32 1.0, %v593_v3  ;;  %v594_v29 = vsel %vm562_vm6, %v546_v16, %v578_v55  ;;  %982 = vmatprep.mubr.f32.mxu1 %v622_v15  ;;  %v624_v58 = vmul.f32 %v608_v1, %v1352_v8  ;;  %v547_v61 = vsub.f32 1.0, %v531_v36 }
 0x145   :  { %v610_v0 = vadd.f32 1.0, %v594_v29  ;;  %v340_v43 = vadd.f32 -1.4531521, %v324_v39  ;;  %v326_v12 = vmul.f32 1.0614054, %v1470_v41  ;;  %vm564_vm8 = vcmp.ge.f32.partialorder %v1374_v26, 0.0 }
 0x146   :  { %v625_v35 = vmul.f32 %v609_v48, %v1350_v2  ;;  %v327_v37 = vmul.f32 1.0614054, %v1467_v33  ;;  %v579_v56 = vsub.f32 0.0, %v547_v61  ;;  %v341_v53 = vadd.f32 -1.4531521, %v325_v34 }
 0x147   :  { %v626_v45 = vmul.f32 %v610_v0, %v1371_v25  ;;  %v328_v20 = vmul.f32 1.0614054, %v1488_v49  ;;  %983 = vmatmul.mubr.f32.gmra.mrb[2].mxu1 %v623_v13  ;;  %v356_v8 = vmul.f32 %v1458_v59, %v340_v43  ;;  %v342_v10 = vadd.f32 -1.4531521, %v326_v12 }
 0x148   :  { %v343_v22 = vadd.f32 -1.4531521, %v327_v37  ;;  %v329_v4 = vmul.f32 1.0614054, %v1484_v11  ;;  %985 = vmatprep.mubr.f32.mxu1 %v624_v58  ;;  %v595_v2 = vsel %vm563_vm7, %v547_v61, %v579_v56  ;;  %v357_v14 = vmul.f32 %v1456_v24, %v341_v53 }
 0x149   :  { %v344_v7 = vadd.f32 -1.4531521, %v328_v20  ;;  %v330_v25 = vmul.f32 1.0614054, %v1504_v44  ;;  %v611_v30 = vadd.f32 1.0, %v595_v2  ;;  %v358_v38 = vmul.f32 %v1470_v41, %v342_v10 }
 0x14a   :  { %v372_v54 = vadd.f32 1.4214138, %v356_v8  ;;  %v359_v63 = vmul.f32 %v1467_v33, %v343_v22  ;;  %v373_v18 = vadd.f32 1.4214138, %v357_v14  ;;  %v345_v60 = vadd.f32 -1.4531521, %v329_v4 }
 0x14b   :  { %v360_v40 = vmul.f32 %v1488_v49, %v344_v7  ;;  %v346_v42 = vadd.f32 -1.4531521, %v330_v25  ;;  %986 = vmatmul.mubr.f32.gmra.mrb[4].mxu1 %v625_v35  ;;  %v627_v52 = vmul.f32 %v611_v30, %v1366_v21  ;;  %v374_v9 = vadd.f32 1.4214138, %v358_v38  ;;  %v1743_v14 = vld [vmem:[#allocation8_spill] sm:$0xff]  ;;  %v1744_v7 = vld [vmem:[#allocation15_spill] sm:$0xff] }
 0x14c   :  { %v388_v31 = vmul.f32 %v1458_v59, %v372_v54  ;;  %v375_v50 = vadd.f32 1.4214138, %v359_v63  ;;  %988 = vmatprep.mubr.f32.mxu1 %v626_v45  ;;  %v389_v62 = vmul.f32 %v1456_v24, %v373_v18  ;;  %v361_v6 = vmul.f32 %v1484_v11, %v345_v60  ;;  %v1745_v38 = vld [vmem:[#allocation14_spill] sm:$0xff] }
 0x14d   :  { %v376_v16 = vadd.f32 1.4214138, %v360_v40  ;;  %v362_v28 = vmul.f32 %v1504_v44, %v346_v42  ;;  %v390_v46 = vmul.f32 %v1470_v41, %v374_v9  ;;  %v331_v57 = vmul.f32 1.0614054, %v1500_v27  ;;  %v1746_v42 = vld [vmem:[#allocation17_spill] sm:$0xff] }
 0x14e   :  { %v404_v32 = vadd.f32 -0.28449672, %v388_v31  ;;  %v391_v5 = vmul.f32 %v1467_v33, %v375_v50  ;;  %v405_v21 = vadd.f32 -0.28449672, %v389_v62  ;;  %v377_v55 = vadd.f32 1.4214138, %v361_v6 }
 0x14f   :  { %v392_v17 = vmul.f32 %v1488_v49, %v376_v16  ;;  %v378_v15 = vadd.f32 1.4214138, %v362_v28  ;;  %989 = vmatmul.mubr.f32.gmra.mrb[6].mxu1 %v627_v52  ;;  %v406_v3 = vadd.f32 -0.28449672, %v390_v46  ;;  %v347_v13 = vadd.f32 -1.4531521, %v331_v57 }
 0x150   :  { %v420_v1 = vmul.f32 %v1458_v59, %v404_v32  ;;  %v407_v36 = vadd.f32 -0.28449672, %v391_v5  ;;  %v421_v48 = vmul.f32 %v1456_v24, %v405_v21  ;;  %v393_v39 = vmul.f32 %v1484_v11, %v377_v55  ;;  %v1747_v31 = vld [vmem:[#allocation16_spill] sm:$0xff]  ;;  %v1748_v16 = vld [vmem:[#allocation19_spill] sm:$0xff]  ;;  %v1749_v21 = vld [vmem:[#allocation18_spill] sm:$0xff] }
 0x151   :  { %v408_v29 = vadd.f32 -0.28449672, %v392_v17  ;;  %v394_v58 = vmul.f32 %v1504_v44, %v378_v15  ;;  %v422_v61 = vmul.f32 %v1470_v41, %v406_v3  ;;  %v363_v35 = vmul.f32 %v1500_v27, %v347_v13 }
 0x152   :  { %v436_v0 = vadd.f32 0.2548296, %v420_v1  ;;  %v423_v34 = vmul.f32 %v1467_v33, %v407_v36  ;;  %v437_v43 = vadd.f32 0.2548296, %v421_v48  ;;  %v409_v37 = vadd.f32 -0.28449672, %v393_v39 }
 0x153   :  { %v424_v12 = vmul.f32 %v1488_v49, %v408_v29  ;;  %v410_v45 = vadd.f32 -0.28449672, %v394_v58  ;;  %vm565_vm9 = vcmp.ge.f32.partialorder %v1369_v23, 0.0  ;;  %v438_v53 = vadd.f32 0.2548296, %v422_v61 }
 0x154   :  { %v452_v56 = vmul.f32 %v1458_v59, %v436_v0  ;;  %v439_v20 = vadd.f32 0.2548296, %v423_v34  ;;  %v379_v8 = vadd.f32 1.4214138, %v363_v35  ;;  %vm567_vm10 = vcmp.ge.f32.partialorder %v1387_v47, 0.0  ;;  %v1750_v0 = vld [vmem:[#allocation6_spill] sm:$0xff] }
 0x155   :  { %vm566_vm11 = vcmp.ge.f32.partialorder %v1391_v51, 0.0  ;;  %v453_v10 = vmul.f32 %v1456_v24, %v437_v43  ;;  %v440_v22 = vadd.f32 0.2548296, %v424_v12  ;;  %v425_v4 = vmul.f32 %v1484_v11, %v409_v37  ;;  %v1751_v43 = vld [vmem:[#allocation4_spill] sm:$0xff]  ;;  %v1753_v51 = vld [vmem:[#allocation13_spill] sm:$0xff]  ;;  %v1754_v47 = vld [vmem:[#allocation7_spill] sm:$0xff] }
 0x156   :  { %v426_v2 = vmul.f32 %v1504_v44, %v410_v45  ;;  %vm568_vm12 = vcmp.ge.f32.partialorder %v1743_v14, 0.0  ;;  %v532_v25 = vmul.f32 %v1744_v7, %v452_v56  ;;  %v454_v59 = vmul.f32 %v1470_v41, %v438_v53  ;;  %v1752_v56 = vld [vmem:[#allocation5_spill] sm:$0xff] }
 0x157   :  { %v455_v30 = vmul.f32 %v1467_v33, %v439_v20  ;;  %v395_v54 = vmul.f32 %v1500_v27, %v379_v8  ;;  %v533_v63 = vmul.f32 %v1745_v38, %v453_v10  ;;  %v456_v18 = vmul.f32 %v1488_v49, %v440_v22  ;;  %v1755_v8 = vld [vmem:[#allocation2_spill] sm:$0xff] }
 0x158   :  { %v441_v24 = vadd.f32 0.2548296, %v425_v4  ;;  %v442_v40 = vadd.f32 0.2548296, %v426_v2  ;;  %v548_v60 = vsub.f32 1.0, %v532_v25  ;;  %v534_v52 = vmul.f32 %v1746_v42, %v454_v59  ;;  %v1756_v2 = vld [vmem:[#allocation12_spill] sm:$0xff] }
 0x159   :  { %v535_v9 = vmul.f32 %v1747_v31, %v455_v30  ;;  %v411_v50 = vadd.f32 -0.28449672, %v395_v54  ;;  %v549_v62 = vsub.f32 1.0, %v533_v63  ;;  %v536_v6 = vmul.f32 %v1748_v16, %v456_v18  ;;  %v1757_v25 = vld [vmem:[#allocation20_spill] sm:$0xff]  ;;  %v1758_v38 = vld [vmem:[#allocation10_spill] sm:$0xff]  ;;  %v1760_v42 = vld [vmem:[#allocation11_spill] sm:$0xff] }
 0x15a   :  { %v457_v41 = vmul.f32 %v1484_v11, %v441_v24  ;;  %v458_v33 = vmul.f32 %v1504_v44, %v442_v40  ;;  %v580_v28 = vsub.f32 0.0, %v548_v60  ;;  %v550_v32 = vsub.f32 1.0, %v534_v52  ;;  %v1759_v24 = vld [vmem:[#allocation3_spill] sm:$0xff] }
 0x15b   :  { %v551_v46 = vsub.f32 1.0, %v535_v9  ;;  %v427_v49 = vmul.f32 %v1500_v27, %v411_v50  ;;  %v581_v5 = vsub.f32 0.0, %v549_v62  ;;  %v552_v57 = vsub.f32 1.0, %v536_v6  ;;  %v1761_v9 = vld [vmem:[#allocation9_spill] sm:$0xff]  ;;  %v826_v6 = vld [vmem:[%s1713_s4] ss:$0 sm:$0xff] }
 0x15c   :  { %v537_v17 = vmul.f32 %v1749_v21, %v457_v41  ;;  %v538_v55 = vmul.f32 %v1512_v19, %v458_v33  ;;  %v596_v15 = vsel %vm564_vm8, %v548_v60, %v580_v28  ;;  %v582_v1 = vsub.f32 0.0, %v550_v32 }
 0x15d   :  { %v583_v3 = vsub.f32 0.0, %v551_v46  ;;  %v443_v36 = vadd.f32 0.2548296, %v427_v49  ;;  %v612_v11 = vadd.f32 1.0, %v596_v15  ;;  %v597_v44 = vsel %vm565_vm9, %v549_v62, %v581_v5 }
 0x15e   :  { %v584_v13 = vsub.f32 0.0, %v552_v57  ;;  %v553_v48 = vsub.f32 1.0, %v537_v17  ;;  %v613_v29 = vadd.f32 1.0, %v597_v44  ;;  %v598_v39 = vsel %vm566_vm11, %v550_v32, %v582_v1 }
 0x15f   :  { %v599_v58 = vsel %vm567_vm10, %v551_v46, %v583_v3  ;;  %v554_v19 = vsub.f32 1.0, %v538_v55  ;;  %v628_v26 = vmul.f32 %v612_v11, %v1750_v0  ;;  %v614_v61 = vadd.f32 1.0, %v598_v39 }
 0x160   :  { %v615_v34 = vadd.f32 1.0, %v599_v58  ;;  %v600_v35 = vsel %vm568_vm12, %v552_v57, %v584_v13  ;;  %v629_v23 = vmul.f32 %v613_v29, %v1751_v43  ;;  %v585_v37 = vsub.f32 0.0, %v553_v48 }
 0x161   :  { %v616_v12 = vadd.f32 1.0, %v600_v35  ;;  %v586_v45 = vsub.f32 0.0, %v554_v19  ;;  %vm569_vm13 = vcmp.ge.f32.partialorder %v1752_v56, 0.0  ;;  %vm570_vm14 = vcmp.ge.f32.partialorder %v1753_v51, 0.0  ;;  %991 = vmatprep.mubr.f32.mxu1 %v628_v26 }
 0x162   :  { %v630_v53 = vmul.f32 %v614_v61, %v1754_v47  ;;  %v459_v20 = vmul.f32 %v1500_v27, %v443_v36  ;;  %v215_v10 = vmul.f32 0.5, %v1755_v8  ;;  %992 = vmatmul.mubr.f32.gmra.mrb[8].mxu1 %v629_v23  ;;  %v601_v22 = vsel %vm569_vm13, %v553_v48, %v585_v37 }
 0x163   :  { %v602_v4 = vsel %vm570_vm14, %v554_v19, %v586_v45  ;;  %v632_v14 = vmul.f32 %v616_v12, %v1756_v2  ;;  %v617_v54 = vadd.f32 1.0, %v601_v22  ;;  %v218_v63 = vmul.f32 0.5, %v1758_v38 }
 0x164   :  { %994 = vmatprep.mubr.f32.mxu1 %v630_v53  ;;  %v618_v7 = vadd.f32 1.0, %v602_v4  ;;  %v539_v59 = vmul.f32 %v1757_v25, %v459_v20  ;;  %v631_v30 = vmul.f32 %v615_v34, %v215_v10  ;;  %v217_v40 = vmul.f32 0.5, %v1759_v24 }
 0x165   :  { %vm571_vm15 = vcmp.ge.f32.partialorder %v1760_v42, 0.0  ;;  %v219_v50 = vmul.f32 0.5, %v1761_v9  ;;  %vm804_vm0 = vcmask 31744  }
 0x166   :  { %v555_v18 = vsub.f32 1.0, %v539_v59  ;;  %995 = vmatmul.mubr.f32.gmra.mrb[10].mxu1 %v631_v30  ;;  %v634_v27 = vmul.f32 %v618_v7, %v218_v63  ;;  %v633_v52 = vmul.f32 %v617_v54, %v217_v40 }
 0x167   :  { %997 = vmatprep.mubr.f32.mxu1 %v632_v14 }
 0x168   :  { %v587_v60 = vsub.f32 0.0, %v555_v18 }
 0x16a   :  { %v603_v31 = vsel %vm571_vm15, %v555_v18, %v587_v60  ;;  %998 = vmatmul.mubr.f32.gmra.mrb[12].mxu1 %v633_v52 }
 0x16b   :  { %v619_v62 = vadd.f32 1.0, %v603_v31  ;;  %1000 = vmatprep.mubr.f32.mxu1 %v634_v27 }
 0x16d   :  { %v635_v16 = vmul.f32 %v619_v62, %v219_v50 }
 0x16f   :  { %1001 = vmatmul.mubr.f32.gmra.mrb[14].mxu1 %v635_v16 }
 0x216   :  { %v981_v41 = vpop.f32.mrb[0].mxu1 }
 0x217   :  { %v731_v33 = vadd.f32 %v981_v41, %v826_v6  ;;  %v725_v28 = vpop.f32.mrb[1].mxu1 }
 0x218   :  { %v726_v32 = vadd.f32 %v826_v6, %v725_v28 }
 0x219   :  { %806 = vst.msk [vmem:[%s1714_s5 + $0x8] sm:$0xff] %vm804_vm0, %v731_v33 }
 0x21a   :  { %805 = vst.msk [vmem:[%s1714_s5] sm:$0xff] %vm804_vm0, %v726_v32  ;;  %v984_v46 = vpop.f32.mrb[2].mxu1 }
 0x21b   :  { %v741_v49 = vadd.f32 %v984_v46, %v826_v6  ;;  %v735_v5 = vpop.f32.mrb[3].mxu1 }
 0x21c   :  { %v736_v57 = vadd.f32 %v826_v6, %v735_v5 }
 0x21d   :  { %808 = vst.msk [vmem:[%s1714_s5 + $0x18] sm:$0xff] %vm804_vm0, %v741_v49 }
 0x21e   :  { %807 = vst.msk [vmem:[%s1714_s5 + $0x10] sm:$0xff] %vm804_vm0, %v736_v57  ;;  %v987_v21 = vpop.f32.mrb[4].mxu1 }
 0x21f   :  { %v751_v17 = vadd.f32 %v987_v21, %v826_v6  ;;  %v745_v55 = vpop.f32.mrb[5].mxu1 }
 0x220   :  { %v746_v15 = vadd.f32 %v826_v6, %v745_v55 }
 0x221   :  { %810 = vst.msk [vmem:[%s1714_s5 + $0x28] sm:$0xff] %vm804_vm0, %v751_v17 }
 0x222   :  { %809 = vst.msk [vmem:[%s1714_s5 + $0x20] sm:$0xff] %vm804_vm0, %v746_v15  ;;  %v990_v1 = vpop.f32.mrb[6].mxu1 }
 0x223   :  { %v761_v3 = vadd.f32 %v990_v1, %v826_v6  ;;  %v755_v36 = vpop.f32.mrb[7].mxu1 }
 0x224   :  { %v756_v11 = vadd.f32 %v826_v6, %v755_v36 }
 0x225   :  { %812 = vst.msk [vmem:[%s1714_s5 + $0x38] sm:$0xff] %vm804_vm0, %v761_v3 }
 0x226   :  { %811 = vst.msk [vmem:[%s1714_s5 + $0x30] sm:$0xff] %vm804_vm0, %v756_v11 }
 0x235   :  { %v993_v44 = vpop.f32.mrb[8].mxu1 }
 0x236   :  { %v771_v13 = vadd.f32 %v993_v44, %v826_v6  ;;  %v765_v48 = vpop.f32.mrb[9].mxu1 }
 0x237   :  { %v766_v29 = vadd.f32 %v826_v6, %v765_v48 }
 0x238   :  { %814 = vst.msk [vmem:[%s1714_s5 + $0x48] sm:$0xff] %vm804_vm0, %v771_v13 }
 0x239   :  { %813 = vst.msk [vmem:[%s1714_s5 + $0x40] sm:$0xff] %vm804_vm0, %v766_v29  ;;  %v996_v39 = vpop.f32.mrb[10].mxu1 }
 0x23a   :  { %v781_v58 = vadd.f32 %v996_v39, %v826_v6  ;;  %v775_v19 = vpop.f32.mrb[11].mxu1 }
 0x23b   :  { %v776_v0 = vadd.f32 %v826_v6, %v775_v19 }
 0x23c   :  { %816 = vst.msk [vmem:[%s1714_s5 + $0x58] sm:$0xff] %vm804_vm0, %v781_v58 }
 0x23d   :  { %815 = vst.msk [vmem:[%s1714_s5 + $0x50] sm:$0xff] %vm804_vm0, %v776_v0  ;;  %v999_v26 = vpop.f32.mrb[12].mxu1 }
 0x23e   :  { %v791_v61 = vadd.f32 %v999_v26, %v826_v6  ;;  %v785_v34 = vpop.f32.mrb[13].mxu1 }
 0x23f   :  { %v786_v35 = vadd.f32 %v826_v6, %v785_v34 }
 0x240   :  { %818 = vst.msk [vmem:[%s1714_s5 + $0x68] sm:$0xff] %vm804_vm0, %v791_v61 }
 0x241   :  { %817 = vst.msk [vmem:[%s1714_s5 + $0x60] sm:$0xff] %vm804_vm0, %v786_v35 }
 0x242   :  { %v1002_v43 = vpop.f32.mrb[14].mxu1 }
 0x243   :  { %v801_v23 = vadd.f32 %v1002_v43, %v826_v6  ;;  %v795_v12 = vpop.f32.mrb[15].mxu1 }
 0x244   :  { %v796_v37 = vadd.f32 %v826_v6, %v795_v12 }
 0x245   :  { %820 = vst.msk [vmem:[%s1714_s5 + $0x78] sm:$0xff] %vm804_vm0, %v801_v23 }
 0x246   :  { %819 = vst.msk [vmem:[%s1714_s5 + $0x70] sm:$0xff] %vm804_vm0, %v796_v37 }

</bundles_post_ra>
